<compile_context>
chip_gen: v7x
topology: tpu7x:2x2x1
jax: 0.10.0
libtpu: 0.0.40
codegen_flags: <defaults>
</compile_context>

<pallas_src>
import math

import jax
import jax.numpy as jnp
from jax import lax
from jax.experimental import pallas as pl
from jax.experimental.pallas import tpu as pltpu


def _round_up(x: int, m: int) -> int:
    return (x + m - 1) // m * m


# ============================================================================
# Kernel 1: ConvTranspose2d(k=2, s=2) as a lane-dense GEMM (no bias: folded
# into conv1's bias downstream).  Output rows ordered (dy, dx, co); the 2x2
# pixel scatter is a tiny XLA transpose in the wrapper.
# ============================================================================
def _up_gemm_kernel(x_ref, w_ref, o_ref):
    # (4*Cout, Cin) @ (Cin, Lp) -> (4*Cout, Lp); flattened spatial on lanes.
    o_ref[0] = jnp.dot(w_ref[...], x_ref[0],
                       preferred_element_type=jnp.float32)


def pallas_up_gemm(x_cm, w_up):
    """x_cm: (N, Cin, Lp) channel-major flat map (Lp % 128 == 0).
    w_up: (Cin, Cout, 2, 2) PyTorch ConvTranspose2d weight.
    Returns (N, 4*Cout, Lp)."""
    N, Cin, Lp = x_cm.shape
    Cout = w_up.shape[1]
    assert Lp % 128 == 0 and (4 * Cout) % 8 == 0, (x_cm.shape, w_up.shape)
    lhs = jnp.transpose(w_up, (2, 3, 1, 0)).reshape(4 * Cout, Cin)
    return pl.pallas_call(
        _up_gemm_kernel,
        out_shape=jax.ShapeDtypeStruct((N, 4 * Cout, Lp), jnp.float32),
        grid=(N,),
        in_specs=[
            pl.BlockSpec((1, Cin, Lp), lambda b: (b, 0, 0)),
            pl.BlockSpec((4 * Cout, Cin), lambda b: (0, 0)),   # resident
        ],
        out_specs=pl.BlockSpec((1, 4 * Cout, Lp), lambda b: (b, 0, 0)),
        compiler_params=pltpu.CompilerParams(
            dimension_semantics=("parallel",),
            vmem_limit_bytes=32 * 1024 * 1024),
        cost_estimate=pl.CostEstimate(
            flops=2 * N * 4 * Cout * Cin * Lp,
            transcendentals=0,
            bytes_accessed=4 * (N * Cin * Lp + 4 * Cout * Cin
                                + N * 4 * Cout * Lp)),
    )(x_cm, lhs)


# ============================================================================
# Kernel 2: fused decoder Block = Conv3x3+ReLU -> Conv3x3+ReLU (VALID), with
# conv1's contraction split over the upsampled map and the skip (no concat),
# taps stacked along K in a VMEM im2col scratch (one MXU pass per conv), and
# the conv1 intermediate kept in VMEM.
# ============================================================================
def _make_block_kernel(c_up, c_sk, c1, c2, W, L, PADX):
    Lin = L + PADX

    def kernel(up_ref, sk_ref, w1_ref, b1_ref, w2_ref, b2_ref, o_ref,
               col1_ref, h_ref, col2_ref):
        # Scratch persists across grid steps; only [:, :L] of h is rewritten
        # each step.  Valid outputs never read the tail (max read lane is
        # H*W - 2W - 3 < L), so step-0 zeroing is pure hygiene.
        @pl.when(pl.program_id(0) == 0)
        def _():
            h_ref[:, L:] = jnp.zeros((c1, PADX), jnp.float32)

        up = up_ref[0]                          # (c_up, Lin)
        sk = sk_ref[0]                          # (c_sk, Lin)

        # ---- conv1: tap-stacked im2col, one K = 9*(c_up+c_sk) MXU pass ----
        for k in range(9):
            ky, kx = divmod(k, 3)
            d = ky * W + kx                     # lane shift of tap (ky, kx)
            col1_ref[k * c_up:(k + 1) * c_up, :] = up[:, d:d + L]
            base = 9 * c_up
            col1_ref[base + k * c_sk:base + (k + 1) * c_sk, :] = sk[:, d:d + L]
        acc1 = jnp.dot(w1_ref[...], col1_ref[...],
                       preferred_element_type=jnp.float32)
        h_ref[:, :L] = jnp.maximum(acc1 + b1_ref[...], 0.0)

        # ---- conv2 over the VMEM-resident intermediate (never hits HBM) ----
        hv = h_ref[...]                         # (c1, Lin)
        for k in range(9):
            ky, kx = divmod(k, 3)
            d = ky * W + kx
            col2_ref[k * c1:(k + 1) * c1, :] = hv[:, d:d + L]
        acc2 = jnp.dot(w2_ref[...], col2_ref[...],
                       preferred_element_type=jnp.float32)
        o_ref[0] = jnp.maximum(acc2 + b2_ref[...], 0.0)

    return kernel


def pallas_block(up_flat, sk_flat, w1_mat, b1_eff, w2_mat, b2, W, L, PADX):
    """up_flat/sk_flat: (N, c, L+PADX) zero-padded channel-major flat maps on
    the (H, W) grid.  Returns (N, c2, L); valid region = (H-4, W-4)."""
    N, c_up, Lin = up_flat.shape
    c_sk = sk_flat.shape[1]
    c1, c2 = w1_mat.shape[0], w2_mat.shape[0]
    assert Lin == L + PADX and PADX >= 2 * W + 2
    assert w1_mat.shape[1] == 9 * (c_up + c_sk) and w2_mat.shape[1] == 9 * c1
    assert c_up % 8 == 0 and c_sk % 8 == 0 and c1 % 8 == 0 and c2 % 8 == 0

    return pl.pallas_call(
        _make_block_kernel(c_up, c_sk, c1, c2, W, L, PADX),
        out_shape=jax.ShapeDtypeStruct((N, c2, L), jnp.float32),
        grid=(N,),
        in_specs=[
            pl.BlockSpec((1, c_up, Lin), lambda b: (b, 0, 0)),
            pl.BlockSpec((1, c_sk, Lin), lambda b: (b, 0, 0)),
            pl.BlockSpec((c1, 9 * (c_up + c_sk)), lambda b: (0, 0)),
            pl.BlockSpec((c1, 1), lambda b: (0, 0)),
            pl.BlockSpec((c2, 9 * c1), lambda b: (0, 0)),
            pl.BlockSpec((c2, 1), lambda b: (0, 0)),
        ],
        out_specs=pl.BlockSpec((1, c2, L), lambda b: (b, 0, 0)),
        scratch_shapes=[
            pltpu.VMEM((9 * (c_up + c_sk), L), jnp.float32),   # im2col conv1
            pltpu.VMEM((c1, L + PADX), jnp.float32),           # conv1 output
            pltpu.VMEM((9 * c1, L), jnp.float32),              # im2col conv2
        ],
        compiler_params=pltpu.CompilerParams(
            dimension_semantics=("parallel",),
            vmem_limit_bytes=32 * 1024 * 1024),
        cost_estimate=pl.CostEstimate(
            flops=2 * 9 * N * L * (c1 * (c_up + c_sk) + c2 * c1),
            transcendentals=0,
            bytes_accessed=4 * (N * (c_up + c_sk) * Lin + N * c2 * L
                                + 9 * c1 * (c_up + c_sk) + 9 * c2 * c1
                                + c1 + c2)),
    )(up_flat, sk_flat, w1_mat, b1_eff.reshape(c1, 1), w2_mat,
      b2.reshape(c2, 1))


# ============================================================================
# Wrapper-level glue
# ============================================================================
def center_crop_nchw(x, h, w):
    """torchvision CenterCrop semantics (static shapes, NCHW)."""
    H, W = x.shape[2], x.shape[3]
    top = int(round((H - h) / 2.0))
    left = int(round((W - w) / 2.0))
    return x[:, :, top:top + h, left:left + w]


def decoder_forward(x, enc_channels, params):
    """NCHW in / NCHW out (matches the PyTorch module).  Between stages the
    activation stays channel-major flattened; the Block's validity crop is
    folded into the next stage's 2x2 scatter."""
    N, C0, Hg, Wg = x.shape
    Hv, Wv = Hg, Wg                           # valid sub-rectangle of the grid
    Lp = _round_up(Hg * Wg, 128)
    x_cm = jnp.pad(x.reshape(N, C0, Hg * Wg),
                   ((0, 0), (0, 0), (0, Lp - Hg * Wg)))

    for p, enc in zip(params, enc_channels):
        Cout = p["up_w"].shape[1]
        c_sk = enc.shape[1]
        c1, c2 = p["c1_w"].shape[0], p["c2_w"].shape[0]
        assert p["c1_w"].shape[1] == Cout + c_sk

        # --- ConvTranspose2d(k=2,s=2): lane-dense GEMM, then a small XLA
        #     2x2 pixel scatter that also applies the previous Block's
        #     (H-4, W-4) validity crop.
        up4 = pallas_up_gemm(x_cm, p["up_w"])                  # (N,4Co,Lp)
        up4 = up4[:, :, :Hg * Wg].reshape(N, 2, 2, Cout, Hg, Wg)
        up4 = up4[:, :, :, :, :Hv, :Wv]                        # crop to valid
        Hn, Wn = 2 * Hv, 2 * Wv
        up = jnp.transpose(up4, (0, 3, 4, 1, 5, 2)).reshape(N, Cout, Hn * Wn)

        # --- skip connection: center-crop + flatten (stays channel-major).
        e = center_crop_nchw(enc, Hn, Wn).reshape(N, c_sk, Hn * Wn)

        # --- lane padding: L (>= Hn*Wn, 128-mult) + PADX (covers the max tap
        #     shift 2*Wn+2 so in-kernel lane shifts never read out of bounds).
        L = _round_up(Hn * Wn, 128)
        PADX = _round_up(2 * Wn + 2, 128)
        pad = L + PADX - Hn * Wn
        up_flat = jnp.pad(up, ((0, 0), (0, 0), (0, pad)))
        sk_flat = jnp.pad(e, ((0, 0), (0, 0), (0, pad)))

        # --- weights: per-tap slabs stacked along K, [up | skip] split so the
        #     concat never materializes; ConvTranspose bias folded into b1.
        w1_up, w1_sk = p["c1_w"][:, :Cout], p["c1_w"][:, Cout:]
        w1_mat = jnp.concatenate(
            [jnp.transpose(w1_up, (0, 2, 3, 1)).reshape(c1, 9 * Cout),
             jnp.transpose(w1_sk, (0, 2, 3, 1)).reshape(c1, 9 * c_sk)],
            axis=1)
        w2_mat = jnp.transpose(p["c2_w"], (0, 2, 3, 1)).reshape(c2, 9 * c1)
        b1_eff = p["c1_b"] + jnp.sum(
            w1_up * p["up_b"][None, :, None, None], axis=(1, 2, 3))

        x_cm = pallas_block(up_flat, sk_flat, w1_mat, b1_eff, w2_mat,
                            p["c2_b"], Wn, L, PADX)            # (N, c2, L)
        Hg, Wg, Hv, Wv = Hn, Wn, Hn - 4, Wn - 4

    out = x_cm[:, :, :Hg * Wg].reshape(N, x_cm.shape[1], Hg, Wg)
    return out[:, :, :Hv, :Wv]


# Pure-JAX reference on an independent code path (XLA conv), full f32 precision.
def ref_decoder_forward(x, enc_channels, params):
    hp = lax.Precision.HIGHEST
    for p, enc in zip(params, enc_channels):
        up = jnp.einsum('ncyx,codk->noydxk', x, p["up_w"], precision=hp)
        N, Co, Hs, _, Ws, _ = up.shape
        up = up.reshape(N, Co, 2 * Hs, 2 * Ws) + p["up_b"][None, :, None, None]
        e = center_crop_nchw(enc, up.shape[2], up.shape[3])
        x = jnp.concatenate([up, e], axis=1)
        for wc, bc in ((p["c1_w"], p["c1_b"]), (p["c2_w"], p["c2_b"])):
            x = lax.conv_general_dilated(
                x, wc, (1, 1), 'VALID',
                dimension_numbers=('NCHW', 'OIHW', 'NCHW'), precision=hp)
            x = jnp.maximum(x + bc[None, :, None, None], 0.0)
    return x


# ============================================================================
# Parameters (deterministic, PyTorch-layout weights)
# ============================================================================
def init_decoder_params(key, channels):
    params = []
    for idx in range(len(channels) - 1):
        cin, cout = channels[idx], channels[idx + 1]
        key, k1, k2, k3, k4, k5, k6 = jax.random.split(key, 7)
        s_up = 1.0 / math.sqrt(cin * 4)
        s1 = 1.0 / math.sqrt(cin * 9)
        s2 = 1.0 / math.sqrt(cout * 9)
        params.append(dict(
            up_w=jax.random.uniform(k1, (cin, cout, 2, 2), jnp.float32, -s_up, s_up),
            up_b=jax.random.uniform(k2, (cout,), jnp.float32, -s_up, s_up),
            c1_w=jax.random.uniform(k3, (cout, cin, 3, 3), jnp.float32, -s1, s1),
            c1_b=jax.random.uniform(k4, (cout,), jnp.float32, -s1, s1),
            c2_w=jax.random.uniform(k5, (cout, cout, 3, 3), jnp.float32, -s2, s2),
            c2_b=jax.random.uniform(k6, (cout,), jnp.float32, -s2, s2),
        ))
    return params


# ============================================================================
if __name__ == "__main__":
    channels = (32, 16, 8)   # channels[i] == 2*channels[i+1], classic UNet

    key = jax.random.PRNGKey(0)
    kx, ke0, ke1, kp = jax.random.split(key, 4)

    x = jax.random.normal(kx, (2, channels[0], 8, 8), jnp.float32)       # NCHW
    enc_channels = [
        jax.random.normal(ke0, (2, channels[1], 20, 20), jnp.float32),   # skip 0
        jax.random.normal(ke1, (2, channels[2], 28, 28), jnp.float32),   # skip 1
    ]
    params = init_decoder_params(kp, channels)

    fwd = jax.jit(lambda xv, encs: decoder_forward(xv, encs, params))
    out = jax.block_until_ready(fwd(x, enc_channels))

    ref = ref_decoder_forward(x, enc_channels, params)

    assert out.shape == (2, channels[-1], 20, 20), out.shape
    max_err = float(jnp.max(jnp.abs(out - ref)))
    assert bool(jnp.allclose(out, ref, atol=1e-3, rtol=1e-3)), max_err
    print("KERNEL_OK")
</pallas_src>

<mosaic_0001>
module attributes {stable_mosaic.version = 11 : i64} {
  func.func @_up_gemm_kernel(%arg0: i32, %arg1: memref<1x32x128xf32, #tpu.memory_space<vmem>>, %arg2: memref<64x32xf32, #tpu.memory_space<vmem>>, %arg3: memref<1x64x128xf32, #tpu.memory_space<vmem>>) attributes {dimension_semantics = [#tpu.dimension_semantics<parallel>], iteration_bounds = array<i64: 2>, scalar_prefetch = 0 : i64, scratch_operands = 0 : i64, tpu.core_type = #tpu.core_type<tc>, window_params = [{transform_indices = @transform_0, window_bounds = array<i64: 1, 32, 128>}, {pipeline_mode = #tpu.pipeline_mode<synchronous>, transform_indices = @transform_1, window_bounds = array<i64: 64, 32>}, {transform_indices = @transform_2, window_bounds = array<i64: 1, 64, 128>}]} {
    %c0 = arith.constant 0 : index
    %c0_0 = arith.constant 0 : index
    %0 = vector.load %arg2[%c0, %c0_0] : memref<64x32xf32, #tpu.memory_space<vmem>>, vector<64x32xf32>
    %c0_1 = arith.constant 0 : index
    %c0_2 = arith.constant 0 : index
    %c0_3 = arith.constant 0 : index
    %1 = vector.load %arg1[%c0_1, %c0_2, %c0_3] : memref<1x32x128xf32, #tpu.memory_space<vmem>>, vector<1x32x128xf32>
    %2 = vector.shape_cast %1 : vector<1x32x128xf32> to vector<32x128xf32>
    %cst = arith.constant dense<0.000000e+00> : vector<64x128xf32>
    %3 = tpu.matmul %0, %2, %cst {dimension_numbers = #tpu.dot_dimension_numbers<[1], [0], [0], [1], [0, 0, 1, 1], [], []>} : vector<64x32xf32>, vector<32x128xf32>, vector<64x128xf32> -> vector<64x128xf32>
    %c0_4 = arith.constant 0 : index
    %c0_5 = arith.constant 0 : index
    %c0_6 = arith.constant 0 : index
    %4 = vector.load %arg3[%c0_4, %c0_5, %c0_6] : memref<1x64x128xf32, #tpu.memory_space<vmem>>, vector<1x64x128xf32>
    %5 = vector.shape_cast %4 : vector<1x64x128xf32> to vector<64x128xf32>
    %6 = vector.shape_cast %3 : vector<64x128xf32> to vector<1x64x128xf32>
    tpu.vector_store %arg3[%c0_4, %c0_5, %c0_6], %6 {strides = array<i32>} : memref<1x64x128xf32, #tpu.memory_space<vmem>>, vector<1x64x128xf32>,
    return
  }
  func.func @transform_0(%arg0: i32) -> (i32, i32, i32) {
    %c0_i32 = arith.constant 0 : i32
    %c0_i32_0 = arith.constant 0 : i32
    %c0_i32_1 = arith.constant 0 : i32
    return %arg0, %c0_i32, %c0_i32_0 : i32, i32, i32
  }
  func.func @transform_1(%arg0: i32) -> (i32, i32) {
    %c0_i32 = arith.constant 0 : i32
    %c0_i32_0 = arith.constant 0 : i32
    %c0_i32_1 = arith.constant 0 : i32
    return %c0_i32, %c0_i32_0 : i32, i32
  }
  func.func @transform_2(%arg0: i32) -> (i32, i32, i32) {
    %c0_i32 = arith.constant 0 : i32
    %c0_i32_0 = arith.constant 0 : i32
    %c0_i32_1 = arith.constant 0 : i32
    return %arg0, %c0_i32, %c0_i32_0 : i32, i32, i32
  }
}

module attributes {stable_mosaic.version = 11 : i64} {
  func.func @kernel(%arg0: i32, %arg1: memref<1x16x384xf32, #tpu.memory_space<vmem>>, %arg2: memref<1x16x384xf32, #tpu.memory_space<vmem>>, %arg3: memref<16x288xf32, #tpu.memory_space<vmem>>, %arg4: memref<16x1xf32, #tpu.memory_space<vmem>>, %arg5: memref<16x144xf32, #tpu.memory_space<vmem>>, %arg6: memref<16x1xf32, #tpu.memory_space<vmem>>, %arg7: memref<1x16x256xf32, #tpu.memory_space<vmem>>, %arg8: memref<288x256xf32, #tpu.memory_space<vmem>>, %arg9: memref<16x384xf32, #tpu.memory_space<vmem>>, %arg10: memref<144x256xf32, #tpu.memory_space<vmem>>) attributes {dimension_semantics = [#tpu.dimension_semantics<parallel>], iteration_bounds = array<i64: 2>, scalar_prefetch = 0 : i64, scratch_operands = 3 : i64, tpu.core_type = #tpu.core_type<tc>, window_params = [{transform_indices = @transform_0, window_bounds = array<i64: 1, 16, 384>}, {transform_indices = @transform_1, window_bounds = array<i64: 1, 16, 384>}, {pipeline_mode = #tpu.pipeline_mode<synchronous>, transform_indices = @transform_2, window_bounds = array<i64: 16, 288>}, {pipeline_mode = #tpu.pipeline_mode<synchronous>, transform_indices = @transform_3, window_bounds = array<i64: 16, 1>}, {pipeline_mode = #tpu.pipeline_mode<synchronous>, transform_indices = @transform_4, window_bounds = array<i64: 16, 144>}, {pipeline_mode = #tpu.pipeline_mode<synchronous>, transform_indices = @transform_5, window_bounds = array<i64: 16, 1>}, {transform_indices = @transform_6, window_bounds = array<i64: 1, 16, 256>}]} {
    %c0_i32 = arith.constant 0 : i32
    %0 = arith.cmpi eq, %arg0, %c0_i32 : i32
    %1 = arith.extui %0 : i1 to i32
    %c0_i32_0 = arith.constant 0 : i32
    %2 = arith.cmpi ne, %1, %c0_i32_0 : i32
    scf.if %2 {
      %cst_65 = arith.constant 0.000000e+00 : f32
      %82 = vector.broadcast %cst_65 : f32 to vector<16x128xf32>
      %c0_66 = arith.constant 0 : index
      %c256_67 = arith.constant 256 : index
      %83 = vector.load %arg9[%c0_66, %c256_67] : memref<16x384xf32, #tpu.memory_space<vmem>>, vector<16x128xf32>
      tpu.vector_store %arg9[%c0_66, %c256_67], %82 {strides = array<i32>} : memref<16x384xf32, #tpu.memory_space<vmem>>, vector<16x128xf32>,
    } else {
    }
    %c0 = arith.constant 0 : index
    %c0_1 = arith.constant 0 : index
    %c0_2 = arith.constant 0 : index
    %3 = vector.load %arg1[%c0, %c0_1, %c0_2] : memref<1x16x384xf32, #tpu.memory_space<vmem>>, vector<1x16x384xf32>
    %4 = vector.shape_cast %3 : vector<1x16x384xf32> to vector<16x384xf32>
    %c0_3 = arith.constant 0 : index
    %c0_4 = arith.constant 0 : index
    %c0_5 = arith.constant 0 : index
    %5 = vector.load %arg2[%c0_3, %c0_4, %c0_5] : memref<1x16x384xf32, #tpu.memory_space<vmem>>, vector<1x16x384xf32>
    %6 = vector.shape_cast %5 : vector<1x16x384xf32> to vector<16x384xf32>
    %7 = vector.extract_strided_slice %4 {offsets = [0, 0], sizes = [16, 256], strides = [1, 1]} : vector<16x384xf32> to vector<16x256xf32>
    %c0_6 = arith.constant 0 : index
    %c0_7 = arith.constant 0 : index
    %8 = vector.load %arg8[%c0_6, %c0_7] : memref<288x256xf32, #tpu.memory_space<vmem>>, vector<16x256xf32>
    tpu.vector_store %arg8[%c0_6, %c0_7], %7 {strides = array<i32>} : memref<288x256xf32, #tpu.memory_space<vmem>>, vector<16x256xf32>,
    %9 = vector.extract_strided_slice %6 {offsets = [0, 0], sizes = [16, 256], strides = [1, 1]} : vector<16x384xf32> to vector<16x256xf32>
    %c144 = arith.constant 144 : index
    %c0_8 = arith.constant 0 : index
    %10 = vector.load %arg8[%c144, %c0_8] : memref<288x256xf32, #tpu.memory_space<vmem>>, vector<16x256xf32>
    tpu.vector_store %arg8[%c144, %c0_8], %9 {strides = array<i32>} : memref<288x256xf32, #tpu.memory_space<vmem>>, vector<16x256xf32>,
    %11 = vector.extract_strided_slice %4 {offsets = [0, 1], sizes = [16, 256], strides = [1, 1]} : vector<16x384xf32> to vector<16x256xf32>
    %c16 = arith.constant 16 : index
    %c0_9 = arith.constant 0 : index
    %12 = vector.load %arg8[%c16, %c0_9] : memref<288x256xf32, #tpu.memory_space<vmem>>, vector<16x256xf32>
    tpu.vector_store %arg8[%c16, %c0_9], %11 {strides = array<i32>} : memref<288x256xf32, #tpu.memory_space<vmem>>, vector<16x256xf32>,
    %13 = vector.extract_strided_slice %6 {offsets = [0, 1], sizes = [16, 256], strides = [1, 1]} : vector<16x384xf32> to vector<16x256xf32>
    %c160 = arith.constant 160 : index
    %c0_10 = arith.constant 0 : index
    %14 = vector.load %arg8[%c160, %c0_10] : memref<288x256xf32, #tpu.memory_space<vmem>>, vector<16x256xf32>
    tpu.vector_store %arg8[%c160, %c0_10], %13 {strides = array<i32>} : memref<288x256xf32, #tpu.memory_space<vmem>>, vector<16x256xf32>,
    %15 = vector.extract_strided_slice %4 {offsets = [0, 2], sizes = [16, 256], strides = [1, 1]} : vector<16x384xf32> to vector<16x256xf32>
    %c32 = arith.constant 32 : index
    %c0_11 = arith.constant 0 : index
    %16 = vector.load %arg8[%c32, %c0_11] : memref<288x256xf32, #tpu.memory_space<vmem>>, vector<16x256xf32>
    tpu.vector_store %arg8[%c32, %c0_11], %15 {strides = array<i32>} : memref<288x256xf32, #tpu.memory_space<vmem>>, vector<16x256xf32>,
    %17 = vector.extract_strided_slice %6 {offsets = [0, 2], sizes = [16, 256], strides = [1, 1]} : vector<16x384xf32> to vector<16x256xf32>
    %c176 = arith.constant 176 : index
    %c0_12 = arith.constant 0 : index
    %18 = vector.load %arg8[%c176, %c0_12] : memref<288x256xf32, #tpu.memory_space<vmem>>, vector<16x256xf32>
    tpu.vector_store %arg8[%c176, %c0_12], %17 {strides = array<i32>} : memref<288x256xf32, #tpu.memory_space<vmem>>, vector<16x256xf32>,
    %19 = vector.extract_strided_slice %4 {offsets = [0, 16], sizes = [16, 256], strides = [1, 1]} : vector<16x384xf32> to vector<16x256xf32>
    %c48 = arith.constant 48 : index
    %c0_13 = arith.constant 0 : index
    %20 = vector.load %arg8[%c48, %c0_13] : memref<288x256xf32, #tpu.memory_space<vmem>>, vector<16x256xf32>
    tpu.vector_store %arg8[%c48, %c0_13], %19 {strides = array<i32>} : memref<288x256xf32, #tpu.memory_space<vmem>>, vector<16x256xf32>,
    %21 = vector.extract_strided_slice %6 {offsets = [0, 16], sizes = [16, 256], strides = [1, 1]} : vector<16x384xf32> to vector<16x256xf32>
    %c192 = arith.constant 192 : index
    %c0_14 = arith.constant 0 : index
    %22 = vector.load %arg8[%c192, %c0_14] : memref<288x256xf32, #tpu.memory_space<vmem>>, vector<16x256xf32>
    tpu.vector_store %arg8[%c192, %c0_14], %21 {strides = array<i32>} : memref<288x256xf32, #tpu.memory_space<vmem>>, vector<16x256xf32>,
    %23 = vector.extract_strided_slice %4 {offsets = [0, 17], sizes = [16, 256], strides = [1, 1]} : vector<16x384xf32> to vector<16x256xf32>
    %c64 = arith.constant 64 : index
    %c0_15 = arith.constant 0 : index
    %24 = vector.load %arg8[%c64, %c0_15] : memref<288x256xf32, #tpu.memory_space<vmem>>, vector<16x256xf32>
    tpu.vector_store %arg8[%c64, %c0_15], %23 {strides = array<i32>} : memref<288x256xf32, #tpu.memory_space<vmem>>, vector<16x256xf32>,
    %25 = vector.extract_strided_slice %6 {offsets = [0, 17], sizes = [16, 256], strides = [1, 1]} : vector<16x384xf32> to vector<16x256xf32>
    %c208 = arith.constant 208 : index
    %c0_16 = arith.constant 0 : index
    %26 = vector.load %arg8[%c208, %c0_16] : memref<288x256xf32, #tpu.memory_space<vmem>>, vector<16x256xf32>
    tpu.vector_store %arg8[%c208, %c0_16], %25 {strides = array<i32>} : memref<288x256xf32, #tpu.memory_space<vmem>>, vector<16x256xf32>,
    %27 = vector.extract_strided_slice %4 {offsets = [0, 18], sizes = [16, 256], strides = [1, 1]} : vector<16x384xf32> to vector<16x256xf32>
    %c80 = arith.constant 80 : index
    %c0_17 = arith.constant 0 : index
    %28 = vector.load %arg8[%c80, %c0_17] : memref<288x256xf32, #tpu.memory_space<vmem>>, vector<16x256xf32>
    tpu.vector_store %arg8[%c80, %c0_17], %27 {strides = array<i32>} : memref<288x256xf32, #tpu.memory_space<vmem>>, vector<16x256xf32>,
    %29 = vector.extract_strided_slice %6 {offsets = [0, 18], sizes = [16, 256], strides = [1, 1]} : vector<16x384xf32> to vector<16x256xf32>
    %c224 = arith.constant 224 : index
    %c0_18 = arith.constant 0 : index
    %30 = vector.load %arg8[%c224, %c0_18] : memref<288x256xf32, #tpu.memory_space<vmem>>, vector<16x256xf32>
    tpu.vector_store %arg8[%c224, %c0_18], %29 {strides = array<i32>} : memref<288x256xf32, #tpu.memory_space<vmem>>, vector<16x256xf32>,
    %31 = vector.extract_strided_slice %4 {offsets = [0, 32], sizes = [16, 256], strides = [1, 1]} : vector<16x384xf32> to vector<16x256xf32>
    %c96 = arith.constant 96 : index
    %c0_19 = arith.constant 0 : index
    %32 = vector.load %arg8[%c96, %c0_19] : memref<288x256xf32, #tpu.memory_space<vmem>>, vector<16x256xf32>
    tpu.vector_store %arg8[%c96, %c0_19], %31 {strides = array<i32>} : memref<288x256xf32, #tpu.memory_space<vmem>>, vector<16x256xf32>,
    %33 = vector.extract_strided_slice %6 {offsets = [0, 32], sizes = [16, 256], strides = [1, 1]} : vector<16x384xf32> to vector<16x256xf32>
    %c240 = arith.constant 240 : index
    %c0_20 = arith.constant 0 : index
    %34 = vector.load %arg8[%c240, %c0_20] : memref<288x256xf32, #tpu.memory_space<vmem>>, vector<16x256xf32>
    tpu.vector_store %arg8[%c240, %c0_20], %33 {strides = array<i32>} : memref<288x256xf32, #tpu.memory_space<vmem>>, vector<16x256xf32>,
    %35 = vector.extract_strided_slice %4 {offsets = [0, 33], sizes = [16, 256], strides = [1, 1]} : vector<16x384xf32> to vector<16x256xf32>
    %c112 = arith.constant 112 : index
    %c0_21 = arith.constant 0 : index
    %36 = vector.load %arg8[%c112, %c0_21] : memref<288x256xf32, #tpu.memory_space<vmem>>, vector<16x256xf32>
    tpu.vector_store %arg8[%c112, %c0_21], %35 {strides = array<i32>} : memref<288x256xf32, #tpu.memory_space<vmem>>, vector<16x256xf32>,
    %37 = vector.extract_strided_slice %6 {offsets = [0, 33], sizes = [16, 256], strides = [1, 1]} : vector<16x384xf32> to vector<16x256xf32>
    %c256 = arith.constant 256 : index
    %c0_22 = arith.constant 0 : index
    %38 = vector.load %arg8[%c256, %c0_22] : memref<288x256xf32, #tpu.memory_space<vmem>>, vector<16x256xf32>
    tpu.vector_store %arg8[%c256, %c0_22], %37 {strides = array<i32>} : memref<288x256xf32, #tpu.memory_space<vmem>>, vector<16x256xf32>,
    %39 = vector.extract_strided_slice %4 {offsets = [0, 34], sizes = [16, 256], strides = [1, 1]} : vector<16x384xf32> to vector<16x256xf32>
    %c128 = arith.constant 128 : index
    %c0_23 = arith.constant 0 : index
    %40 = vector.load %arg8[%c128, %c0_23] : memref<288x256xf32, #tpu.memory_space<vmem>>, vector<16x256xf32>
    tpu.vector_store %arg8[%c128, %c0_23], %39 {strides = array<i32>} : memref<288x256xf32, #tpu.memory_space<vmem>>, vector<16x256xf32>,
    %41 = vector.extract_strided_slice %6 {offsets = [0, 34], sizes = [16, 256], strides = [1, 1]} : vector<16x384xf32> to vector<16x256xf32>
    %c272 = arith.constant 272 : index
    %c0_24 = arith.constant 0 : index
    %42 = vector.load %arg8[%c272, %c0_24] : memref<288x256xf32, #tpu.memory_space<vmem>>, vector<16x256xf32>
    tpu.vector_store %arg8[%c272, %c0_24], %41 {strides = array<i32>} : memref<288x256xf32, #tpu.memory_space<vmem>>, vector<16x256xf32>,
    %c0_25 = arith.constant 0 : index
    %c0_26 = arith.constant 0 : index
    %43 = vector.load %arg3[%c0_25, %c0_26] : memref<16x288xf32, #tpu.memory_space<vmem>>, vector<16x288xf32>
    %c0_27 = arith.constant 0 : index
    %c0_28 = arith.constant 0 : index
    %44 = vector.load %arg8[%c0_27, %c0_28] : memref<288x256xf32, #tpu.memory_space<vmem>>, vector<288x256xf32>
    %cst = arith.constant dense<0.000000e+00> : vector<16x256xf32>
    %45 = tpu.matmul %43, %44, %cst {dimension_numbers = #tpu.dot_dimension_numbers<[1], [0], [0], [1], [0, 0, 1, 1], [], []>} : vector<16x288xf32>, vector<288x256xf32>, vector<16x256xf32> -> vector<16x256xf32>
    %c0_29 = arith.constant 0 : index
    %c0_30 = arith.constant 0 : index
    %46 = vector.load %arg4[%c0_29, %c0_30] : memref<16x1xf32, #tpu.memory_space<vmem>>, vector<16x1xf32>
    %47 = vector.broadcast %46 : vector<16x1xf32> to vector<16x256xf32>
    %48 = arith.addf %45, %47 : vector<16x256xf32>
    %cst_31 = arith.constant 0.000000e+00 : f32
    %49 = vector.broadcast %cst_31 : f32 to vector<16x256xf32>
    %50 = arith.maximumf %48, %49 : vector<16x256xf32>
    %c0_32 = arith.constant 0 : index
    %c0_33 = arith.constant 0 : index
    %51 = vector.load %arg9[%c0_32, %c0_33] : memref<16x384xf32, #tpu.memory_space<vmem>>, vector<16x256xf32>
    tpu.vector_store %arg9[%c0_32, %c0_33], %50 {strides = array<i32>} : memref<16x384xf32, #tpu.memory_space<vmem>>, vector<16x256xf32>,
    %c0_34 = arith.constant 0 : index
    %c0_35 = arith.constant 0 : index
    %52 = vector.load %arg9[%c0_34, %c0_35] : memref<16x384xf32, #tpu.memory_space<vmem>>, vector<16x384xf32>
    %53 = vector.extract_strided_slice %52 {offsets = [0, 0], sizes = [16, 256], strides = [1, 1]} : vector<16x384xf32> to vector<16x256xf32>
    %c0_36 = arith.constant 0 : index
    %c0_37 = arith.constant 0 : index
    %54 = vector.load %arg10[%c0_36, %c0_37] : memref<144x256xf32, #tpu.memory_space<vmem>>, vector<16x256xf32>
    tpu.vector_store %arg10[%c0_36, %c0_37], %53 {strides = array<i32>} : memref<144x256xf32, #tpu.memory_space<vmem>>, vector<16x256xf32>,
    %55 = vector.extract_strided_slice %52 {offsets = [0, 1], sizes = [16, 256], strides = [1, 1]} : vector<16x384xf32> to vector<16x256xf32>
    %c16_38 = arith.constant 16 : index
    %c0_39 = arith.constant 0 : index
    %56 = vector.load %arg10[%c16_38, %c0_39] : memref<144x256xf32, #tpu.memory_space<vmem>>, vector<16x256xf32>
    tpu.vector_store %arg10[%c16_38, %c0_39], %55 {strides = array<i32>} : memref<144x256xf32, #tpu.memory_space<vmem>>, vector<16x256xf32>,
    %57 = vector.extract_strided_slice %52 {offsets = [0, 2], sizes = [16, 256], strides = [1, 1]} : vector<16x384xf32> to vector<16x256xf32>
    %c32_40 = arith.constant 32 : index
    %c0_41 = arith.constant 0 : index
    %58 = vector.load %arg10[%c32_40, %c0_41] : memref<144x256xf32, #tpu.memory_space<vmem>>, vector<16x256xf32>
    tpu.vector_store %arg10[%c32_40, %c0_41], %57 {strides = array<i32>} : memref<144x256xf32, #tpu.memory_space<vmem>>, vector<16x256xf32>,
    %59 = vector.extract_strided_slice %52 {offsets = [0, 16], sizes = [16, 256], strides = [1, 1]} : vector<16x384xf32> to vector<16x256xf32>
    %c48_42 = arith.constant 48 : index
    %c0_43 = arith.constant 0 : index
    %60 = vector.load %arg10[%c48_42, %c0_43] : memref<144x256xf32, #tpu.memory_space<vmem>>, vector<16x256xf32>
    tpu.vector_store %arg10[%c48_42, %c0_43], %59 {strides = array<i32>} : memref<144x256xf32, #tpu.memory_space<vmem>>, vector<16x256xf32>,
    %61 = vector.extract_strided_slice %52 {offsets = [0, 17], sizes = [16, 256], strides = [1, 1]} : vector<16x384xf32> to vector<16x256xf32>
    %c64_44 = arith.constant 64 : index
    %c0_45 = arith.constant 0 : index
    %62 = vector.load %arg10[%c64_44, %c0_45] : memref<144x256xf32, #tpu.memory_space<vmem>>, vector<16x256xf32>
    tpu.vector_store %arg10[%c64_44, %c0_45], %61 {strides = array<i32>} : memref<144x256xf32, #tpu.memory_space<vmem>>, vector<16x256xf32>,
    %63 = vector.extract_strided_slice %52 {offsets = [0, 18], sizes = [16, 256], strides = [1, 1]} : vector<16x384xf32> to vector<16x256xf32>
    %c80_46 = arith.constant 80 : index
    %c0_47 = arith.constant 0 : index
    %64 = vector.load %arg10[%c80_46, %c0_47] : memref<144x256xf32, #tpu.memory_space<vmem>>, vector<16x256xf32>
    tpu.vector_store %arg10[%c80_46, %c0_47], %63 {strides = array<i32>} : memref<144x256xf32, #tpu.memory_space<vmem>>, vector<16x256xf32>,
    %65 = vector.extract_strided_slice %52 {offsets = [0, 32], sizes = [16, 256], strides = [1, 1]} : vector<16x384xf32> to vector<16x256xf32>
    %c96_48 = arith.constant 96 : index
    %c0_49 = arith.constant 0 : index
    %66 = vector.load %arg10[%c96_48, %c0_49] : memref<144x256xf32, #tpu.memory_space<vmem>>, vector<16x256xf32>
    tpu.vector_store %arg10[%c96_48, %c0_49], %65 {strides = array<i32>} : memref<144x256xf32, #tpu.memory_space<vmem>>, vector<16x256xf32>,
    %67 = vector.extract_strided_slice %52 {offsets = [0, 33], sizes = [16, 256], strides = [1, 1]} : vector<16x384xf32> to vector<16x256xf32>
    %c112_50 = arith.constant 112 : index
    %c0_51 = arith.constant 0 : index
    %68 = vector.load %arg10[%c112_50, %c0_51] : memref<144x256xf32, #tpu.memory_space<vmem>>, vector<16x256xf32>
    tpu.vector_store %arg10[%c112_50, %c0_51], %67 {strides = array<i32>} : memref<144x256xf32, #tpu.memory_space<vmem>>, vector<16x256xf32>,
    %69 = vector.extract_strided_slice %52 {offsets = [0, 34], sizes = [16, 256], strides = [1, 1]} : vector<16x384xf32> to vector<16x256xf32>
    %c128_52 = arith.constant 128 : index
    %c0_53 = arith.constant 0 : index
    %70 = vector.load %arg10[%c128_52, %c0_53] : memref<144x256xf32, #tpu.memory_space<vmem>>, vector<16x256xf32>
    tpu.vector_store %arg10[%c128_52, %c0_53], %69 {strides = array<i32>} : memref<144x256xf32, #tpu.memory_space<vmem>>, vector<16x256xf32>,
    %c0_54 = arith.constant 0 : index
    %c0_55 = arith.constant 0 : index
    %71 = vector.load %arg5[%c0_54, %c0_55] : memref<16x144xf32, #tpu.memory_space<vmem>>, vector<16x144xf32>
    %c0_56 = arith.constant 0 : index
    %c0_57 = arith.constant 0 : index
    %72 = vector.load %arg10[%c0_56, %c0_57] : memref<144x256xf32, #tpu.memory_space<vmem>>, vector<144x256xf32>
    %cst_58 = arith.constant dense<0.000000e+00> : vector<16x256xf32>
    %73 = tpu.matmul %71, %72, %cst_58 {dimension_numbers = #tpu.dot_dimension_numbers<[1], [0], [0], [1], [0, 0, 1, 1], [], []>} : vector<16x144xf32>, vector<144x256xf32>, vector<16x256xf32> -> vector<16x256xf32>
    %c0_59 = arith.constant 0 : index
    %c0_60 = arith.constant 0 : index
    %74 = vector.load %arg6[%c0_59, %c0_60] : memref<16x1xf32, #tpu.memory_space<vmem>>, vector<16x1xf32>
    %75 = vector.broadcast %74 : vector<16x1xf32> to vector<16x256xf32>
    %76 = arith.addf %73, %75 : vector<16x256xf32>
    %cst_61 = arith.constant 0.000000e+00 : f32
    %77 = vector.broadcast %cst_61 : f32 to vector<16x256xf32>
    %78 = arith.maximumf %76, %77 : vector<16x256xf32>
    %c0_62 = arith.constant 0 : index
    %c0_63 = arith.constant 0 : index
    %c0_64 = arith.constant 0 : index
    %79 = vector.load %arg7[%c0_62, %c0_63, %c0_64] : memref<1x16x256xf32, #tpu.memory_space<vmem>>, vector<1x16x256xf32>
    %80 = vector.shape_cast %79 : vector<1x16x256xf32> to vector<16x256xf32>
    %81 = vector.shape_cast %78 : vector<16x256xf32> to vector<1x16x256xf32>
    tpu.vector_store %arg7[%c0_62, %c0_63, %c0_64], %81 {strides = array<i32>} : memref<1x16x256xf32, #tpu.memory_space<vmem>>, vector<1x16x256xf32>,
    return
  }
  func.func @transform_0(%arg0: i32) -> (i32, i32, i32) {
    %c0_i32 = arith.constant 0 : i32
    %c0_i32_0 = arith.constant 0 : i32
    %c0_i32_1 = arith.constant 0 : i32
    return %arg0, %c0_i32, %c0_i32_0 : i32, i32, i32
  }
  func.func @transform_1(%arg0: i32) -> (i32, i32, i32) {
    %c0_i32 = arith.constant 0 : i32
    %c0_i32_0 = arith.constant 0 : i32
    %c0_i32_1 = arith.constant 0 : i32
    return %arg0, %c0_i32, %c0_i32_0 : i32, i32, i32
  }
  func.func @transform_2(%arg0: i32) -> (i32, i32) {
    %c0_i32 = arith.constant 0 : i32
    %c0_i32_0 = arith.constant 0 : i32
    %c0_i32_1 = arith.constant 0 : i32
    return %c0_i32, %c0_i32_0 : i32, i32
  }
  func.func @transform_3(%arg0: i32) -> (i32, i32) {
    %c0_i32 = arith.constant 0 : i32
    %c0_i32_0 = arith.constant 0 : i32
    %c0_i32_1 = arith.constant 0 : i32
    return %c0_i32, %c0_i32_0 : i32, i32
  }
  func.func @transform_4(%arg0: i32) -> (i32, i32) {
    %c0_i32 = arith.constant 0 : i32
    %c0_i32_0 = arith.constant 0 : i32
    %c0_i32_1 = arith.constant 0 : i32
    return %c0_i32, %c0_i32_0 : i32, i32
  }
  func.func @transform_5(%arg0: i32) -> (i32, i32) {
    %c0_i32 = arith.constant 0 : i32
    %c0_i32_0 = arith.constant 0 : i32
    %c0_i32_1 = arith.constant 0 : i32
    return %c0_i32, %c0_i32_0 : i32, i32
  }
  func.func @transform_6(%arg0: i32) -> (i32, i32, i32) {
    %c0_i32 = arith.constant 0 : i32
    %c0_i32_0 = arith.constant 0 : i32
    %c0_i32_1 = arith.constant 0 : i32
    return %arg0, %c0_i32, %c0_i32_0 : i32, i32, i32
  }
}

module attributes {stable_mosaic.version = 11 : i64} {
  func.func @_up_gemm_kernel(%arg0: i32, %arg1: memref<1x16x256xf32, #tpu.memory_space<vmem>>, %arg2: memref<32x16xf32, #tpu.memory_space<vmem>>, %arg3: memref<1x32x256xf32, #tpu.memory_space<vmem>>) attributes {dimension_semantics = [#tpu.dimension_semantics<parallel>], iteration_bounds = array<i64: 2>, scalar_prefetch = 0 : i64, scratch_operands = 0 : i64, tpu.core_type = #tpu.core_type<tc>, window_params = [{transform_indices = @transform_0, window_bounds = array<i64: 1, 16, 256>}, {pipeline_mode = #tpu.pipeline_mode<synchronous>, transform_indices = @transform_1, window_bounds = array<i64: 32, 16>}, {transform_indices = @transform_2, window_bounds = array<i64: 1, 32, 256>}]} {
    %c0 = arith.constant 0 : index
    %c0_0 = arith.constant 0 : index
    %0 = vector.load %arg2[%c0, %c0_0] : memref<32x16xf32, #tpu.memory_space<vmem>>, vector<32x16xf32>
    %c0_1 = arith.constant 0 : index
    %c0_2 = arith.constant 0 : index
    %c0_3 = arith.constant 0 : index
    %1 = vector.load %arg1[%c0_1, %c0_2, %c0_3] : memref<1x16x256xf32, #tpu.memory_space<vmem>>, vector<1x16x256xf32>
    %2 = vector.shape_cast %1 : vector<1x16x256xf32> to vector<16x256xf32>
    %cst = arith.constant dense<0.000000e+00> : vector<32x256xf32>
    %3 = tpu.matmul %0, %2, %cst {dimension_numbers = #tpu.dot_dimension_numbers<[1], [0], [0], [1], [0, 0, 1, 1], [], []>} : vector<32x16xf32>, vector<16x256xf32>, vector<32x256xf32> -> vector<32x256xf32>
    %c0_4 = arith.constant 0 : index
    %c0_5 = arith.constant 0 : index
    %c0_6 = arith.constant 0 : index
    %4 = vector.load %arg3[%c0_4, %c0_5, %c0_6] : memref<1x32x256xf32, #tpu.memory_space<vmem>>, vector<1x32x256xf32>
    %5 = vector.shape_cast %4 : vector<1x32x256xf32> to vector<32x256xf32>
    %6 = vector.shape_cast %3 : vector<32x256xf32> to vector<1x32x256xf32>
    tpu.vector_store %arg3[%c0_4, %c0_5, %c0_6], %6 {strides = array<i32>} : memref<1x32x256xf32, #tpu.memory_space<vmem>>, vector<1x32x256xf32>,
    return
  }
  func.func @transform_0(%arg0: i32) -> (i32, i32, i32) {
    %c0_i32 = arith.constant 0 : i32
    %c0_i32_0 = arith.constant 0 : i32
    %c0_i32_1 = arith.constant 0 : i32
    return %arg0, %c0_i32, %c0_i32_0 : i32, i32, i32
  }
  func.func @transform_1(%arg0: i32) -> (i32, i32) {
    %c0_i32 = arith.constant 0 : i32
    %c0_i32_0 = arith.constant 0 : i32
    %c0_i32_1 = arith.constant 0 : i32
    return %c0_i32, %c0_i32_0 : i32, i32
  }
  func.func @transform_2(%arg0: i32) -> (i32, i32, i32) {
    %c0_i32 = arith.constant 0 : i32
    %c0_i32_0 = arith.constant 0 : i32
    %c0_i32_1 = arith.constant 0 : i32
    return %arg0, %c0_i32, %c0_i32_0 : i32, i32, i32
  }
}

module attributes {stable_mosaic.version = 11 : i64} {
  func.func @kernel(%arg0: i32, %arg1: memref<1x8x768xf32, #tpu.memory_space<vmem>>, %arg2: memref<1x8x768xf32, #tpu.memory_space<vmem>>, %arg3: memref<8x144xf32, #tpu.memory_space<vmem>>, %arg4: memref<8x1xf32, #tpu.memory_space<vmem>>, %arg5: memref<8x72xf32, #tpu.memory_space<vmem>>, %arg6: memref<8x1xf32, #tpu.memory_space<vmem>>, %arg7: memref<1x8x640xf32, #tpu.memory_space<vmem>>, %arg8: memref<144x640xf32, #tpu.memory_space<vmem>>, %arg9: memref<8x768xf32, #tpu.memory_space<vmem>>, %arg10: memref<72x640xf32, #tpu.memory_space<vmem>>) attributes {dimension_semantics = [#tpu.dimension_semantics<parallel>], iteration_bounds = array<i64: 2>, scalar_prefetch = 0 : i64, scratch_operands = 3 : i64, tpu.core_type = #tpu.core_type<tc>, window_params = [{transform_indices = @transform_0, window_bounds = array<i64: 1, 8, 768>}, {transform_indices = @transform_1, window_bounds = array<i64: 1, 8, 768>}, {pipeline_mode = #tpu.pipeline_mode<synchronous>, transform_indices = @transform_2, window_bounds = array<i64: 8, 144>}, {pipeline_mode = #tpu.pipeline_mode<synchronous>, transform_indices = @transform_3, window_bounds = array<i64: 8, 1>}, {pipeline_mode = #tpu.pipeline_mode<synchronous>, transform_indices = @transform_4, window_bounds = array<i64: 8, 72>}, {pipeline_mode = #tpu.pipeline_mode<synchronous>, transform_indices = @transform_5, window_bounds = array<i64: 8, 1>}, {transform_indices = @transform_6, window_bounds = array<i64: 1, 8, 640>}]} {
    %c0_i32 = arith.constant 0 : i32
    %0 = arith.cmpi eq, %arg0, %c0_i32 : i32
    %1 = arith.extui %0 : i1 to i32
    %c0_i32_0 = arith.constant 0 : i32
    %2 = arith.cmpi ne, %1, %c0_i32_0 : i32
    scf.if %2 {
      %cst_65 = arith.constant 0.000000e+00 : f32
      %82 = vector.broadcast %cst_65 : f32 to vector<8x128xf32>
      %c0_66 = arith.constant 0 : index
      %c640 = arith.constant 640 : index
      %83 = vector.load %arg9[%c0_66, %c640] : memref<8x768xf32, #tpu.memory_space<vmem>>, vector<8x128xf32>
      tpu.vector_store %arg9[%c0_66, %c640], %82 {strides = array<i32>} : memref<8x768xf32, #tpu.memory_space<vmem>>, vector<8x128xf32>,
    } else {
    }
    %c0 = arith.constant 0 : index
    %c0_1 = arith.constant 0 : index
    %c0_2 = arith.constant 0 : index
    %3 = vector.load %arg1[%c0, %c0_1, %c0_2] : memref<1x8x768xf32, #tpu.memory_space<vmem>>, vector<1x8x768xf32>
    %4 = vector.shape_cast %3 : vector<1x8x768xf32> to vector<8x768xf32>
    %c0_3 = arith.constant 0 : index
    %c0_4 = arith.constant 0 : index
    %c0_5 = arith.constant 0 : index
    %5 = vector.load %arg2[%c0_3, %c0_4, %c0_5] : memref<1x8x768xf32, #tpu.memory_space<vmem>>, vector<1x8x768xf32>
    %6 = vector.shape_cast %5 : vector<1x8x768xf32> to vector<8x768xf32>
    %7 = vector.extract_strided_slice %4 {offsets = [0, 0], sizes = [8, 640], strides = [1, 1]} : vector<8x768xf32> to vector<8x640xf32>
    %c0_6 = arith.constant 0 : index
    %c0_7 = arith.constant 0 : index
    %8 = vector.load %arg8[%c0_6, %c0_7] : memref<144x640xf32, #tpu.memory_space<vmem>>, vector<8x640xf32>
    tpu.vector_store %arg8[%c0_6, %c0_7], %7 {strides = array<i32>} : memref<144x640xf32, #tpu.memory_space<vmem>>, vector<8x640xf32>,
    %9 = vector.extract_strided_slice %6 {offsets = [0, 0], sizes = [8, 640], strides = [1, 1]} : vector<8x768xf32> to vector<8x640xf32>
    %c72 = arith.constant 72 : index
    %c0_8 = arith.constant 0 : index
    %10 = vector.load %arg8[%c72, %c0_8] : memref<144x640xf32, #tpu.memory_space<vmem>>, vector<8x640xf32>
    tpu.vector_store %arg8[%c72, %c0_8], %9 {strides = array<i32>} : memref<144x640xf32, #tpu.memory_space<vmem>>, vector<8x640xf32>,
    %11 = vector.extract_strided_slice %4 {offsets = [0, 1], sizes = [8, 640], strides = [1, 1]} : vector<8x768xf32> to vector<8x640xf32>
    %c8 = arith.constant 8 : index
    %c0_9 = arith.constant 0 : index
    %12 = vector.load %arg8[%c8, %c0_9] : memref<144x640xf32, #tpu.memory_space<vmem>>, vector<8x640xf32>
    tpu.vector_store %arg8[%c8, %c0_9], %11 {strides = array<i32>} : memref<144x640xf32, #tpu.memory_space<vmem>>, vector<8x640xf32>,
    %13 = vector.extract_strided_slice %6 {offsets = [0, 1], sizes = [8, 640], strides = [1, 1]} : vector<8x768xf32> to vector<8x640xf32>
    %c80 = arith.constant 80 : index
    %c0_10 = arith.constant 0 : index
    %14 = vector.load %arg8[%c80, %c0_10] : memref<144x640xf32, #tpu.memory_space<vmem>>, vector<8x640xf32>
    tpu.vector_store %arg8[%c80, %c0_10], %13 {strides = array<i32>} : memref<144x640xf32, #tpu.memory_space<vmem>>, vector<8x640xf32>,
    %15 = vector.extract_strided_slice %4 {offsets = [0, 2], sizes = [8, 640], strides = [1, 1]} : vector<8x768xf32> to vector<8x640xf32>
    %c16 = arith.constant 16 : index
    %c0_11 = arith.constant 0 : index
    %16 = vector.load %arg8[%c16, %c0_11] : memref<144x640xf32, #tpu.memory_space<vmem>>, vector<8x640xf32>
    tpu.vector_store %arg8[%c16, %c0_11], %15 {strides = array<i32>} : memref<144x640xf32, #tpu.memory_space<vmem>>, vector<8x640xf32>,
    %17 = vector.extract_strided_slice %6 {offsets = [0, 2], sizes = [8, 640], strides = [1, 1]} : vector<8x768xf32> to vector<8x640xf32>
    %c88 = arith.constant 88 : index
    %c0_12 = arith.constant 0 : index
    %18 = vector.load %arg8[%c88, %c0_12] : memref<144x640xf32, #tpu.memory_space<vmem>>, vector<8x640xf32>
    tpu.vector_store %arg8[%c88, %c0_12], %17 {strides = array<i32>} : memref<144x640xf32, #tpu.memory_space<vmem>>, vector<8x640xf32>,
    %19 = vector.extract_strided_slice %4 {offsets = [0, 24], sizes = [8, 640], strides = [1, 1]} : vector<8x768xf32> to vector<8x640xf32>
    %c24 = arith.constant 24 : index
    %c0_13 = arith.constant 0 : index
    %20 = vector.load %arg8[%c24, %c0_13] : memref<144x640xf32, #tpu.memory_space<vmem>>, vector<8x640xf32>
    tpu.vector_store %arg8[%c24, %c0_13], %19 {strides = array<i32>} : memref<144x640xf32, #tpu.memory_space<vmem>>, vector<8x640xf32>,
    %21 = vector.extract_strided_slice %6 {offsets = [0, 24], sizes = [8, 640], strides = [1, 1]} : vector<8x768xf32> to vector<8x640xf32>
    %c96 = arith.constant 96 : index
    %c0_14 = arith.constant 0 : index
    %22 = vector.load %arg8[%c96, %c0_14] : memref<144x640xf32, #tpu.memory_space<vmem>>, vector<8x640xf32>
    tpu.vector_store %arg8[%c96, %c0_14], %21 {strides = array<i32>} : memref<144x640xf32, #tpu.memory_space<vmem>>, vector<8x640xf32>,
    %23 = vector.extract_strided_slice %4 {offsets = [0, 25], sizes = [8, 640], strides = [1, 1]} : vector<8x768xf32> to vector<8x640xf32>
    %c32 = arith.constant 32 : index
    %c0_15 = arith.constant 0 : index
    %24 = vector.load %arg8[%c32, %c0_15] : memref<144x640xf32, #tpu.memory_space<vmem>>, vector<8x640xf32>
    tpu.vector_store %arg8[%c32, %c0_15], %23 {strides = array<i32>} : memref<144x640xf32, #tpu.memory_space<vmem>>, vector<8x640xf32>,
    %25 = vector.extract_strided_slice %6 {offsets = [0, 25], sizes = [8, 640], strides = [1, 1]} : vector<8x768xf32> to vector<8x640xf32>
    %c104 = arith.constant 104 : index
    %c0_16 = arith.constant 0 : index
    %26 = vector.load %arg8[%c104, %c0_16] : memref<144x640xf32, #tpu.memory_space<vmem>>, vector<8x640xf32>
    tpu.vector_store %arg8[%c104, %c0_16], %25 {strides = array<i32>} : memref<144x640xf32, #tpu.memory_space<vmem>>, vector<8x640xf32>,
    %27 = vector.extract_strided_slice %4 {offsets = [0, 26], sizes = [8, 640], strides = [1, 1]} : vector<8x768xf32> to vector<8x640xf32>
    %c40 = arith.constant 40 : index
    %c0_17 = arith.constant 0 : index
    %28 = vector.load %arg8[%c40, %c0_17] : memref<144x640xf32, #tpu.memory_space<vmem>>, vector<8x640xf32>
    tpu.vector_store %arg8[%c40, %c0_17], %27 {strides = array<i32>} : memref<144x640xf32, #tpu.memory_space<vmem>>, vector<8x640xf32>,
    %29 = vector.extract_strided_slice %6 {offsets = [0, 26], sizes = [8, 640], strides = [1, 1]} : vector<8x768xf32> to vector<8x640xf32>
    %c112 = arith.constant 112 : index
    %c0_18 = arith.constant 0 : index
    %30 = vector.load %arg8[%c112, %c0_18] : memref<144x640xf32, #tpu.memory_space<vmem>>, vector<8x640xf32>
    tpu.vector_store %arg8[%c112, %c0_18], %29 {strides = array<i32>} : memref<144x640xf32, #tpu.memory_space<vmem>>, vector<8x640xf32>,
    %31 = vector.extract_strided_slice %4 {offsets = [0, 48], sizes = [8, 640], strides = [1, 1]} : vector<8x768xf32> to vector<8x640xf32>
    %c48 = arith.constant 48 : index
    %c0_19 = arith.constant 0 : index
    %32 = vector.load %arg8[%c48, %c0_19] : memref<144x640xf32, #tpu.memory_space<vmem>>, vector<8x640xf32>
    tpu.vector_store %arg8[%c48, %c0_19], %31 {strides = array<i32>} : memref<144x640xf32, #tpu.memory_space<vmem>>, vector<8x640xf32>,
    %33 = vector.extract_strided_slice %6 {offsets = [0, 48], sizes = [8, 640], strides = [1, 1]} : vector<8x768xf32> to vector<8x640xf32>
    %c120 = arith.constant 120 : index
    %c0_20 = arith.constant 0 : index
    %34 = vector.load %arg8[%c120, %c0_20] : memref<144x640xf32, #tpu.memory_space<vmem>>, vector<8x640xf32>
    tpu.vector_store %arg8[%c120, %c0_20], %33 {strides = array<i32>} : memref<144x640xf32, #tpu.memory_space<vmem>>, vector<8x640xf32>,
    %35 = vector.extract_strided_slice %4 {offsets = [0, 49], sizes = [8, 640], strides = [1, 1]} : vector<8x768xf32> to vector<8x640xf32>
    %c56 = arith.constant 56 : index
    %c0_21 = arith.constant 0 : index
    %36 = vector.load %arg8[%c56, %c0_21] : memref<144x640xf32, #tpu.memory_space<vmem>>, vector<8x640xf32>
    tpu.vector_store %arg8[%c56, %c0_21], %35 {strides = array<i32>} : memref<144x640xf32, #tpu.memory_space<vmem>>, vector<8x640xf32>,
    %37 = vector.extract_strided_slice %6 {offsets = [0, 49], sizes = [8, 640], strides = [1, 1]} : vector<8x768xf32> to vector<8x640xf32>
    %c128 = arith.constant 128 : index
    %c0_22 = arith.constant 0 : index
    %38 = vector.load %arg8[%c128, %c0_22] : memref<144x640xf32, #tpu.memory_space<vmem>>, vector<8x640xf32>
    tpu.vector_store %arg8[%c128, %c0_22], %37 {strides = array<i32>} : memref<144x640xf32, #tpu.memory_space<vmem>>, vector<8x640xf32>,
    %39 = vector.extract_strided_slice %4 {offsets = [0, 50], sizes = [8, 640], strides = [1, 1]} : vector<8x768xf32> to vector<8x640xf32>
    %c64 = arith.constant 64 : index
    %c0_23 = arith.constant 0 : index
    %40 = vector.load %arg8[%c64, %c0_23] : memref<144x640xf32, #tpu.memory_space<vmem>>, vector<8x640xf32>
    tpu.vector_store %arg8[%c64, %c0_23], %39 {strides = array<i32>} : memref<144x640xf32, #tpu.memory_space<vmem>>, vector<8x640xf32>,
    %41 = vector.extract_strided_slice %6 {offsets = [0, 50], sizes = [8, 640], strides = [1, 1]} : vector<8x768xf32> to vector<8x640xf32>
    %c136 = arith.constant 136 : index
    %c0_24 = arith.constant 0 : index
    %42 = vector.load %arg8[%c136, %c0_24] : memref<144x640xf32, #tpu.memory_space<vmem>>, vector<8x640xf32>
    tpu.vector_store %arg8[%c136, %c0_24], %41 {strides = array<i32>} : memref<144x640xf32, #tpu.memory_space<vmem>>, vector<8x640xf32>,
    %c0_25 = arith.constant 0 : index
    %c0_26 = arith.constant 0 : index
    %43 = vector.load %arg3[%c0_25, %c0_26] : memref<8x144xf32, #tpu.memory_space<vmem>>, vector<8x144xf32>
    %c0_27 = arith.constant 0 : index
    %c0_28 = arith.constant 0 : index
    %44 = vector.load %arg8[%c0_27, %c0_28] : memref<144x640xf32, #tpu.memory_space<vmem>>, vector<144x640xf32>
    %cst = arith.constant dense<0.000000e+00> : vector<8x640xf32>
    %45 = tpu.matmul %43, %44, %cst {dimension_numbers = #tpu.dot_dimension_numbers<[1], [0], [0], [1], [0, 0, 1, 1], [], []>} : vector<8x144xf32>, vector<144x640xf32>, vector<8x640xf32> -> vector<8x640xf32>
    %c0_29 = arith.constant 0 : index
    %c0_30 = arith.constant 0 : index
    %46 = vector.load %arg4[%c0_29, %c0_30] : memref<8x1xf32, #tpu.memory_space<vmem>>, vector<8x1xf32>
    %47 = vector.broadcast %46 : vector<8x1xf32> to vector<8x640xf32>
    %48 = arith.addf %45, %47 : vector<8x640xf32>
    %cst_31 = arith.constant 0.000000e+00 : f32
    %49 = vector.broadcast %cst_31 : f32 to vector<8x640xf32>
    %50 = arith.maximumf %48, %49 : vector<8x640xf32>
    %c0_32 = arith.constant 0 : index
    %c0_33 = arith.constant 0 : index
    %51 = vector.load %arg9[%c0_32, %c0_33] : memref<8x768xf32, #tpu.memory_space<vmem>>, vector<8x640xf32>
    tpu.vector_store %arg9[%c0_32, %c0_33], %50 {strides = array<i32>} : memref<8x768xf32, #tpu.memory_space<vmem>>, vector<8x640xf32>,
    %c0_34 = arith.constant 0 : index
    %c0_35 = arith.constant 0 : index
    %52 = vector.load %arg9[%c0_34, %c0_35] : memref<8x768xf32, #tpu.memory_space<vmem>>, vector<8x768xf32>
    %53 = vector.extract_strided_slice %52 {offsets = [0, 0], sizes = [8, 640], strides = [1, 1]} : vector<8x768xf32> to vector<8x640xf32>
    %c0_36 = arith.constant 0 : index
    %c0_37 = arith.constant 0 : index
    %54 = vector.load %arg10[%c0_36, %c0_37] : memref<72x640xf32, #tpu.memory_space<vmem>>, vector<8x640xf32>
    tpu.vector_store %arg10[%c0_36, %c0_37], %53 {strides = array<i32>} : memref<72x640xf32, #tpu.memory_space<vmem>>, vector<8x640xf32>,
    %55 = vector.extract_strided_slice %52 {offsets = [0, 1], sizes = [8, 640], strides = [1, 1]} : vector<8x768xf32> to vector<8x640xf32>
    %c8_38 = arith.constant 8 : index
    %c0_39 = arith.constant 0 : index
    %56 = vector.load %arg10[%c8_38, %c0_39] : memref<72x640xf32, #tpu.memory_space<vmem>>, vector<8x640xf32>
    tpu.vector_store %arg10[%c8_38, %c0_39], %55 {strides = array<i32>} : memref<72x640xf32, #tpu.memory_space<vmem>>, vector<8x640xf32>,
    %57 = vector.extract_strided_slice %52 {offsets = [0, 2], sizes = [8, 640], strides = [1, 1]} : vector<8x768xf32> to vector<8x640xf32>
    %c16_40 = arith.constant 16 : index
    %c0_41 = arith.constant 0 : index
    %58 = vector.load %arg10[%c16_40, %c0_41] : memref<72x640xf32, #tpu.memory_space<vmem>>, vector<8x640xf32>
    tpu.vector_store %arg10[%c16_40, %c0_41], %57 {strides = array<i32>} : memref<72x640xf32, #tpu.memory_space<vmem>>, vector<8x640xf32>,
    %59 = vector.extract_strided_slice %52 {offsets = [0, 24], sizes = [8, 640], strides = [1, 1]} : vector<8x768xf32> to vector<8x640xf32>
    %c24_42 = arith.constant 24 : index
    %c0_43 = arith.constant 0 : index
    %60 = vector.load %arg10[%c24_42, %c0_43] : memref<72x640xf32, #tpu.memory_space<vmem>>, vector<8x640xf32>
    tpu.vector_store %arg10[%c24_42, %c0_43], %59 {strides = array<i32>} : memref<72x640xf32, #tpu.memory_space<vmem>>, vector<8x640xf32>,
    %61 = vector.extract_strided_slice %52 {offsets = [0, 25], sizes = [8, 640], strides = [1, 1]} : vector<8x768xf32> to vector<8x640xf32>
    %c32_44 = arith.constant 32 : index
    %c0_45 = arith.constant 0 : index
    %62 = vector.load %arg10[%c32_44, %c0_45] : memref<72x640xf32, #tpu.memory_space<vmem>>, vector<8x640xf32>
    tpu.vector_store %arg10[%c32_44, %c0_45], %61 {strides = array<i32>} : memref<72x640xf32, #tpu.memory_space<vmem>>, vector<8x640xf32>,
    %63 = vector.extract_strided_slice %52 {offsets = [0, 26], sizes = [8, 640], strides = [1, 1]} : vector<8x768xf32> to vector<8x640xf32>
    %c40_46 = arith.constant 40 : index
    %c0_47 = arith.constant 0 : index
    %64 = vector.load %arg10[%c40_46, %c0_47] : memref<72x640xf32, #tpu.memory_space<vmem>>, vector<8x640xf32>
    tpu.vector_store %arg10[%c40_46, %c0_47], %63 {strides = array<i32>} : memref<72x640xf32, #tpu.memory_space<vmem>>, vector<8x640xf32>,
    %65 = vector.extract_strided_slice %52 {offsets = [0, 48], sizes = [8, 640], strides = [1, 1]} : vector<8x768xf32> to vector<8x640xf32>
    %c48_48 = arith.constant 48 : index
    %c0_49 = arith.constant 0 : index
    %66 = vector.load %arg10[%c48_48, %c0_49] : memref<72x640xf32, #tpu.memory_space<vmem>>, vector<8x640xf32>
    tpu.vector_store %arg10[%c48_48, %c0_49], %65 {strides = array<i32>} : memref<72x640xf32, #tpu.memory_space<vmem>>, vector<8x640xf32>,
    %67 = vector.extract_strided_slice %52 {offsets = [0, 49], sizes = [8, 640], strides = [1, 1]} : vector<8x768xf32> to vector<8x640xf32>
    %c56_50 = arith.constant 56 : index
    %c0_51 = arith.constant 0 : index
    %68 = vector.load %arg10[%c56_50, %c0_51] : memref<72x640xf32, #tpu.memory_space<vmem>>, vector<8x640xf32>
    tpu.vector_store %arg10[%c56_50, %c0_51], %67 {strides = array<i32>} : memref<72x640xf32, #tpu.memory_space<vmem>>, vector<8x640xf32>,
    %69 = vector.extract_strided_slice %52 {offsets = [0, 50], sizes = [8, 640], strides = [1, 1]} : vector<8x768xf32> to vector<8x640xf32>
    %c64_52 = arith.constant 64 : index
    %c0_53 = arith.constant 0 : index
    %70 = vector.load %arg10[%c64_52, %c0_53] : memref<72x640xf32, #tpu.memory_space<vmem>>, vector<8x640xf32>
    tpu.vector_store %arg10[%c64_52, %c0_53], %69 {strides = array<i32>} : memref<72x640xf32, #tpu.memory_space<vmem>>, vector<8x640xf32>,
    %c0_54 = arith.constant 0 : index
    %c0_55 = arith.constant 0 : index
    %71 = vector.load %arg5[%c0_54, %c0_55] : memref<8x72xf32, #tpu.memory_space<vmem>>, vector<8x72xf32>
    %c0_56 = arith.constant 0 : index
    %c0_57 = arith.constant 0 : index
    %72 = vector.load %arg10[%c0_56, %c0_57] : memref<72x640xf32, #tpu.memory_space<vmem>>, vector<72x640xf32>
    %cst_58 = arith.constant dense<0.000000e+00> : vector<8x640xf32>
    %73 = tpu.matmul %71, %72, %cst_58 {dimension_numbers = #tpu.dot_dimension_numbers<[1], [0], [0], [1], [0, 0, 1, 1], [], []>} : vector<8x72xf32>, vector<72x640xf32>, vector<8x640xf32> -> vector<8x640xf32>
    %c0_59 = arith.constant 0 : index
    %c0_60 = arith.constant 0 : index
    %74 = vector.load %arg6[%c0_59, %c0_60] : memref<8x1xf32, #tpu.memory_space<vmem>>, vector<8x1xf32>
    %75 = vector.broadcast %74 : vector<8x1xf32> to vector<8x640xf32>
    %76 = arith.addf %73, %75 : vector<8x640xf32>
    %cst_61 = arith.constant 0.000000e+00 : f32
    %77 = vector.broadcast %cst_61 : f32 to vector<8x640xf32>
    %78 = arith.maximumf %76, %77 : vector<8x640xf32>
    %c0_62 = arith.constant 0 : index
    %c0_63 = arith.constant 0 : index
    %c0_64 = arith.constant 0 : index
    %79 = vector.load %arg7[%c0_62, %c0_63, %c0_64] : memref<1x8x640xf32, #tpu.memory_space<vmem>>, vector<1x8x640xf32>
    %80 = vector.shape_cast %79 : vector<1x8x640xf32> to vector<8x640xf32>
    %81 = vector.shape_cast %78 : vector<8x640xf32> to vector<1x8x640xf32>
    tpu.vector_store %arg7[%c0_62, %c0_63, %c0_64], %81 {strides = array<i32>} : memref<1x8x640xf32, #tpu.memory_space<vmem>>, vector<1x8x640xf32>,
    return
  }
  func.func @transform_0(%arg0: i32) -> (i32, i32, i32) {
    %c0_i32 = arith.constant 0 : i32
    %c0_i32_0 = arith.constant 0 : i32
    %c0_i32_1 = arith.constant 0 : i32
    return %arg0, %c0_i32, %c0_i32_0 : i32, i32, i32
  }
  func.func @transform_1(%arg0: i32) -> (i32, i32, i32) {
    %c0_i32 = arith.constant 0 : i32
    %c0_i32_0 = arith.constant 0 : i32
    %c0_i32_1 = arith.constant 0 : i32
    return %arg0, %c0_i32, %c0_i32_0 : i32, i32, i32
  }
  func.func @transform_2(%arg0: i32) -> (i32, i32) {
    %c0_i32 = arith.constant 0 : i32
    %c0_i32_0 = arith.constant 0 : i32
    %c0_i32_1 = arith.constant 0 : i32
    return %c0_i32, %c0_i32_0 : i32, i32
  }
  func.func @transform_3(%arg0: i32) -> (i32, i32) {
    %c0_i32 = arith.constant 0 : i32
    %c0_i32_0 = arith.constant 0 : i32
    %c0_i32_1 = arith.constant 0 : i32
    return %c0_i32, %c0_i32_0 : i32, i32
  }
  func.func @transform_4(%arg0: i32) -> (i32, i32) {
    %c0_i32 = arith.constant 0 : i32
    %c0_i32_0 = arith.constant 0 : i32
    %c0_i32_1 = arith.constant 0 : i32
    return %c0_i32, %c0_i32_0 : i32, i32
  }
  func.func @transform_5(%arg0: i32) -> (i32, i32) {
    %c0_i32 = arith.constant 0 : i32
    %c0_i32_0 = arith.constant 0 : i32
    %c0_i32_1 = arith.constant 0 : i32
    return %c0_i32, %c0_i32_0 : i32, i32
  }
  func.func @transform_6(%arg0: i32) -> (i32, i32, i32) {
    %c0_i32 = arith.constant 0 : i32
    %c0_i32_0 = arith.constant 0 : i32
    %c0_i32_1 = arith.constant 0 : i32
    return %arg0, %c0_i32, %c0_i32_0 : i32, i32, i32
  }
}

</mosaic_0001>

<bundles_post_ra>
// kernel: _lambda_.4
= control target key start
LH: loop header
LB: loop body
LE: loop exit
PB: predicated region body
PF: predicated region fallthrough
CT: control target
= control target key end

     0   :  { %s445_s9 = smov 0   ;;  %s498_s0 = inlined_call_operand.vmem [shape: f32[2,32,128], index: 0, kind: input, shape index: {}]   ;;  %s499_s1 = inlined_call_operand.vmem [shape: f32[64,32], index: 1, kind: input, shape index: {}]   ;;  %s500_s2 = inlined_call_operand.vmem [shape: f32[2,64,128], index: 2, kind: output, shape index: {}]  }
   0x1 LB: > { %s349_s10 = sadd.s32 4294967295, %s428_s9   ;;  %p353_p0 = scmp.ge.s32.totalorder %s428_s9, 1  ;;  %s428_s9 = sphi %s445_s9, %s12_s9  }
   0x2   : > { %p112_p1 = scmp.lt.s32.totalorder %s428_s9, 3 }
   0x4   : > { %p113_p2 = pnand %p353_p0, %p112_p1 }
   0x5   : > { %p134_p3 = scmp.lt.s32.totalorder (!%p113_p2), %s349_s10, 1  ;;  %v144_v0 = vld [vmem:[%s499_s1] sm:$0xff] (!%p113_p2)  ;;  %vm156_vm0 = vcmask (!%p113_p2), 261120   ;;  %v145_v8 = vld [vmem:[%s499_s1 + $0x8] sm:$0xff] (!%p113_p2)  ;;  %v146_v10 = vld [vmem:[%s499_s1 + $0x10] sm:$0xff] (!%p113_p2) }
   0x6   : > { %116 = sbr.rel (%p113_p2) target bundleno = 245 (0xf5), region = 28  ;;  %v148_v1 = vld [vmem:[%s499_s1 + $0x20] sm:$0xff] (!%p113_p2)  ;;  %390 = vmatprep.mubr.msk.f32.mxu0 (!%p113_p2), %vm156_vm0, %v144_v0  ;;  %v149_v9 = vld [vmem:[%s499_s1 + $0x28] sm:$0xff] (!%p113_p2)  ;;  %v150_v11 = vld [vmem:[%s499_s1 + $0x30] sm:$0xff] (!%p113_p2) }
   0x7   : > { %396 = vmatprep.mubr.msk.f32.mxu1 (!%p113_p2), %vm156_vm0, %v148_v1  ;;  %v147_v12 = vld [vmem:[%s499_s1 + $0x18] sm:$0xff] (!%p113_p2) }
   0x8   : > { %v151_v13 = vld [vmem:[%s499_s1 + $0x38] sm:$0xff] (!%p113_p2) }
   0xd   : > { %s502_s10 = smov (!%p134_p3, %s349_s10), 1 }
   0xe   : > { %s368_s15 = sshll.u32 %s502_s10, 5  ;;  %s369_s3 = sshll.u32 %s502_s10, 6 }
   0xf   : > { %s138_s18 = scalar_lea.vmem %s498_s0, %s368_s15  ;;  %s143_s6 = scalar_lea.vmem %s500_s2, %s369_s3 }
  0x10   : > { %v152_v2 = vld [vmem:[%s138_s18] sm:$0xff]  ;;  %v153_v3 = vld [vmem:[%s138_s18 + $0x8] sm:$0xff]  ;;  %v154_v4 = vld [vmem:[%s138_s18 + $0x10] sm:$0xff] }
  0x11   : > { %v402_v5 = vpack.c.bf16 %v153_v3, %v152_v2  ;;  %v155_v6 = vld [vmem:[%s138_s18 + $0x18] sm:$0xff] }
  0x12   : > { %v406_v7 = vpack.c.bf16 %v155_v6, %v154_v4 }
  0x13   : > { %403 = vmatprep.subr.bf16.mxu0 %v402_v5  ;;  %410 = vmatprep.subr.bf16.mxu1 %v402_v5 }
  0x14   : > { %405 = vmatpush3.bf16.msra.mxu0 %v402_v5  ;;  %412 = vmatpush3.bf16.msra.mxu1 %v402_v5 }
  0x15   : > { %407 = vmatprep.subr.bf16.mxu0 %v406_v7  ;;  %411 = vmatprep.subr.bf16.mxu1 %v406_v7 }
  0x18   : > { %409 = vmatpush3.bf16.msra.mxu0 %v406_v7  ;;  %413 = vmatpush3.bf16.msra.mxu1 %v406_v7 }
  0x1b   : > { %391 = vmatmul.mubr.msk.f32.vlgmr.msra.gmra.mrb[0].mxu0 %vm156_vm0, %v145_v8  ;;  %397 = vmatmul.mubr.msk.f32.vlgmr.msra.gmra.mrb[0].mxu1 %vm156_vm0, %v149_v9 }
  0x1c   : > { %393 = vmatprep.mubr.msk.f32.mxu0 %vm156_vm0, %v146_v10  ;;  %399 = vmatprep.mubr.msk.f32.mxu1 %vm156_vm0, %v150_v11 }
  0x1f   : > { %394 = vmatmul.mubr.msk.f32.gmra.mrb[2].mxu0 %vm156_vm0, %v147_v12  ;;  %400 = vmatmul.mubr.msk.f32.gmra.mrb[2].mxu1 %vm156_vm0, %v151_v13 }
  0xee   : > { %v392_v14 = vpop.f32.mrb[0].mxu0  ;;  %v398_v15 = vpop.f32.mrb[0].mxu1 }
  0xef   : > { %287 = vst [vmem:[%s143_s6 + $0x8] sm:$0xff] %v392_v14  ;;  %291 = vst [vmem:[%s143_s6 + $0x28] sm:$0xff] %v398_v15  ;;  %v247_v16 = vpop.f32.mrb[1].mxu0  ;;  %v267_v17 = vpop.f32.mrb[1].mxu1 }
  0xf0   : > { %286 = vst [vmem:[%s143_s6] sm:$0xff] %v247_v16  ;;  %290 = vst [vmem:[%s143_s6 + $0x20] sm:$0xff] %v267_v17 }
  0xf2   : > { %v395_v18 = vpop.f32.mrb[2].mxu0  ;;  %v401_v19 = vpop.f32.mrb[2].mxu1 }
  0xf3   : > { %289 = vst [vmem:[%s143_s6 + $0x18] sm:$0xff] %v395_v18  ;;  %293 = vst [vmem:[%s143_s6 + $0x38] sm:$0xff] %v401_v19  ;;  %v257_v20 = vpop.f32.mrb[3].mxu0  ;;  %v277_v21 = vpop.f32.mrb[3].mxu1 }
  0xf4   : > { %288 = vst [vmem:[%s143_s6 + $0x10] sm:$0xff] %v257_v20  ;;  %292 = vst [vmem:[%s143_s6 + $0x30] sm:$0xff] %v277_v21 }
  0xf5 PF: > { %s12_s9 = sadd.s32 1, %s428_s9  }
  0xf6   : > { %p9_p4 = scmp.ge.s32.totalorder %s12_s9, 4  }
  0xf8   :  { %11 = sbr.rel (!%p9_p4) target bundleno = 1 (0x1), region = 58 }

// kernel: _lambda_.6
= control target key start
LH: loop header
LB: loop body
LE: loop exit
PB: predicated region body
PF: predicated region fallthrough
CT: control target
= control target key end

     0   :  { %s373_s9 = smov 0   ;;  %s402_s0 = inlined_call_operand.vmem [shape: f32[2,16,256], index: 0, kind: input, shape index: {}]   ;;  %s403_s1 = inlined_call_operand.vmem [shape: f32[32,16], index: 1, kind: input, shape index: {}]   ;;  %s404_s2 = inlined_call_operand.vmem [shape: f32[2,32,256], index: 2, kind: output, shape index: {}]  }
   0x1 LB: > { %s317_s10 = sadd.s32 4294967295, %s355_s9   ;;  %p321_p0 = scmp.ge.s32.totalorder %s355_s9, 1  ;;  %s355_s9 = sphi %s373_s9, %s12_s9  }
   0x2   : > { %p112_p1 = scmp.lt.s32.totalorder %s355_s9, 3 }
   0x4   : > { %p113_p2 = pnand %p321_p0, %p112_p1 }
   0x5   : > { %p134_p3 = scmp.lt.s32.totalorder (!%p113_p2), %s317_s10, 1  ;;  %v357_v0 = vmov (!%p113_p2), 0.0   ;;  %v144_v7 = vld [vmem:[%s403_s1] sm:$0xff] (!%p113_p2)  ;;  %vm152_vm0 = vcmask (!%p113_p2), 130048   ;;  %v146_v8 = vld [vmem:[%s403_s1 + $0x10] sm:$0xff] (!%p113_p2)  ;;  %v145_v9 = vld [vmem:[%s403_s1 + $0x8] sm:$0xff] (!%p113_p2) }
   0x6   : > { %116 = sbr.rel (%p113_p2) target bundleno = 241 (0xf1), region = 28  ;;  %229 = vmatprep.mubr.f32.mxu0 (!%p113_p2), %v357_v0  ;;  %241 = vmatprep.mubr.f32.mxu1 (!%p113_p2), %v357_v0  ;;  %v147_v10 = vld [vmem:[%s403_s1 + $0x18] sm:$0xff] (!%p113_p2) }
   0xd   : > { %s406_s10 = smov (!%p134_p3, %s317_s10), 1 }
   0xe   : > { %s332_s11 = sshll.u32 %s406_s10, 5  ;;  %s333_s23 = sshll.u32 %s406_s10, 6 }
   0xf   : > { %s138_s14 = scalar_lea.vmem %s402_s0, %s332_s11  ;;  %s143_s26 = scalar_lea.vmem %s404_s2, %s333_s23 }
  0x10   : > { %v149_v1 = vld [vmem:[%s138_s14 + $0x8] sm:$0xff]  ;;  %v151_v2 = vld [vmem:[%s138_s14 + $0x18] sm:$0xff]  ;;  %v148_v3 = vld [vmem:[%s138_s14] sm:$0xff] }
  0x11   : > { %v334_v4 = vpack.c.bf16 %v151_v2, %v149_v1  ;;  %v150_v5 = vld [vmem:[%s138_s14 + $0x10] sm:$0xff] }
  0x12   : > { %v336_v6 = vpack.c.bf16 %v150_v5, %v148_v3 }
  0x13   : > { %335 = vmatprep.subr.bf16.mxu0 %v334_v4  ;;  %338 = vmatprep.subr.bf16.mxu1 %v334_v4 }
  0x14   : > { %337 = vmatpush1.bf16.msra.mxu0 %v336_v6  ;;  %339 = vmatpush1.bf16.msra.mxu1 %v336_v6 }
  0x17   : > { %326 = vmatmul.mubr.msk.f32.vlgmr.msra.gmra.mrb[0].mxu0 %vm152_vm0, %v144_v7  ;;  %328 = vmatmul.mubr.msk.f32.vlgmr.msra.gmra.mrb[0].mxu1 %vm152_vm0, %v146_v8 }
  0x18   : > { %235 = vmatprep.mubr.f32.mxu0 %v357_v0  ;;  %247 = vmatprep.mubr.f32.mxu1 %v357_v0 }
  0x1b   : > { %327 = vmatmul.mubr.msk.f32.gmra.mrb[2].mxu0 %vm152_vm0, %v145_v9  ;;  %329 = vmatmul.mubr.msk.f32.gmra.mrb[2].mxu1 %vm152_vm0, %v147_v10 }
  0xea   : > { %v231_v11 = vpop.f32.mrb[0].mxu0  ;;  %v243_v12 = vpop.f32.mrb[0].mxu1 }
  0xeb   : > { %254 = vst [vmem:[%s143_s26] sm:$0xff] %v231_v11  ;;  %258 = vst [vmem:[%s143_s26 + $0x20] sm:$0xff] %v243_v12  ;;  %v233_v13 = vpop.f32.mrb[1].mxu0  ;;  %v245_v14 = vpop.f32.mrb[1].mxu1 }
  0xec   : > { %255 = vst [vmem:[%s143_s26 + $0x8] sm:$0xff] %v233_v13  ;;  %259 = vst [vmem:[%s143_s26 + $0x28] sm:$0xff] %v245_v14 }
  0xee   : > { %v237_v15 = vpop.f32.mrb[2].mxu0  ;;  %v249_v16 = vpop.f32.mrb[2].mxu1 }
  0xef   : > { %256 = vst [vmem:[%s143_s26 + $0x10] sm:$0xff] %v237_v15  ;;  %260 = vst [vmem:[%s143_s26 + $0x30] sm:$0xff] %v249_v16  ;;  %v239_v17 = vpop.f32.mrb[3].mxu0  ;;  %v251_v18 = vpop.f32.mrb[3].mxu1 }
  0xf0   : > { %257 = vst [vmem:[%s143_s26 + $0x18] sm:$0xff] %v239_v17  ;;  %261 = vst [vmem:[%s143_s26 + $0x38] sm:$0xff] %v251_v18 }
  0xf1 PF: > { %s12_s9 = sadd.s32 1, %s355_s9  }
  0xf2   : > { %p9_p4 = scmp.ge.s32.totalorder %s12_s9, 4  }
  0xf4   :  { %11 = sbr.rel (!%p9_p4) target bundleno = 1 (0x1), region = 58 }

// kernel: _lambda_.5
= control target key start
LH: loop header
LB: loop body
LE: loop exit
PB: predicated region body
PF: predicated region fallthrough
CT: control target
= control target key end

     0   :  { %s1949_s21 = smov 0   ;;  %s2227_s0 = inlined_call_operand.vmem [shape: f32[2,16,384], index: 0, kind: input, shape index: {}]   ;;  %s2228_s1 = inlined_call_operand.vmem [shape: f32[2,16,384], index: 1, kind: input, shape index: {}]   ;;  %s2229_s2 = inlined_call_operand.vmem [shape: f32[16,288], index: 2, kind: input, shape index: {}]   ;;  %s2230_s3 = inlined_call_operand.vmem [shape: f32[16,1], index: 3, kind: input, shape index: {}]   ;;  %s2231_s4 = inlined_call_operand.vmem [shape: f32[16,144], index: 4, kind: input, shape index: {}]   ;;  %s2232_s5 = inlined_call_operand.vmem [shape: f32[16,1], index: 5, kind: input, shape index: {}]   ;;  %s2233_s6 = inlined_call_operand.vmem [shape: f32[2,16,256], index: 6, kind: output, shape index: {}]  }
   0x1 LB: > { %s1380_s22 = sadd.s32 4294967295, %s1901_s21   ;;  %p1384_p0 = scmp.ge.s32.totalorder %s1901_s21, 1  ;;  %s1901_s21 = sphi %s1949_s21, %s16_s21  }
   0x2   : > { %p222_p1 = scmp.lt.s32.totalorder %s1901_s21, 3 }
   0x4   : > { %p223_p2 = pnand %p1384_p0, %p222_p1 }
   0x5   : > { %p257_p3 = scmp.lt.s32.totalorder (!%p223_p2), %s1380_s22, 1  ;;  %p1389_p4 = scmp.ne.s32.totalorder (!%p223_p2), %s1380_s22, 0 }
   0x6   : > { %226 = sbr.rel (%p223_p2) target bundleno = 849 (0x351), region = 44 }
   0xd   : > { %s258_s23 = scalar_select %p257_p3, %s1380_s22, 1 }
   0xe   : > { %275 = sbr.rel (%p1389_p4) target bundleno = 21 (0x15), region = 48  ;;  %v1903_v0 = vmov (!%p1389_p4), 0.0  }
   0xf   : > { %s1513_s24 = smul.u32 48, %s258_s23  ;;  %s1396_s25 = sshll.u32 %s258_s23, 5  ;;  %276 = vst [vmem:[#allocation3 + $0x10] sm:$0xff] (!%p1389_p4), %v1903_v0  ;;  %277 = vst [vmem:[#allocation3 + $0x28] sm:$0xff] (!%p1389_p4), %v1903_v0 }
  0x10   : > { %s1960_s28 = scalar_lea.vmem %s2233_s6, %s1396_s25 }
  0x11   : > { %s261_s7 = scalar_lea.vmem %s2227_s0, %s1513_s24  ;;  %s1968_s10 = scalar_lea.vmem %s2228_s1, %s1513_s24 }
  0x15 PF: > { %v279_v1 = vld [vmem:[%s261_s7 + $0x8] sm:$0xff]  ;;  %v280_v2 = vld [vmem:[%s261_s7 + $0x10] sm:$0xff]  ;;  %v278_v3 = vld [vmem:[%s261_s7] sm:$0xff]  ;;  %s1904_s11 = smov 127   ;;  %s1905_s12 = smov 126   ;;  %v1912_v24 = vmov 0.0  }
  0x16   : > { %v1533_v4 = vpack.i.bf16 %v280_v2, %v279_v1  ;;  %v281_v5 = vld [vmem:[%s261_s7 + $0x18] sm:$0xff]  ;;  %v282_v6 = vld [vmem:[%s261_s7 + $0x20] sm:$0xff]  ;;  %v283_v7 = vld [vmem:[%s261_s7 + $0x28] sm:$0xff]  ;;  %s1906_s13 = smov 112   ;;  %s1907_s14 = smov 111   ;;  %940 = vmatprep.mubr.f32.mxu1 %v1912_v24  ;;  %v1913_v25 = vmov 0  }
  0x17   : > { %v1543_v8 = vpack.i.bf16 %v281_v5, %v278_v3  ;;  %v1538_v9 = vpack.i.bf16 %v283_v7, %v282_v6  ;;  %v1397_v10 = vpack.c.bf16 %v282_v6, %v279_v1  ;;  %v1399_v11 = vpack.c.bf16 %v281_v5, %v278_v3  ;;  %s1908_s15 = smov 110   ;;  %s1909_s16 = smov 96   ;;  %v1991_v12 = vld [vmem:[%s1968_s10 + $0x8] sm:$0xff]  ;;  %v1994_v13 = vld [vmem:[%s1968_s10 + $0x20] sm:$0xff]  ;;  %v2000_v15 = vld [vmem:[%s1968_s10 + $0x18] sm:$0xff]  ;;  %1773 = vset.pattern.permute.xlu0 %v1913_v25 }
  0x18   : > { %1534 = vrot.lane.b32.xlu0 %v1533_v4, %s1904_s11  ;;  %s1910_s17 = smov 95   ;;  %v1997_v14 = vld [vmem:[%s1968_s10] sm:$0xff]  ;;  %v1433_v16 = vpack.c.bf16 %v1994_v13, %v1991_v12  ;;  %s1911_s18 = smov 94   ;;  %v286_v18 = vld [vmem:[%s1968_s10 + $0x10] sm:$0xff]  ;;  %v289_v19 = vld [vmem:[%s1968_s10 + $0x28] sm:$0xff]  ;;  %1774 = vset.pattern.permute.xlu1 %v1913_v25  ;;  %vm316_vm0 = vcmask 1039360  }
  0x19   : > { %1544 = vrot.lane.b32.xlu1 %v1543_v8, %s1904_s11  ;;  %1398 = vmatprep.subr.bf16.mxu0 %v1397_v10  ;;  %v1435_v17 = vpack.c.bf16 %v2000_v15, %v1997_v14  ;;  %v1653_v20 = vpack.i.bf16 %v286_v18, %v1991_v12  ;;  %v1658_v21 = vpack.i.bf16 %v289_v19, %v1994_v13  ;;  %v703_v23 = vld [vmem:[%s2229_s2 + $0x8] sm:$0xff]  ;;  %v780_v26 = vld [vmem:[%s2230_s3] sm:$0xff]  ;;  %vm371_vm1 = vcmask 1031168  }
  0x1a   : > { %1400 = vmatpush1.bf16.msra.mxu0 %v1399_v11  ;;  %v1663_v22 = vpack.i.bf16 %v2000_v15, %v1997_v14  ;;  %863 = vmatprep.mubr.f32.mxu0 %v703_v23  ;;  %v781_v27 = vld [vmem:[%s2230_s3 + $0x8] sm:$0xff]  ;;  %vm420_vm2 = vcmask 916480   ;;  %vm469_vm3 = vcmask 908288   ;;  %vm518_vm4 = vcmask 900096  }
  0x1b   : > { %vm567_vm5 = vcmask 785408   ;;  %vm616_vm6 = vcmask 777216   ;;  %vm665_vm7 = vcmask 769024   ;;  %vm792_vm8 = vcmask 261120  }
  0x1c   : > { %1539 = vrot.lane.b32.xlu0 %v1538_v9, %s1904_s11  ;;  %vm1221_vm9 = vcmask 130048  }
  0x1d   : > { %1549 = vrot.lane.b32.xlu1 %v1533_v4, %s1905_s12 }
  0x20   : > { %1554 = vrot.lane.b32.xlu0 %v1538_v9, %s1905_s12 }
  0x21   : > { %1559 = vrot.lane.b32.xlu1 %v1543_v8, %s1905_s12 }
  0x24   : > { %1564 = vrot.lane.b32.xlu0 %v1533_v4, %s1906_s13 }
  0x25   : > { %1569 = vrot.lane.b32.xlu1 %v1538_v9, %s1906_s13 }
  0x28   : > { %1574 = vrot.lane.b32.xlu0 %v1543_v8, %s1906_s13 }
  0x29   : > { %1579 = vrot.lane.b32.xlu1 %v1533_v4, %s1907_s14 }
  0x2c   : > { %1584 = vrot.lane.b32.xlu0 %v1538_v9, %s1907_s14 }
  0x2d   : > { %1589 = vrot.lane.b32.xlu1 %v1543_v8, %s1907_s14 }
  0x30   : > { %1594 = vrot.lane.b32.xlu0 %v1533_v4, %s1908_s15 }
  0x31   : > { %1599 = vrot.lane.b32.xlu1 %v1538_v9, %s1908_s15 }
  0x34   : > { %1604 = vrot.lane.b32.xlu0 %v1543_v8, %s1908_s15 }
  0x35   : > { %1609 = vrot.lane.b32.xlu1 %v1533_v4, %s1909_s16 }
  0x38   : > { %1614 = vrot.lane.b32.xlu0 %v1538_v9, %s1909_s16 }
  0x39   : > { %1619 = vrot.lane.b32.xlu1 %v1543_v8, %s1909_s16 }
  0x3c   : > { %1624 = vrot.lane.b32.xlu0 %v1533_v4, %s1910_s17 }
  0x3d   : > { %1629 = vrot.lane.b32.xlu1 %v1538_v9, %s1910_s17 }
  0x40   : > { %1634 = vrot.lane.b32.xlu0 %v1543_v8, %s1910_s17 }
  0x41   : > { %1639 = vrot.lane.b32.xlu1 %v1533_v4, %s1911_s18 }
  0x44   : > { %1644 = vrot.lane.b32.xlu0 %v1538_v9, %s1911_s18 }
  0x45   : > { %1649 = vrot.lane.b32.xlu1 %v1543_v8, %s1911_s18 }
  0x48   : > { %1654 = vrot.lane.b32.xlu0 %v1653_v20, %s1904_s11 }
  0x49   : > { %1659 = vrot.lane.b32.xlu1 %v1658_v21, %s1904_s11 }
  0x4c   : > { %1664 = vrot.lane.b32.xlu0 %v1663_v22, %s1904_s11 }
  0x4d   : > { %1669 = vrot.lane.b32.xlu1 %v1653_v20, %s1905_s12 }
  0x50   : > { %1674 = vrot.lane.b32.xlu0 %v1658_v21, %s1905_s12 }
  0x51   : > { %1679 = vrot.lane.b32.xlu1 %v1663_v22, %s1905_s12 }
  0x54   : > { %1684 = vrot.lane.b32.xlu0 %v1653_v20, %s1906_s13 }
  0x55   : > { %1689 = vrot.lane.b32.xlu1 %v1658_v21, %s1906_s13 }
  0x58   : > { %1694 = vrot.lane.b32.xlu0 %v1663_v22, %s1906_s13 }
  0x59   : > { %1699 = vrot.lane.b32.xlu1 %v1653_v20, %s1907_s14 }
  0x5c   : > { %1704 = vrot.lane.b32.xlu0 %v1658_v21, %s1907_s14 }
  0x5d   : > { %1709 = vrot.lane.b32.xlu1 %v1663_v22, %s1907_s14 }
  0x60   : > { %1714 = vrot.lane.b32.xlu0 %v1653_v20, %s1908_s15 }
  0x61   : > { %1719 = vrot.lane.b32.xlu1 %v1658_v21, %s1908_s15 }
  0x64   : > { %1724 = vrot.lane.b32.xlu0 %v1663_v22, %s1908_s15 }
  0x65   : > { %1729 = vrot.lane.b32.xlu1 %v1653_v20, %s1910_s17 }
  0x68   : > { %1734 = vrot.lane.b32.xlu0 %v1658_v21, %s1910_s17 }
  0x69   : > { %1739 = vrot.lane.b32.xlu1 %v1663_v22, %s1910_s17 }
  0x6c   : > { %1744 = vrot.lane.b32.xlu0 %v1653_v20, %s1909_s16 }
  0x6d   : > { %1749 = vrot.lane.b32.xlu1 %v1658_v21, %s1909_s16 }
  0x70   : > { %1754 = vrot.lane.b32.xlu0 %v1663_v22, %s1909_s16 }
  0x71   : > { %1759 = vrot.lane.b32.xlu1 %v1653_v20, %s1911_s18 }
  0x74   : > { %1764 = vrot.lane.b32.xlu0 %v1658_v21, %s1911_s18 }
  0x75   : > { %1769 = vrot.lane.b32.xlu1 %v1663_v22, %s1911_s18 }
  0x78   : > { %784 = vperm.xlu0 %1773, %v780_v26  }
  0x79   : > { %789 = vperm.xlu1 %1774, %v781_v27  }
  0x8a   : > { %v1535_v28 = vpop.permute.xlu0 %1534 }
  0x8b   : > { %v1545_v29 = vpop.permute.xlu1 %1544  ;;  %v1537_v30 = vunpack.i.h.bf16 %v1535_v28  ;;  %v1536_v31 = vunpack.i.l.bf16 %v1535_v28 }
  0x8c   : > { %v1546_v32 = vunpack.i.l.bf16 %v1545_v29  ;;  %v1547_v34 = vunpack.i.h.bf16 %v1545_v29 }
  0x8d   : > { %v318_v38 = vsel %vm316_vm0, %v1536_v31, %v1537_v30 }
  0x8e   : > { %v1540_v33 = vpop.permute.xlu0 %1539  ;;  %v317_v39 = vsel %vm316_vm0, %v1546_v32, %v1536_v31 }
  0x8f   : > { %v1542_v35 = vunpack.i.h.bf16 %v1540_v33  ;;  %v1541_v36 = vunpack.i.l.bf16 %v1540_v33  ;;  %v1550_v37 = vpop.permute.xlu1 %1549 }
  0x90   : > { %v1552_v40 = vunpack.i.h.bf16 %v1550_v37  ;;  %v1551_v41 = vunpack.i.l.bf16 %v1550_v37 }
  0x91   : > { %v320_v42 = vsel %vm316_vm0, %v1541_v36, %v1542_v35  ;;  %v319_v43 = vsel %vm316_vm0, %v1547_v34, %v1541_v36 }
  0x92   : > { %v1555_v44 = vpop.permute.xlu0 %1554  ;;  %v1401_v45 = vpack.c.bf16 %v320_v42, %v318_v38  ;;  %v1403_v46 = vpack.c.bf16 %v319_v43, %v317_v39  ;;  %v373_v52 = vsel %vm371_vm1, %v1551_v41, %v1552_v40 }
  0x93   : > { %v1557_v47 = vunpack.i.h.bf16 %v1555_v44  ;;  %v1556_v48 = vunpack.i.l.bf16 %v1555_v44  ;;  %v1560_v49 = vpop.permute.xlu1 %1559 }
  0x94   : > { %v1562_v50 = vunpack.i.h.bf16 %v1560_v49  ;;  %v1561_v51 = vunpack.i.l.bf16 %v1560_v49  ;;  %1402 = vmatprep.subr.bf16.mxu0 %v1401_v45 }
  0x95   : > { %1404 = vmatpush1.bf16.msra.mxu0 %v1403_v46  ;;  %v375_v53 = vsel %vm371_vm1, %v1556_v48, %v1557_v47 }
  0x96   : > { %v1565_v54 = vpop.permute.xlu0 %1564  ;;  %v1405_v55 = vpack.c.bf16 %v375_v53, %v373_v52  ;;  %v372_v56 = vsel %vm371_vm1, %v1561_v51, %v1551_v41  ;;  %v374_v57 = vsel %vm371_vm1, %v1562_v50, %v1556_v48 }
  0x97   : > { %v1567_v58 = vunpack.i.h.bf16 %v1565_v54  ;;  %v1566_v59 = vunpack.i.l.bf16 %v1565_v54  ;;  %v1570_v60 = vpop.permute.xlu1 %1569  ;;  %v1407_v61 = vpack.c.bf16 %v374_v57, %v372_v56 }
  0x98   : > { %v1572_v62 = vunpack.i.h.bf16 %v1570_v60  ;;  %v1571_v63 = vunpack.i.l.bf16 %v1570_v60  ;;  %1406 = vmatprep.subr.bf16.mxu0 %v1405_v55 }
  0x99   : > { %1408 = vmatpush1.bf16.msra.mxu0 %v1407_v61  ;;  %v422_v0 = vsel %vm420_vm2, %v1566_v59, %v1567_v58 }
  0x9a   : > { %v1575_v1 = vpop.permute.xlu0 %1574  ;;  %v424_v2 = vsel %vm420_vm2, %v1571_v63, %v1572_v62 }
  0x9b   : > { %v1577_v3 = vunpack.i.h.bf16 %v1575_v1  ;;  %v1576_v4 = vunpack.i.l.bf16 %v1575_v1  ;;  %v1580_v5 = vpop.permute.xlu1 %1579  ;;  %v1409_v6 = vpack.c.bf16 %v424_v2, %v422_v0 }
  0x9c   : > { %v1582_v7 = vunpack.i.h.bf16 %v1580_v5  ;;  %v1581_v8 = vunpack.i.l.bf16 %v1580_v5 }
  0x9d   : > { %1410 = vmatprep.subr.bf16.mxu0 %v1409_v6  ;;  %v421_v9 = vsel %vm420_vm2, %v1576_v4, %v1566_v59  ;;  %v423_v10 = vsel %vm420_vm2, %v1577_v3, %v1571_v63 }
  0x9e   : > { %v1585_v11 = vpop.permute.xlu0 %1584  ;;  %v1411_v18 = vpack.c.bf16 %v423_v10, %v421_v9  ;;  %v471_v25 = vsel %vm469_vm3, %v1581_v8, %v1582_v7 }
  0x9f   : > { %v1587_v19 = vunpack.i.h.bf16 %v1585_v11  ;;  %v1586_v20 = vunpack.i.l.bf16 %v1585_v11  ;;  %v1590_v21 = vpop.permute.xlu1 %1589 }
  0xa0   : > { %v1592_v22 = vunpack.i.h.bf16 %v1590_v21  ;;  %v1591_v23 = vunpack.i.l.bf16 %v1590_v21  ;;  %1412 = vmatpush1.bf16.msra.mxu0 %v1411_v18 }
  0xa1   : > { %v473_v26 = vsel %vm469_vm3, %v1586_v20, %v1587_v19 }
  0xa2   : > { %v1595_v27 = vpop.permute.xlu0 %1594  ;;  %v1413_v28 = vpack.c.bf16 %v473_v26, %v471_v25  ;;  %v470_v29 = vsel %vm469_vm3, %v1591_v23, %v1581_v8  ;;  %v472_v30 = vsel %vm469_vm3, %v1592_v22, %v1586_v20 }
  0xa3   : > { %v1597_v31 = vunpack.i.h.bf16 %v1595_v27  ;;  %v1596_v32 = vunpack.i.l.bf16 %v1595_v27  ;;  %v1600_v33 = vpop.permute.xlu1 %1599  ;;  %v1415_v34 = vpack.c.bf16 %v472_v30, %v470_v29 }
  0xa4   : > { %v1602_v35 = vunpack.i.h.bf16 %v1600_v33  ;;  %v1601_v36 = vunpack.i.l.bf16 %v1600_v33  ;;  %1414 = vmatprep.subr.bf16.mxu0 %v1413_v28 }
  0xa5   : > { %1416 = vmatpush1.bf16.msra.mxu0 %v1415_v34  ;;  %v520_v37 = vsel %vm518_vm4, %v1596_v32, %v1597_v31 }
  0xa6   : > { %v1605_v38 = vpop.permute.xlu0 %1604  ;;  %v522_v39 = vsel %vm518_vm4, %v1601_v36, %v1602_v35 }
  0xa7   : > { %v1607_v40 = vunpack.i.h.bf16 %v1605_v38  ;;  %v1606_v41 = vunpack.i.l.bf16 %v1605_v38  ;;  %v1610_v42 = vpop.permute.xlu1 %1609  ;;  %v1417_v43 = vpack.c.bf16 %v522_v39, %v520_v37 }
  0xa8   : > { %v1612_v44 = vunpack.i.h.bf16 %v1610_v42  ;;  %v1611_v45 = vunpack.i.l.bf16 %v1610_v42 }
  0xa9   : > { %1418 = vmatprep.subr.bf16.mxu0 %v1417_v43  ;;  %v519_v46 = vsel %vm518_vm4, %v1606_v41, %v1596_v32  ;;  %v521_v47 = vsel %vm518_vm4, %v1607_v40, %v1601_v36 }
  0xaa   : > { %v1615_v48 = vpop.permute.xlu0 %1614  ;;  %v1419_v49 = vpack.c.bf16 %v521_v47, %v519_v46  ;;  %v569_v55 = vsel %vm567_vm5, %v1611_v45, %v1612_v44 }
  0xab   : > { %v1617_v50 = vunpack.i.h.bf16 %v1615_v48  ;;  %v1616_v51 = vunpack.i.l.bf16 %v1615_v48  ;;  %v1620_v52 = vpop.permute.xlu1 %1619 }
  0xac   : > { %v1622_v53 = vunpack.i.h.bf16 %v1620_v52  ;;  %v1621_v54 = vunpack.i.l.bf16 %v1620_v52  ;;  %1420 = vmatpush1.bf16.msra.mxu0 %v1419_v49 }
  0xad   : > { %v571_v56 = vsel %vm567_vm5, %v1616_v51, %v1617_v50 }
  0xae   : > { %v1625_v57 = vpop.permute.xlu0 %1624  ;;  %v1421_v58 = vpack.c.bf16 %v571_v56, %v569_v55  ;;  %v568_v59 = vsel %vm567_vm5, %v1621_v54, %v1611_v45  ;;  %v570_v60 = vsel %vm567_vm5, %v1622_v53, %v1616_v51 }
  0xaf   : > { %v1627_v61 = vunpack.i.h.bf16 %v1625_v57  ;;  %v1626_v62 = vunpack.i.l.bf16 %v1625_v57  ;;  %v1630_v63 = vpop.permute.xlu1 %1629  ;;  %v1423_v0 = vpack.c.bf16 %v570_v60, %v568_v59 }
  0xb0   : > { %v1632_v1 = vunpack.i.h.bf16 %v1630_v63  ;;  %v1631_v2 = vunpack.i.l.bf16 %v1630_v63  ;;  %1422 = vmatprep.subr.bf16.mxu0 %v1421_v58 }
  0xb1   : > { %1424 = vmatpush1.bf16.msra.mxu0 %v1423_v0  ;;  %v618_v3 = vsel %vm616_vm6, %v1626_v62, %v1627_v61 }
  0xb2   : > { %v1635_v4 = vpop.permute.xlu0 %1634  ;;  %v620_v5 = vsel %vm616_vm6, %v1631_v2, %v1632_v1 }
  0xb3   : > { %v1637_v6 = vunpack.i.h.bf16 %v1635_v4  ;;  %v1636_v7 = vunpack.i.l.bf16 %v1635_v4  ;;  %v1640_v8 = vpop.permute.xlu1 %1639  ;;  %v1425_v9 = vpack.c.bf16 %v620_v5, %v618_v3 }
  0xb4   : > { %v1642_v10 = vunpack.i.h.bf16 %v1640_v8  ;;  %v1641_v11 = vunpack.i.l.bf16 %v1640_v8 }
  0xb5   : > { %1426 = vmatprep.subr.bf16.mxu0 %v1425_v9  ;;  %v617_v18 = vsel %vm616_vm6, %v1636_v7, %v1626_v62  ;;  %v619_v19 = vsel %vm616_vm6, %v1637_v6, %v1631_v2 }
  0xb6   : > { %v1645_v20 = vpop.permute.xlu0 %1644  ;;  %v1427_v21 = vpack.c.bf16 %v619_v19, %v617_v18  ;;  %v667_v28 = vsel %vm665_vm7, %v1641_v11, %v1642_v10 }
  0xb7   : > { %v1647_v22 = vunpack.i.h.bf16 %v1645_v20  ;;  %v1646_v23 = vunpack.i.l.bf16 %v1645_v20  ;;  %v1650_v25 = vpop.permute.xlu1 %1649 }
  0xb8   : > { %v1652_v26 = vunpack.i.h.bf16 %v1650_v25  ;;  %v1651_v27 = vunpack.i.l.bf16 %v1650_v25  ;;  %1428 = vmatpush1.bf16.msra.mxu0 %v1427_v21 }
  0xb9   : > { %v669_v29 = vsel %vm665_vm7, %v1646_v23, %v1647_v22 }
  0xba   : > { %v1655_v30 = vpop.permute.xlu0 %1654  ;;  %v1429_v31 = vpack.c.bf16 %v669_v29, %v667_v28  ;;  %v666_v32 = vsel %vm665_vm7, %v1651_v27, %v1641_v11  ;;  %v668_v33 = vsel %vm665_vm7, %v1652_v26, %v1646_v23 }
  0xbb   : > { %v1657_v34 = vunpack.i.h.bf16 %v1655_v30  ;;  %v1656_v35 = vunpack.i.l.bf16 %v1655_v30  ;;  %v1660_v36 = vpop.permute.xlu1 %1659  ;;  %v1431_v37 = vpack.c.bf16 %v668_v33, %v666_v32 }
  0xbc   : > { %v1662_v38 = vunpack.i.h.bf16 %v1660_v36  ;;  %v1661_v39 = vunpack.i.l.bf16 %v1660_v36  ;;  %1430 = vmatprep.subr.bf16.mxu0 %v1429_v31 }
  0xbd   : > { %1432 = vmatpush1.bf16.msra.mxu0 %v1431_v37  ;;  %v348_v40 = vsel %vm316_vm0, %v1656_v35, %v1657_v34 }
  0xbe   : > { %v1665_v41 = vpop.permute.xlu0 %1664  ;;  %1434 = vmatprep.subr.bf16.mxu0 %v1433_v16  ;;  %v350_v42 = vsel %vm316_vm0, %v1661_v39, %v1662_v38 }
  0xbf   : > { %v1667_v43 = vunpack.i.h.bf16 %v1665_v41  ;;  %v1666_v44 = vunpack.i.l.bf16 %v1665_v41  ;;  %v1670_v45 = vpop.permute.xlu1 %1669  ;;  %v1437_v46 = vpack.c.bf16 %v350_v42, %v348_v40 }
  0xc0   : > { %v1672_v47 = vunpack.i.h.bf16 %v1670_v45  ;;  %v1671_v48 = vunpack.i.l.bf16 %v1670_v45 }
  0xc1   : > { %1436 = vmatpush1.bf16.msra.mxu0 %v1435_v17  ;;  %v347_v49 = vsel %vm316_vm0, %v1666_v44, %v1656_v35  ;;  %v349_v50 = vsel %vm316_vm0, %v1667_v43, %v1661_v39 }
  0xc2   : > { %v1675_v51 = vpop.permute.xlu0 %1674  ;;  %1438 = vmatprep.subr.bf16.mxu0 %v1437_v46  ;;  %v1439_v12 = vpack.c.bf16 %v349_v50, %v347_v49  ;;  %v397_v55 = vsel %vm371_vm1, %v1671_v48, %v1672_v47 }
  0xc3   : > { %v1677_v13 = vunpack.i.h.bf16 %v1675_v51  ;;  %v1676_v16 = vunpack.i.l.bf16 %v1675_v51  ;;  %v1680_v52 = vpop.permute.xlu1 %1679 }
  0xc4   : > { %v1682_v53 = vunpack.i.h.bf16 %v1680_v52  ;;  %v1681_v54 = vunpack.i.l.bf16 %v1680_v52 }
  0xc5   : > { %1440 = vmatpush1.bf16.msra.mxu0 %v1439_v12  ;;  %v399_v56 = vsel %vm371_vm1, %v1676_v16, %v1677_v13 }
  0xc6   : > { %v1685_v57 = vpop.permute.xlu0 %1684  ;;  %v1441_v14 = vpack.c.bf16 %v399_v56, %v397_v55  ;;  %v396_v15 = vsel %vm371_vm1, %v1681_v54, %v1671_v48  ;;  %v398_v17 = vsel %vm371_vm1, %v1682_v53, %v1676_v16 }
  0xc7   : > { %v1687_v58 = vunpack.i.h.bf16 %v1685_v57  ;;  %v1686_v59 = vunpack.i.l.bf16 %v1685_v57  ;;  %v1690_v60 = vpop.permute.xlu1 %1689  ;;  %v1443_v61 = vpack.c.bf16 %v398_v17, %v396_v15 }
  0xc8   : > { %v1692_v62 = vunpack.i.h.bf16 %v1690_v60  ;;  %v1691_v63 = vunpack.i.l.bf16 %v1690_v60  ;;  %1442 = vmatprep.subr.bf16.mxu0 %v1441_v14 }
  0xc9   : > { %1444 = vmatpush1.bf16.msra.mxu0 %v1443_v61  ;;  %v446_v0 = vsel %vm420_vm2, %v1686_v59, %v1687_v58 }
  0xca   : > { %v1695_v1 = vpop.permute.xlu0 %1694  ;;  %v448_v2 = vsel %vm420_vm2, %v1691_v63, %v1692_v62 }
  0xcb   : > { %v1697_v3 = vunpack.i.h.bf16 %v1695_v1  ;;  %v1696_v4 = vunpack.i.l.bf16 %v1695_v1  ;;  %v1700_v5 = vpop.permute.xlu1 %1699  ;;  %v1445_v6 = vpack.c.bf16 %v448_v2, %v446_v0 }
  0xcc   : > { %v1702_v7 = vunpack.i.h.bf16 %v1700_v5  ;;  %v1701_v8 = vunpack.i.l.bf16 %v1700_v5 }
  0xcd   : > { %1446 = vmatprep.subr.bf16.mxu0 %v1445_v6  ;;  %v445_v9 = vsel %vm420_vm2, %v1696_v4, %v1686_v59  ;;  %v447_v10 = vsel %vm420_vm2, %v1697_v3, %v1691_v63 }
  0xce   : > { %v1705_v11 = vpop.permute.xlu0 %1704  ;;  %v1447_v18 = vpack.c.bf16 %v447_v10, %v445_v9  ;;  %v495_v25 = vsel %vm469_vm3, %v1701_v8, %v1702_v7 }
  0xcf   : > { %v1707_v19 = vunpack.i.h.bf16 %v1705_v11  ;;  %v1706_v20 = vunpack.i.l.bf16 %v1705_v11  ;;  %v1710_v21 = vpop.permute.xlu1 %1709 }
  0xd0   : > { %v1712_v22 = vunpack.i.h.bf16 %v1710_v21  ;;  %v1711_v23 = vunpack.i.l.bf16 %v1710_v21  ;;  %1448 = vmatpush1.bf16.msra.mxu0 %v1447_v18  ;;  %v702_v21 = vld [vmem:[%s2229_s2] sm:$0xff] }
  0xd1   : > { %v497_v26 = vsel %vm469_vm3, %v1706_v20, %v1707_v19 }
  0xd2   : > { %v1715_v27 = vpop.permute.xlu0 %1714  ;;  %v1449_v28 = vpack.c.bf16 %v497_v26, %v495_v25  ;;  %v494_v29 = vsel %vm469_vm3, %v1711_v23, %v1701_v8  ;;  %v496_v30 = vsel %vm469_vm3, %v1712_v22, %v1706_v20  ;;  %v706_v25 = vld [vmem:[%s2229_s2 + $0x20] sm:$0xff] }
  0xd3   : > { %v1717_v31 = vunpack.i.h.bf16 %v1715_v27  ;;  %v1716_v32 = vunpack.i.l.bf16 %v1715_v27  ;;  %v1720_v33 = vpop.permute.xlu1 %1719  ;;  %v1451_v34 = vpack.c.bf16 %v496_v30, %v494_v29  ;;  %v705_v30 = vld [vmem:[%s2229_s2 + $0x18] sm:$0xff] }
  0xd4   : > { %v1722_v35 = vunpack.i.h.bf16 %v1720_v33  ;;  %v1721_v36 = vunpack.i.l.bf16 %v1720_v33  ;;  %1450 = vmatprep.subr.bf16.mxu0 %v1449_v28 }
  0xd5   : > { %1452 = vmatpush1.bf16.msra.mxu0 %v1451_v34  ;;  %v544_v37 = vsel %vm518_vm4, %v1716_v32, %v1717_v31  ;;  %v704_v31 = vld [vmem:[%s2229_s2 + $0x10] sm:$0xff] }
  0xd6   : > { %v1725_v38 = vpop.permute.xlu0 %1724  ;;  %v546_v39 = vsel %vm518_vm4, %v1721_v36, %v1722_v35 }
  0xd7   : > { %v1727_v40 = vunpack.i.h.bf16 %v1725_v38  ;;  %v1726_v41 = vunpack.i.l.bf16 %v1725_v38  ;;  %v1730_v42 = vpop.permute.xlu1 %1729  ;;  %v1453_v43 = vpack.c.bf16 %v546_v39, %v544_v37 }
  0xd8   : > { %v1732_v44 = vunpack.i.h.bf16 %v1730_v42  ;;  %v1731_v45 = vunpack.i.l.bf16 %v1730_v42 }
  0xd9   : > { %1454 = vmatprep.subr.bf16.mxu0 %v1453_v43  ;;  %v543_v46 = vsel %vm518_vm4, %v1726_v41, %v1716_v32  ;;  %v545_v47 = vsel %vm518_vm4, %v1727_v40, %v1721_v36  ;;  %v707_v32 = vld [vmem:[%s2229_s2 + $0x28] sm:$0xff] }
  0xda   : > { %v1735_v48 = vpop.permute.xlu0 %1734  ;;  %v1455_v49 = vpack.c.bf16 %v545_v47, %v543_v46  ;;  %v642_v52 = vsel %vm616_vm6, %v1731_v45, %v1732_v44  ;;  %v963_v47 = vld [vmem:[#allocation3 + $0x10] sm:$0xff] }
  0xdb   : > { %v1737_v50 = vunpack.i.h.bf16 %v1735_v48  ;;  %v1736_v51 = vunpack.i.l.bf16 %v1735_v48  ;;  %v1740_v12 = vpop.permute.xlu1 %1739 }
  0xdc   : > { %v1742_v13 = vunpack.i.h.bf16 %v1740_v12  ;;  %v1741_v16 = vunpack.i.l.bf16 %v1740_v12  ;;  %1456 = vmatpush1.bf16.msra.mxu0 %v1455_v49 }
  0xdd   : > { %v644_v53 = vsel %vm616_vm6, %v1736_v51, %v1737_v50 }
  0xde   : > { %v1745_v54 = vpop.permute.xlu0 %1744  ;;  %v1461_v55 = vpack.c.bf16 %v644_v53, %v642_v52  ;;  %v641_v56 = vsel %vm616_vm6, %v1741_v16, %v1731_v45  ;;  %v643_v57 = vsel %vm616_vm6, %v1742_v13, %v1736_v51 }
  0xdf   : > { %v1747_v14 = vunpack.i.h.bf16 %v1745_v54  ;;  %v1746_v15 = vunpack.i.l.bf16 %v1745_v54  ;;  %v1750_v17 = vpop.permute.xlu1 %1749  ;;  %v1463_v58 = vpack.c.bf16 %v643_v57, %v641_v56  ;;  %v966_v56 = vld [vmem:[#allocation3 + $0x28] sm:$0xff] }
  0xe0   : > { %v1752_v59 = vunpack.i.h.bf16 %v1750_v17  ;;  %v1751_v60 = vunpack.i.l.bf16 %v1750_v17  ;;  %1462 = vmatprep.subr.bf16.mxu1 %v1461_v55  ;;  %v1209_v17 = vld [vmem:[%s2232_s5] sm:$0xff] }
  0xe1   : > { %1464 = vmatpush1.bf16.msra.mxu1 %v1463_v58  ;;  %v593_v61 = vsel %vm567_vm5, %v1746_v15, %v1747_v14  ;;  %v1170_v14 = vld [vmem:[%s2231_s4 + $0x8] sm:$0xff] }
  0xe2   : > { %v1755_v62 = vpop.permute.xlu0 %1754  ;;  %v595_v63 = vsel %vm567_vm5, %v1751_v60, %v1752_v59 }
  0xe3   : > { %v1757_v0 = vunpack.i.h.bf16 %v1755_v62  ;;  %v1756_v1 = vunpack.i.l.bf16 %v1755_v62  ;;  %v1760_v2 = vpop.permute.xlu1 %1759  ;;  %v1457_v3 = vpack.c.bf16 %v595_v63, %v593_v61 }
  0xe4   : > { %v1762_v4 = vunpack.i.h.bf16 %v1760_v2  ;;  %v1761_v5 = vunpack.i.l.bf16 %v1760_v2 }
  0xe5   : > { %1458 = vmatprep.subr.bf16.mxu0 %v1457_v3  ;;  %v592_v6 = vsel %vm567_vm5, %v1756_v1, %v1746_v15  ;;  %v594_v7 = vsel %vm567_vm5, %v1757_v0, %v1751_v60  ;;  %v1210_v15 = vld [vmem:[%s2232_s5 + $0x8] sm:$0xff] }
  0xe6   : > { %v1765_v8 = vpop.permute.xlu0 %1764  ;;  %v1459_v9 = vpack.c.bf16 %v594_v7, %v592_v6  ;;  %v691_v22 = vsel %vm665_vm7, %v1761_v5, %v1762_v4 }
  0xe7   : > { %v1767_v10 = vunpack.i.h.bf16 %v1765_v8  ;;  %v1766_v11 = vunpack.i.l.bf16 %v1765_v8  ;;  %v1770_v18 = vpop.permute.xlu1 %1769 }
  0xe8   : > { %v1772_v19 = vunpack.i.h.bf16 %v1770_v18  ;;  %v1771_v20 = vunpack.i.l.bf16 %v1770_v18  ;;  %1460 = vmatpush1.bf16.msra.mxu0 %v1459_v9 }
  0xe9   : > { %v693_v23 = vsel %vm665_vm7, %v1766_v11, %v1767_v10 }
  0xea   : > { %v1465_v26 = vpack.c.bf16 %v693_v23, %v691_v22  ;;  %v690_v27 = vsel %vm665_vm7, %v1771_v20, %v1761_v5  ;;  %v692_v28 = vsel %vm665_vm7, %v1772_v19, %v1766_v11 }
  0xeb   : > { %864 = vmatmul.mubr.f32.vlgmr.msra.gmra.mrb[0].mxu0 %v702_v21  ;;  %v1467_v29 = vpack.c.bf16 %v692_v28, %v690_v27 }
  0xec   : > { %1466 = vmatprep.subr.bf16.mxu1 %v1465_v26  ;;  %869 = vmatprep.mubr.f32.mxu0 %v706_v25 }
  0xed   : > { %1468 = vmatpush1.bf16.msra.mxu1 %v1467_v29 }
  0xef   : > { %870 = vmatmul.mubr.f32.gmra.mrb[2].mxu0 %v705_v30 }
  0xf0   : > { %1390 = vmatmul.mubr.msk.f32.vlgmr.msra.gmra.mrb[0].mxu1 %vm792_vm8, %v704_v31 }
  0xf1   : > { %946 = vmatprep.mubr.f32.mxu1 %v1912_v24 }
  0xf4   : > { %1391 = vmatmul.mubr.msk.f32.gmra.mrb[2].mxu1 %vm792_vm8, %v707_v32 }
  0xf5   : > { %1392 = vmatprep.mubr.msk.f32.mxu1 %vm1221_vm9, %v1170_v14 }
  0xf7   : > { %v785_v33 = vpop.permute.xlu0 %784 }
  0xf8   : > { %v790_v38 = vpop.permute.xlu1 %789 }
 0x1be   : > { %v865_v34 = vpop.f32.mrb[0].mxu0 }
 0x1bf   : > { %v867_v35 = vpop.f32.mrb[1].mxu0  ;;  %v866_v36 = vadd.f32 %v865_v34, %v785_v33 }
 0x1c0   : > { %v868_v37 = vadd.f32 %v867_v35, %v785_v33 }
 0x1c2   : > { %v871_v39 = vpop.f32.mrb[2].mxu0 }
 0x1c3   : > { %v942_v40 = vpop.f32.mrb[0].mxu1  ;;  %v873_v41 = vpop.f32.mrb[3].mxu0  ;;  %v872_v44 = vadd.f32 %v871_v39, %v790_v38 }
 0x1c4   : > { %v943_v42 = vadd.f32 %v942_v40, %v866_v36  ;;  %v944_v43 = vpop.f32.mrb[1].mxu1  ;;  %v874_v46 = vadd.f32 %v873_v41, %v790_v38 }
 0x1c5   : > { %v945_v45 = vadd.f32 %v944_v43, %v868_v37 }
 0x1c6   : > { %v953_v24 = vmax.f32 %v943_v42, 0.0 }
 0x1c7   : > { %v954_v48 = vmax.f32 %v945_v45, 0.0  ;;  %v948_v49 = vpop.f32.mrb[2].mxu1 }
 0x1c8   : > { %v949_v50 = vadd.f32 %v948_v49, %v872_v44  ;;  %v950_v51 = vpop.f32.mrb[3].mxu1 }
 0x1c9   : > { %v951_v12 = vadd.f32 %v950_v51, %v874_v46  ;;  %v1780_v13 = vpack.i.bf16 %v963_v47, %v954_v48 }
 0x1ca   : > { %v955_v16 = vmax.f32 %v949_v50, 0.0 }
 0x1cb   : > { %v956_v52 = vmax.f32 %v951_v12, 0.0  ;;  %1781 = vrot.lane.b32.xlu0 %v1780_v13, %s1905_s12  ;;  %1776 = vrot.lane.b32.xlu1 %v1780_v13, %s1904_s11 }
 0x1cc   : > { %v1471_v53 = vpack.c.bf16 %v955_v16, %v953_v24  ;;  %v1800_v54 = vpack.i.bf16 %v955_v16, %v953_v24 }
 0x1cd   : > { %v1469_v55 = vpack.c.bf16 %v956_v52, %v954_v48  ;;  %v1810_v57 = vpack.i.bf16 %v966_v56, %v956_v52 }
 0x1cf   : > { %1791 = vrot.lane.b32.xlu0 %v1780_v13, %s1907_s14  ;;  %1786 = vrot.lane.b32.xlu1 %v1780_v13, %s1906_s13 }
 0x1d0   : > { %1470 = vmatprep.subr.bf16.mxu1 %v1469_v55 }
 0x1d1   : > { %1472 = vmatpush1.bf16.msra.mxu1 %v1471_v53 }
 0x1d3   : > { %1801 = vrot.lane.b32.xlu0 %v1800_v54, %s1905_s12  ;;  %1796 = vrot.lane.b32.xlu1 %v1800_v54, %s1904_s11 }
 0x1d7   : > { %1811 = vrot.lane.b32.xlu0 %v1810_v57, %s1904_s11  ;;  %1806 = vrot.lane.b32.xlu1 %v1800_v54, %s1906_s13 }
 0x1db   : > { %1816 = vrot.lane.b32.xlu0 %v1800_v54, %s1907_s14  ;;  %1821 = vrot.lane.b32.xlu1 %v1780_v13, %s1908_s15 }
 0x1df   : > { %1836 = vrot.lane.b32.xlu0 %v1810_v57, %s1906_s13  ;;  %1826 = vrot.lane.b32.xlu1 %v1810_v57, %s1905_s12 }
 0x1e3   : > { %1841 = vrot.lane.b32.xlu0 %v1780_v13, %s1909_s16  ;;  %1831 = vrot.lane.b32.xlu1 %v1800_v54, %s1908_s15 }
 0x1e7   : > { %1851 = vrot.lane.b32.xlu0 %v1810_v57, %s1908_s15  ;;  %1846 = vrot.lane.b32.xlu1 %v1810_v57, %s1907_s14 }
 0x1eb   : > { %1856 = vrot.lane.b32.xlu0 %v1800_v54, %s1909_s16  ;;  %1861 = vrot.lane.b32.xlu1 %v1780_v13, %s1910_s17 }
 0x1ef   : > { %1876 = vrot.lane.b32.xlu0 %v1810_v57, %s1910_s17  ;;  %1866 = vrot.lane.b32.xlu1 %v1810_v57, %s1909_s16 }
 0x1f3   : > { %1881 = vrot.lane.b32.xlu0 %v1780_v13, %s1911_s18  ;;  %1871 = vrot.lane.b32.xlu1 %v1800_v54, %s1910_s17 }
 0x1f7   : > { %1891 = vrot.lane.b32.xlu0 %v1800_v54, %s1911_s18  ;;  %1886 = vrot.lane.b32.xlu1 %v1810_v57, %s1911_s18 }
 0x1fb   : > { %1218 = vperm.xlu0 %1773, %v1210_v15   ;;  %1213 = vperm.xlu1 %1774, %v1209_v17  }
 0x23d   : > { %v1782_v58 = vpop.permute.xlu0 %1781  ;;  %v1777_v59 = vpop.permute.xlu1 %1776 }
 0x23e   : > { %v1779_v0 = vunpack.i.h.bf16 %v1777_v59  ;;  %v1778_v1 = vunpack.i.l.bf16 %v1777_v59  ;;  %v1784_v22 = vunpack.i.h.bf16 %v1782_v58  ;;  %v1783_v23 = vunpack.i.l.bf16 %v1782_v58 }
 0x240   : > { %v990_v10 = vsel %vm316_vm0, %v1778_v1, %v1779_v0  ;;  %v1014_v37 = vsel %vm371_vm1, %v1783_v23, %v1784_v22 }
 0x241   : > { %v2170_v60 = vpop.permute.xlu0 %1791  ;;  %v1787_v61 = vpop.permute.xlu1 %1786 }
 0x242   : > { %v1789_v26 = vunpack.i.h.bf16 %v1787_v61  ;;  %v1788_v27 = vunpack.i.l.bf16 %v1787_v61  ;;  %v1794_v47 = vunpack.i.h.bf16 %v2170_v60  ;;  %v1793_v48 = vunpack.i.l.bf16 %v2170_v60 }
 0x244   : > { %v1038_v24 = vsel %vm420_vm2, %v1788_v27, %v1789_v26  ;;  %v1062_v58 = vsel %vm469_vm3, %v1793_v48, %v1794_v47 }
 0x245   : > { %v1802_v62 = vpop.permute.xlu0 %1801  ;;  %v1797_v63 = vpop.permute.xlu1 %1796 }
 0x246   : > { %v1798_v2 = vunpack.i.l.bf16 %v1797_v63  ;;  %v1799_v5 = vunpack.i.h.bf16 %v1797_v63  ;;  %v1803_v25 = vunpack.i.l.bf16 %v1802_v62  ;;  %v1804_v28 = vunpack.i.h.bf16 %v1802_v62 }
 0x248   : > { %v989_v8 = vsel %vm316_vm0, %v1798_v2, %v1778_v1  ;;  %v1013_v35 = vsel %vm371_vm1, %v1803_v25, %v1783_v23 }
 0x249   : > { %v1812_v3 = vpop.permute.xlu0 %1811  ;;  %v1807_v4 = vpop.permute.xlu1 %1806 }
 0x24a   : > { %v1814_v6 = vunpack.i.h.bf16 %v1812_v3  ;;  %v1813_v7 = vunpack.i.l.bf16 %v1812_v3  ;;  %v1809_v36 = vunpack.i.h.bf16 %v1807_v4  ;;  %v1808_v38 = vunpack.i.l.bf16 %v1807_v4 }
 0x24c   : > { %v991_v9 = vsel %vm316_vm0, %v1799_v5, %v1813_v7  ;;  %v992_v11 = vsel %vm316_vm0, %v1813_v7, %v1814_v6  ;;  %v1037_v51 = vsel %vm420_vm2, %v1808_v38, %v1788_v27 }
 0x24d   : > { %v1475_v18 = vpack.c.bf16 %v991_v9, %v989_v8  ;;  %v1817_v19 = vpop.permute.xlu0 %1816  ;;  %v2176_v20 = vpop.permute.xlu1 %1821  ;;  %v1473_v21 = vpack.c.bf16 %v992_v11, %v990_v10 }
 0x24e   : > { %v1818_v49 = vunpack.i.l.bf16 %v1817_v19  ;;  %v1819_v12 = vunpack.i.h.bf16 %v1817_v19  ;;  %v1824_v13 = vunpack.i.h.bf16 %v2176_v20  ;;  %v1823_v16 = vunpack.i.l.bf16 %v2176_v20 }
 0x24f   : > { %1474 = vmatprep.subr.bf16.mxu1 %v1473_v21 }
 0x250   : > { %1476 = vmatpush1.bf16.msra.mxu1 %v1475_v18  ;;  %v1061_v15 = vsel %vm469_vm3, %v1818_v49, %v1793_v48  ;;  %v1086_v4 = vsel %vm518_vm4, %v1823_v16, %v1824_v13 }
 0x251   : > { %v1837_v29 = vpop.permute.xlu0 %1836  ;;  %v1827_v30 = vpop.permute.xlu1 %1826 }
 0x252   : > { %v1839_v31 = vunpack.i.h.bf16 %v1837_v29  ;;  %v1838_v32 = vunpack.i.l.bf16 %v1837_v29  ;;  %v1829_v33 = vunpack.i.h.bf16 %v1827_v30  ;;  %v1828_v34 = vunpack.i.l.bf16 %v1827_v30 }
 0x254   : > { %v1015_v39 = vsel %vm371_vm1, %v1804_v28, %v1828_v34  ;;  %v1016_v40 = vsel %vm371_vm1, %v1828_v34, %v1829_v33  ;;  %v1040_v41 = vsel %vm420_vm2, %v1838_v32, %v1839_v31  ;;  %v1039_v46 = vsel %vm420_vm2, %v1809_v36, %v1838_v32 }
 0x255   : > { %v1479_v42 = vpack.c.bf16 %v1015_v39, %v1013_v35  ;;  %v1842_v43 = vpop.permute.xlu0 %1841  ;;  %v1832_v44 = vpop.permute.xlu1 %1831  ;;  %v1477_v45 = vpack.c.bf16 %v1016_v40, %v1014_v37  ;;  %v1481_v50 = vpack.c.bf16 %v1040_v41, %v1038_v24  ;;  %v1483_v52 = vpack.c.bf16 %v1039_v46, %v1037_v51 }
 0x256   : > { %v1834_v17 = vunpack.i.h.bf16 %v1832_v44  ;;  %v1833_v59 = vunpack.i.l.bf16 %v1832_v44  ;;  %v1844_v5 = vunpack.i.h.bf16 %v1842_v43  ;;  %v1843_v6 = vunpack.i.l.bf16 %v1842_v43 }
 0x257   : > { %1478 = vmatprep.subr.bf16.mxu1 %v1477_v45 }
 0x258   : > { %1480 = vmatpush1.bf16.msra.mxu1 %v1479_v42  ;;  %v1085_v8 = vsel %vm518_vm4, %v1833_v59, %v1823_v16  ;;  %v1110_v27 = vsel %vm567_vm5, %v1843_v6, %v1844_v5 }
 0x259   : > { %v1852_v53 = vpop.permute.xlu0 %1851  ;;  %v1847_v54 = vpop.permute.xlu1 %1846  ;;  %1482 = vmatprep.subr.bf16.mxu1 %v1481_v50 }
 0x25a   : > { %v1854_v55 = vunpack.i.h.bf16 %v1852_v53  ;;  %v1853_v56 = vunpack.i.l.bf16 %v1852_v53  ;;  %v1849_v57 = vunpack.i.h.bf16 %v1847_v54  ;;  %v1848_v14 = vunpack.i.l.bf16 %v1847_v54  ;;  %v1169_v53 = vld [vmem:[%s2231_s4] sm:$0xff]  ;;  %v1172_v54 = vld [vmem:[%s2231_s4 + $0x18] sm:$0xff] }
 0x25c   : > { %v1063_v60 = vsel %vm469_vm3, %v1819_v12, %v1848_v14  ;;  %1484 = vmatpush1.bf16.msra.mxu1 %v1483_v52  ;;  %v1064_v61 = vsel %vm469_vm3, %v1848_v14, %v1849_v57  ;;  %v1088_v62 = vsel %vm518_vm4, %v1853_v56, %v1854_v55  ;;  %v1087_v3 = vsel %vm518_vm4, %v1834_v17, %v1853_v56  ;;  %v1171_v55 = vld [vmem:[%s2231_s4 + $0x10] sm:$0xff] }
 0x25d   : > { %v1487_v63 = vpack.c.bf16 %v1063_v60, %v1061_v15  ;;  %v1857_v0 = vpop.permute.xlu0 %1856  ;;  %v1862_v1 = vpop.permute.xlu1 %1861  ;;  %v1485_v2 = vpack.c.bf16 %v1064_v61, %v1062_v58  ;;  %v1489_v7 = vpack.c.bf16 %v1088_v62, %v1086_v4  ;;  %v1491_v10 = vpack.c.bf16 %v1087_v3, %v1085_v8 }
 0x25e   : > { %v1858_v9 = vunpack.i.l.bf16 %v1857_v0  ;;  %v1859_v11 = vunpack.i.h.bf16 %v1857_v0  ;;  %v1864_v18 = vunpack.i.h.bf16 %v1862_v1  ;;  %v1863_v19 = vunpack.i.l.bf16 %v1862_v1 }
 0x25f   : > { %1486 = vmatprep.subr.bf16.mxu1 %v1485_v2 }
 0x260   : > { %1488 = vmatpush1.bf16.msra.mxu1 %v1487_v63  ;;  %v1109_v28 = vsel %vm567_vm5, %v1858_v9, %v1843_v6  ;;  %v1134_v38 = vsel %vm616_vm6, %v1863_v19, %v1864_v18 }
 0x261   : > { %v1877_v20 = vpop.permute.xlu0 %1876  ;;  %v1867_v21 = vpop.permute.xlu1 %1866  ;;  %1490 = vmatprep.subr.bf16.mxu1 %v1489_v7 }
 0x262   : > { %v1879_v22 = vunpack.i.h.bf16 %v1877_v20  ;;  %v1878_v23 = vunpack.i.l.bf16 %v1877_v20  ;;  %v1869_v25 = vunpack.i.h.bf16 %v1867_v21  ;;  %v1868_v26 = vunpack.i.l.bf16 %v1867_v21 }
 0x264   : > { %v1111_v29 = vsel %vm567_vm5, %v1859_v11, %v1868_v26  ;;  %1492 = vmatpush1.bf16.msra.mxu1 %v1491_v10  ;;  %v1112_v30 = vsel %vm567_vm5, %v1868_v26, %v1869_v25  ;;  %v1136_v31 = vsel %vm616_vm6, %v1878_v23, %v1879_v22 }
 0x265   : > { %v1495_v32 = vpack.c.bf16 %v1111_v29, %v1109_v28  ;;  %v1882_v33 = vpop.permute.xlu0 %1881  ;;  %v1872_v34 = vpop.permute.xlu1 %1871  ;;  %v1493_v35 = vpack.c.bf16 %v1112_v30, %v1110_v27  ;;  %v1497_v39 = vpack.c.bf16 %v1136_v31, %v1134_v38 }
 0x266   : > { %v1874_v36 = vunpack.i.h.bf16 %v1872_v34  ;;  %v1873_v37 = vunpack.i.l.bf16 %v1872_v34  ;;  %v1884_v40 = vunpack.i.h.bf16 %v1882_v33  ;;  %v1883_v41 = vunpack.i.l.bf16 %v1882_v33 }
 0x267   : > { %1494 = vmatprep.subr.bf16.mxu1 %v1493_v35 }
 0x268   : > { %v1135_v42 = vsel %vm616_vm6, %v1874_v36, %v1878_v23  ;;  %v1133_v43 = vsel %vm616_vm6, %v1873_v37, %v1863_v19  ;;  %1496 = vmatpush1.bf16.msra.mxu1 %v1495_v32  ;;  %v1158_v12 = vsel %vm665_vm7, %v1883_v41, %v1884_v40 }
 0x269   : > { %v1499_v44 = vpack.c.bf16 %v1135_v42, %v1133_v43  ;;  %v1892_v45 = vpop.permute.xlu0 %1891  ;;  %v1887_v46 = vpop.permute.xlu1 %1886  ;;  %1498 = vmatprep.subr.bf16.mxu1 %v1497_v39 }
 0x26a   : > { %v1894_v24 = vunpack.i.h.bf16 %v1892_v45  ;;  %v1893_v47 = vunpack.i.l.bf16 %v1892_v45  ;;  %v1889_v48 = vunpack.i.h.bf16 %v1887_v46  ;;  %v1888_v49 = vunpack.i.l.bf16 %v1887_v46 }
 0x26c   : > { %v1157_v50 = vsel %vm665_vm7, %v1893_v47, %v1883_v41  ;;  %v1159_v51 = vsel %vm665_vm7, %v1894_v24, %v1888_v49  ;;  %1500 = vmatpush1.bf16.msra.mxu1 %v1499_v44  ;;  %v1160_v13 = vsel %vm665_vm7, %v1888_v49, %v1889_v48 }
 0x26d   : > { %v1503_v16 = vpack.c.bf16 %v1159_v51, %v1157_v50  ;;  %v1501_v52 = vpack.c.bf16 %v1160_v13, %v1158_v12 }
 0x26f   : > { %1502 = vmatprep.subr.bf16.mxu1 %v1501_v52 }
 0x270   : > { %1504 = vmatpush1.bf16.msra.mxu1 %v1503_v16 }
 0x273   : > { %1293 = vmatmul.mubr.f32.vlgmr.msra.gmra.mrb[4].mxu1 %v1169_v53 }
 0x274   : > { %1393 = vmatprep.mubr.msk.f32.mxu1 %vm1221_vm9, %v1172_v54 }
 0x277   : > { %1299 = vmatmul.mubr.f32.gmra.mrb[6].mxu1 %v1171_v55 }
 0x27a   : > { %v1214_v56 = vpop.permute.xlu1 %1213  ;;  %v1219_v59 = vpop.permute.xlu0 %1218 }
 0x346   : > { %v1294_v57 = vpop.f32.mrb[4].mxu1 }
 0x347   : > { %v1295_v14 = vadd.f32 %v1294_v57, %v1214_v56  ;;  %v1296_v15 = vpop.f32.mrb[5].mxu1 }
 0x348   : > { %v1297_v17 = vadd.f32 %v1296_v15, %v1214_v56 }
 0x349   : > { %v1305_v58 = vmax.f32 %v1295_v14, 0.0 }
 0x34a   : > { %v1306_v60 = vmax.f32 %v1297_v17, 0.0  ;;  %v1300_v61 = vpop.f32.mrb[6].mxu1 }
 0x34b   : > { %1309 = vst [vmem:[%s1960_s28] sm:$0xff] %v1305_v58  ;;  %v1301_v62 = vadd.f32 %v1300_v61, %v1219_v59  ;;  %v1302_v63 = vpop.f32.mrb[7].mxu1 }
 0x34c   : > { %1310 = vst [vmem:[%s1960_s28 + $0x8] sm:$0xff] %v1306_v60  ;;  %v1303_v0 = vadd.f32 %v1302_v63, %v1219_v59 }
 0x34d   : > { %v1307_v1 = vmax.f32 %v1301_v62, 0.0 }
 0x34e   : > { %v1308_v2 = vmax.f32 %v1303_v0, 0.0 }
 0x34f   : > { %1311 = vst [vmem:[%s1960_s28 + $0x10] sm:$0xff] %v1307_v1 }
 0x350   : > { %1312 = vst [vmem:[%s1960_s28 + $0x18] sm:$0xff] %v1308_v2 }
 0x351 PF: > { %s16_s21 = sadd.s32 1, %s1901_s21  }
 0x352   : > { %p13_p5 = scmp.ge.s32.totalorder %s16_s21, 4  }
 0x354   :  { %15 = sbr.rel (!%p13_p5) target bundleno = 1 (0x1), region = 81 }

// kernel: _lambda_.7
= control target key start
LH: loop header
LB: loop body
LE: loop exit
PB: predicated region body
PF: predicated region fallthrough
CT: control target
= control target key end

     0   :  { %s2214_s21 = smov 0   ;;  %s2932_s0 = inlined_call_operand.vmem [shape: f32[2,8,768], index: 0, kind: input, shape index: {}]   ;;  %s2933_s1 = inlined_call_operand.vmem [shape: f32[2,8,768], index: 1, kind: input, shape index: {}]   ;;  %s2934_s2 = inlined_call_operand.vmem [shape: f32[8,144], index: 2, kind: input, shape index: {}]   ;;  %s2935_s3 = inlined_call_operand.vmem [shape: f32[8,1], index: 3, kind: input, shape index: {}]   ;;  %s2936_s4 = inlined_call_operand.vmem [shape: f32[8,72], index: 4, kind: input, shape index: {}]   ;;  %s2937_s5 = inlined_call_operand.vmem [shape: f32[8,1], index: 5, kind: input, shape index: {}]   ;;  %s2938_s6 = inlined_call_operand.vmem [shape: f32[2,8,640], index: 6, kind: output, shape index: {}]  }
   0x1 LB: > { %s1653_s22 = sadd.s32 4294967295, %s2164_s21   ;;  %p1657_p0 = scmp.ge.s32.totalorder %s2164_s21, 1  ;;  %s2164_s21 = sphi %s2214_s21, %s16_s21  }
   0x2   : > { %p222_p1 = scmp.lt.s32.totalorder %s2164_s21, 3 }
   0x4   : > { %p223_p2 = pnand %p1657_p0, %p222_p1 }
   0x5   : > { %p257_p3 = scmp.lt.s32.totalorder (!%p223_p2), %s1653_s22, 1  ;;  %p1661_p4 = scmp.ne.s32.totalorder (!%p223_p2), %s1653_s22, 0 }
   0x6   : > { %226 = sbr.rel (%p223_p2) target bundleno = 842 (0x34a), region = 44 }
   0xd   : > { %s258_s23 = scalar_select %p257_p3, %s1653_s22, 1 }
   0xe   : > { %275 = sbr.rel (%p1661_p4) target bundleno = 21 (0x15), region = 48  ;;  %v2166_v0 = vmov (!%p1661_p4), 0.0  }
   0xf   : > { %s1844_s24 = smul.u32 48, %s258_s23  ;;  %276 = vst [vmem:[#allocation3 + $0x28] sm:$0xff] (!%p1661_p4), %v2166_v0 }
  0x10   : > { %s1845_s25 = smul.u32 40, %s258_s23 }
  0x11   : > { %s2225_s28 = scalar_lea.vmem %s2932_s0, %s1844_s24  ;;  %s2230_s7 = scalar_lea.vmem %s2933_s1, %s1844_s24 }
  0x12   : > { %s2235_s10 = scalar_lea.vmem %s2938_s6, %s1845_s25 }
  0x15 PF: > { %v2238_v1 = vld [vmem:[%s2225_s28 + $0x8] sm:$0xff]  ;;  %v2241_v2 = vld [vmem:[%s2225_s28 + $0x10] sm:$0xff]  ;;  %v2244_v3 = vld [vmem:[%s2225_s28] sm:$0xff]  ;;  %s2167_s11 = smov 126   ;;  %s2168_s12 = smov 127   ;;  %vm849_vm0 = vcmask 130048  }
  0x16   : > { %v1877_v4 = vpack.i.bf16 %v2241_v2, %v2238_v1  ;;  %v2249_v5 = vld [vmem:[%s2225_s28 + $0x18] sm:$0xff]  ;;  %v2256_v7 = vld [vmem:[%s2230_s7 + $0x8] sm:$0xff]  ;;  %s2169_s13 = smov 104   ;;  %s2170_s14 = smov 102   ;;  %v2273_v9 = vld [vmem:[%s2230_s7] sm:$0xff]  ;;  %v2175_v22 = vmov 0  }
  0x17   : > { %v1872_v6 = vpack.i.bf16 %v2249_v5, %v2244_v3  ;;  %v1887_v8 = vpack.i.bf16 %v2256_v7, %v2244_v3  ;;  %s2171_s15 = smov 103   ;;  %s2172_s16 = smov 79   ;;  %v2276_v10 = vld [vmem:[%s2230_s7 + $0x10] sm:$0xff]  ;;  %v2279_v11 = vld [vmem:[%s2225_s28 + $0x20] sm:$0xff]  ;;  %v2304_v15 = vld [vmem:[%s2934_s2 + $0x8] sm:$0xff]  ;;  %2067 = vset.pattern.permute.xlu0 %v2175_v22  ;;  %vm317_vm1 = vcmask 1039360  }
  0x18   : > { %1878 = vrot.lane.b32.xlu1 %v1877_v4, %s2167_s11  ;;  %1868 = vrot.lane.b32.xlu0 %v1877_v4, %s2168_s12  ;;  %s2173_s17 = smov 80   ;;  %s2174_s18 = smov 78   ;;  %v1952_v12 = vpack.i.bf16 %v2273_v9, %v2276_v10  ;;  %v1947_v13 = vpack.i.bf16 %v2256_v7, %v2279_v11  ;;  %v1962_v14 = vpack.i.bf16 %v2279_v11, %v2249_v5  ;;  %v282_v16 = vld [vmem:[%s2225_s28 + $0x28] sm:$0xff]  ;;  %v2310_v17 = vld [vmem:[%s2230_s7 + $0x18] sm:$0xff]  ;;  %vm378_vm2 = vcmask 1031168  }
  0x19   : > { %1662 = vmatprep.mubr.msk.f32.mxu0 %vm849_vm0, %v2304_v15  ;;  %1663 = vmatprep.mubr.msk.f32.mxu1 %vm849_vm0, %v2304_v15  ;;  %v2027_v18 = vpack.i.bf16 %v2310_v17, %v282_v16  ;;  %v2320_v19 = vld [vmem:[%s2230_s7 + $0x20] sm:$0xff]  ;;  %v288_v21 = vld [vmem:[%s2230_s7 + $0x28] sm:$0xff]  ;;  %vm433_vm3 = vcmask 850944   ;;  %vm488_vm4 = vcmask 842752   ;;  %vm543_vm5 = vcmask 834560  }
  0x1a   : > { %v2032_v20 = vpack.i.bf16 %v2320_v19, %v2310_v17  ;;  %v843_v23 = vld [vmem:[%s2935_s3] sm:$0xff]  ;;  %vm598_vm6 = vcmask 654336   ;;  %vm653_vm7 = vcmask 646144   ;;  %vm708_vm8 = vcmask 637952  }
  0x1b   : > { %vm2178_vm9 = vmmov 0   ;;  %vm1360_vm10 = vcmask 588800  }
  0x1c   : > { %1883 = vrot.lane.b32.xlu1 %v1877_v4, %s2169_s13  ;;  %1873 = vrot.lane.b32.xlu0 %v1872_v6, %s2168_s12 }
  0x20   : > { %1893 = vrot.lane.b32.xlu1 %v1872_v6, %s2169_s13  ;;  %1888 = vrot.lane.b32.xlu0 %v1887_v8, %s2167_s11 }
  0x24   : > { %1903 = vrot.lane.b32.xlu1 %v1877_v4, %s2170_s14  ;;  %1898 = vrot.lane.b32.xlu0 %v1877_v4, %s2171_s15 }
  0x28   : > { %1913 = vrot.lane.b32.xlu1 %v1872_v6, %s2170_s14  ;;  %1908 = vrot.lane.b32.xlu0 %v1887_v8, %s2171_s15 }
  0x2c   : > { %1923 = vrot.lane.b32.xlu1 %v1877_v4, %s2172_s16  ;;  %1918 = vrot.lane.b32.xlu0 %v1877_v4, %s2173_s17 }
  0x30   : > { %1933 = vrot.lane.b32.xlu1 %v1872_v6, %s2172_s16  ;;  %1928 = vrot.lane.b32.xlu0 %v1887_v8, %s2173_s17 }
  0x34   : > { %1943 = vrot.lane.b32.xlu1 %v1887_v8, %s2174_s18  ;;  %1938 = vrot.lane.b32.xlu0 %v1877_v4, %s2174_s18 }
  0x38   : > { %1953 = vrot.lane.b32.xlu1 %v1952_v12, %s2168_s12  ;;  %1948 = vrot.lane.b32.xlu0 %v1947_v13, %s2168_s12 }
  0x3c   : > { %1963 = vrot.lane.b32.xlu1 %v1962_v14, %s2167_s11  ;;  %1958 = vrot.lane.b32.xlu0 %v1952_v12, %s2167_s11 }
  0x40   : > { %1973 = vrot.lane.b32.xlu1 %v1952_v12, %s2169_s13  ;;  %1968 = vrot.lane.b32.xlu0 %v1947_v13, %s2169_s13 }
  0x44   : > { %1983 = vrot.lane.b32.xlu1 %v1962_v14, %s2171_s15  ;;  %1978 = vrot.lane.b32.xlu0 %v1952_v12, %s2171_s15 }
  0x48   : > { %1993 = vrot.lane.b32.xlu1 %v1952_v12, %s2170_s14  ;;  %1988 = vrot.lane.b32.xlu0 %v1947_v13, %s2170_s14 }
  0x4c   : > { %2003 = vrot.lane.b32.xlu1 %v1962_v14, %s2173_s17  ;;  %1998 = vrot.lane.b32.xlu0 %v1952_v12, %s2173_s17 }
  0x50   : > { %2013 = vrot.lane.b32.xlu1 %v1952_v12, %s2172_s16  ;;  %2008 = vrot.lane.b32.xlu0 %v1947_v13, %s2172_s16 }
  0x54   : > { %2023 = vrot.lane.b32.xlu1 %v1962_v14, %s2174_s18  ;;  %2018 = vrot.lane.b32.xlu0 %v1952_v12, %s2174_s18 }
  0x58   : > { %347 = vrot.lane.b32.xlu1 %v2320_v19, %s2168_s12  ;;  %2028 = vrot.lane.b32.xlu0 %v2027_v18, %s2168_s12 }
  0x5c   : > { %376 = vrot.lane.b32.xlu1 %v282_v16, %s2167_s11  ;;  %2033 = vrot.lane.b32.xlu0 %v2032_v20, %s2167_s11 }
  0x60   : > { %457 = vrot.lane.b32.xlu1 %v2320_v19, %s2169_s13  ;;  %2038 = vrot.lane.b32.xlu0 %v2027_v18, %s2169_s13 }
  0x64   : > { %486 = vrot.lane.b32.xlu1 %v282_v16, %s2171_s15  ;;  %2043 = vrot.lane.b32.xlu0 %v2032_v20, %s2171_s15 }
  0x68   : > { %567 = vrot.lane.b32.xlu1 %v2320_v19, %s2170_s14  ;;  %2048 = vrot.lane.b32.xlu0 %v2027_v18, %s2170_s14 }
  0x6c   : > { %596 = vrot.lane.b32.xlu1 %v282_v16, %s2173_s17  ;;  %2053 = vrot.lane.b32.xlu0 %v2032_v20, %s2173_s17 }
  0x70   : > { %677 = vrot.lane.b32.xlu1 %v2320_v19, %s2172_s16  ;;  %2058 = vrot.lane.b32.xlu0 %v2027_v18, %s2172_s16 }
  0x74   : > { %706 = vrot.lane.b32.xlu1 %v282_v16, %s2174_s18  ;;  %2063 = vrot.lane.b32.xlu0 %v2032_v20, %s2174_s18 }
  0x78   : > { %404 = vrot.lane.b32.xlu1 %v288_v21, %s2167_s11  ;;  %349 = vrot.lane.b32.xlu0 %v288_v21, %s2168_s12 }
  0x7c   : > { %514 = vrot.lane.b32.xlu1 %v288_v21, %s2171_s15  ;;  %459 = vrot.lane.b32.xlu0 %v288_v21, %s2169_s13 }
  0x80   : > { %624 = vrot.lane.b32.xlu1 %v288_v21, %s2173_s17  ;;  %569 = vrot.lane.b32.xlu0 %v288_v21, %s2170_s14 }
  0x84   : > { %734 = vrot.lane.b32.xlu1 %v288_v21, %s2174_s18  ;;  %679 = vrot.lane.b32.xlu0 %v288_v21, %s2172_s16 }
  0x88   : > { %846 = vperm.xlu0 %2067, %v843_v23  }
  0x8a   : > { %v2356_v24 = vpop.permute.xlu1 %1878  ;;  %v2358_v25 = vpop.permute.xlu0 %1868 }
  0x8b   : > { %v1881_v26 = vunpack.i.h.bf16 %v2356_v24  ;;  %v1880_v27 = vunpack.i.l.bf16 %v2356_v24  ;;  %v1871_v28 = vunpack.i.h.bf16 %v2358_v25  ;;  %v1870_v29 = vunpack.i.l.bf16 %v2358_v25 }
  0x8d   : > { %v319_v30 = vsel %vm317_vm1, %v1870_v29, %v1871_v28  ;;  %v380_v37 = vsel %vm378_vm2, %v1880_v27, %v1881_v26 }
  0x8e   : > { %v2367_v31 = vpop.permute.xlu1 %1883  ;;  %v2369_v32 = vpop.permute.xlu0 %1873  ;;  %v1701_v33 = vpack.c.bf16 %v319_v30, %v2238_v1 }
  0x8f   : > { %v1886_v34 = vunpack.i.h.bf16 %v2367_v31  ;;  %v1885_v35 = vunpack.i.l.bf16 %v2367_v31  ;;  %v1875_v36 = vunpack.i.l.bf16 %v2369_v32 }
  0x90   : > { %1702 = vmatprep.subr.bf16.mxu0 %v1701_v33 }
  0x91   : > { %v318_v38 = vsel %vm317_vm1, %v1875_v36, %v1870_v29  ;;  %v435_v39 = vsel %vm433_vm3, %v1885_v35, %v1886_v34 }
  0x92   : > { %v2382_v40 = vpop.permute.xlu1 %1893  ;;  %v2384_v41 = vpop.permute.xlu0 %1888  ;;  %v1703_v42 = vpack.c.bf16 %v318_v38, %v2244_v3  ;;  %v1705_v43 = vpack.c.bf16 %v435_v39, %v380_v37 }
  0x93   : > { %v1895_v44 = vunpack.i.l.bf16 %v2382_v40  ;;  %v1890_v45 = vunpack.i.l.bf16 %v2384_v41 }
  0x94   : > { %1704 = vmatpush1.bf16.msra.mxu0 %v1703_v42 }
  0x95   : > { %1706 = vmatprep.subr.bf16.mxu0 %v1705_v43  ;;  %v379_v46 = vsel %vm378_vm2, %v1890_v45, %v1880_v27  ;;  %v434_v47 = vsel %vm433_vm3, %v1895_v44, %v1885_v35  ;;  %v1876_v35 = vunpack.i.h.bf16 %v2369_v32 }
  0x96   : > { %v2391_v48 = vpop.permute.xlu1 %1903  ;;  %v2393_v49 = vpop.permute.xlu0 %1898  ;;  %v1707_v50 = vpack.c.bf16 %v434_v47, %v379_v46 }
  0x97   : > { %v1906_v51 = vunpack.i.h.bf16 %v2391_v48  ;;  %v1905_v52 = vunpack.i.l.bf16 %v2391_v48  ;;  %v1901_v53 = vunpack.i.h.bf16 %v2393_v49  ;;  %v1900_v54 = vunpack.i.l.bf16 %v2393_v49 }
  0x98   : > { %1708 = vmatpush1.bf16.msra.mxu0 %v1707_v50  ;;  %v320_v47 = vsel %vm317_vm1, %v1871_v28, %v1876_v35 }
  0x99   : > { %v490_v55 = vsel %vm488_vm4, %v1900_v54, %v1901_v53  ;;  %v545_v56 = vsel %vm543_vm5, %v1905_v52, %v1906_v51  ;;  %v1739_v28 = vpack.c.bf16 %v320_v47, %v2241_v2 }
  0x9a   : > { %v2405_v57 = vpop.permute.xlu1 %1913  ;;  %v2407_v58 = vpop.permute.xlu0 %1908  ;;  %v1709_v59 = vpack.c.bf16 %v545_v56, %v490_v55 }
  0x9b   : > { %v1915_v60 = vunpack.i.l.bf16 %v2405_v57  ;;  %v1910_v61 = vunpack.i.l.bf16 %v2407_v58  ;;  %v1911_v24 = vunpack.i.h.bf16 %v2407_v58 }
  0x9c   : > { %1710 = vmatprep.subr.bf16.mxu0 %v1709_v59 }
  0x9d   : > { %v489_v62 = vsel %vm488_vm4, %v1910_v61, %v1900_v54  ;;  %v544_v63 = vsel %vm543_vm5, %v1915_v60, %v1905_v52 }
  0x9e   : > { %v2413_v0 = vpop.permute.xlu1 %1923  ;;  %v2415_v1 = vpop.permute.xlu0 %1918  ;;  %v1711_v3 = vpack.c.bf16 %v544_v63, %v489_v62  ;;  %v1896_v63 = vunpack.i.h.bf16 %v2382_v40 }
  0x9f   : > { %v1926_v4 = vunpack.i.h.bf16 %v2413_v0  ;;  %v1925_v6 = vunpack.i.l.bf16 %v2413_v0  ;;  %v1921_v8 = vunpack.i.h.bf16 %v2415_v1  ;;  %v1920_v12 = vunpack.i.l.bf16 %v2415_v1 }
  0xa0   : > { %1712 = vmatpush1.bf16.msra.mxu0 %v1711_v3 }
  0xa1   : > { %v600_v13 = vsel %vm598_vm6, %v1920_v12, %v1921_v8  ;;  %v655_v14 = vsel %vm653_vm7, %v1925_v6, %v1926_v4 }
  0xa2   : > { %v2427_v16 = vpop.permute.xlu1 %1933  ;;  %v2429_v18 = vpop.permute.xlu0 %1928  ;;  %v1713_v20 = vpack.c.bf16 %v655_v14, %v600_v13 }
  0xa3   : > { %v1935_v21 = vunpack.i.l.bf16 %v2427_v16  ;;  %v1930_v22 = vunpack.i.l.bf16 %v2429_v18  ;;  %v1931_v49 = vunpack.i.h.bf16 %v2429_v18 }
  0xa4   : > { %1714 = vmatprep.subr.bf16.mxu0 %v1713_v20 }
  0xa5   : > { %v599_v23 = vsel %vm598_vm6, %v1930_v22, %v1920_v12  ;;  %v654_v27 = vsel %vm653_vm7, %v1935_v21, %v1925_v6  ;;  %v436_v22 = vsel %vm433_vm3, %v1886_v34, %v1896_v63 }
  0xa6   : > { %v2435_v29 = vpop.permute.xlu1 %1943  ;;  %v2437_v30 = vpop.permute.xlu0 %1938  ;;  %v1715_v33 = vpack.c.bf16 %v654_v27, %v599_v23 }
  0xa7   : > { %v1945_v36 = vunpack.i.l.bf16 %v2435_v29  ;;  %v1941_v37 = vunpack.i.h.bf16 %v2437_v30  ;;  %v1940_v38 = vunpack.i.l.bf16 %v2437_v30  ;;  %v1946_v1 = vunpack.i.h.bf16 %v2435_v29  ;;  %v2612_v30 = vld [vmem:[%s2934_s2] sm:$0xff] }
  0xa8   : > { %1716 = vmatpush1.bf16.msra.mxu0 %v1715_v33 }
  0xa9   : > { %v710_v39 = vsel %vm708_vm8, %v1940_v38, %v1941_v37  ;;  %v709_v42 = vsel %vm708_vm8, %v1945_v36, %v1940_v38 }
  0xaa   : > { %v2447_v43 = vpop.permute.xlu1 %1953  ;;  %v2449_v44 = vpop.permute.xlu0 %1948  ;;  %v1717_v45 = vpack.c.bf16 %v2256_v7, %v710_v39  ;;  %v1719_v32 = vpack.c.bf16 %v2273_v9, %v709_v42  ;;  %v1891_v9 = vunpack.i.h.bf16 %v2384_v41 }
  0xab   : > { %v1950_v46 = vunpack.i.l.bf16 %v2449_v44  ;;  %v1956_v50 = vunpack.i.h.bf16 %v2447_v43  ;;  %v1955_v52 = vunpack.i.l.bf16 %v2447_v43  ;;  %v1951_v54 = vunpack.i.h.bf16 %v2449_v44 }
  0xac   : > { %1718 = vmatprep.subr.bf16.mxu0 %v1717_v45 }
  0xad   : > { %1720 = vmatpush1.bf16.msra.mxu0 %v1719_v32  ;;  %v321_v7 = vsel %vm317_vm1, %v1876_v35, %v1950_v46  ;;  %v352_v41 = vsel %vm317_vm1, %v1951_v54, %v1955_v52  ;;  %v1916_v32 = vunpack.i.h.bf16 %v2405_v57 }
  0xae   : > { %v2464_v55 = vpop.permute.xlu1 %1963  ;;  %v2466_v56 = vpop.permute.xlu0 %1958  ;;  %v1737_v25 = vpack.c.bf16 %v321_v7, %v2249_v5  ;;  %v351_v5 = vsel %vm317_vm1, %v1956_v50, %v1951_v54 }
  0xaf   : > { %v1966_v59 = vunpack.i.h.bf16 %v2464_v55  ;;  %v1965_v60 = vunpack.i.l.bf16 %v2464_v55  ;;  %v1961_v61 = vunpack.i.h.bf16 %v2466_v56  ;;  %v1960_v62 = vunpack.i.l.bf16 %v2466_v56 }
  0xb0   : > { %1738 = vmatprep.subr.bf16.mxu1 %v1737_v25 }
  0xb1   : > { %1740 = vmatpush1.bf16.msra.mxu1 %v1739_v28  ;;  %v407_v2 = vsel %vm378_vm2, %v1891_v9, %v1960_v62  ;;  %v406_v3 = vsel %vm378_vm2, %v1961_v61, %v1891_v9  ;;  %v382_v20 = vsel %vm378_vm2, %v1965_v60, %v1966_v59  ;;  %v381_v21 = vsel %vm378_vm2, %v1881_v26, %v1965_v60 }
  0xb2   : > { %v2483_v6 = vpop.permute.xlu1 %1973  ;;  %v2485_v12 = vpop.permute.xlu0 %1968  ;;  %v1721_v13 = vpack.c.bf16 %v407_v2, %v352_v41  ;;  %v1723_v40 = vpack.c.bf16 %v406_v3, %v351_v5  ;;  %v1743_v38 = vpack.c.bf16 %v436_v22, %v381_v21 }
  0xb3   : > { %v1970_v14 = vunpack.i.l.bf16 %v2485_v12  ;;  %v1976_v23 = vunpack.i.h.bf16 %v2483_v6  ;;  %v1975_v27 = vunpack.i.l.bf16 %v2483_v6  ;;  %v1971_v33 = vunpack.i.h.bf16 %v2485_v12 }
  0xb4   : > { %1722 = vmatprep.subr.bf16.mxu0 %v1721_v13 }
  0xb5   : > { %1724 = vmatpush1.bf16.msra.mxu0 %v1723_v40  ;;  %v437_v35 = vsel %vm433_vm3, %v1896_v63, %v1970_v14  ;;  %v462_v58 = vsel %vm433_vm3, %v1971_v33, %v1975_v27  ;;  %v461_v50 = vsel %vm433_vm3, %v1976_v23, %v1971_v33  ;;  %v546_v63 = vsel %vm543_vm5, %v1906_v51, %v1916_v32 }
  0xb6   : > { %v2504_v36 = vpop.permute.xlu1 %1983  ;;  %v2506_v26 = vpop.permute.xlu0 %1978  ;;  %v1741_v31 = vpack.c.bf16 %v437_v35, %v382_v20  ;;  %v1936_v23 = vunpack.i.h.bf16 %v2427_v16 }
  0xb7   : > { %v1986_v34 = vunpack.i.h.bf16 %v2504_v36  ;;  %v1985_v39 = vunpack.i.l.bf16 %v2504_v36  ;;  %v1981_v42 = vunpack.i.h.bf16 %v2506_v26  ;;  %v1980_v45 = vunpack.i.l.bf16 %v2506_v26 }
  0xb8   : > { %1742 = vmatprep.subr.bf16.mxu1 %v1741_v31 }
  0xb9   : > { %1744 = vmatpush1.bf16.msra.mxu1 %v1743_v38  ;;  %v517_v47 = vsel %vm488_vm4, %v1911_v24, %v1980_v45  ;;  %v516_v54 = vsel %vm488_vm4, %v1981_v42, %v1911_v24  ;;  %v492_v60 = vsel %vm488_vm4, %v1985_v39, %v1986_v34  ;;  %v491_v61 = vsel %vm488_vm4, %v1901_v53, %v1985_v39 }
  0xba   : > { %v2521_v7 = vpop.permute.xlu1 %1993  ;;  %v2523_v9 = vpop.permute.xlu0 %1988  ;;  %v1725_v25 = vpack.c.bf16 %v517_v47, %v462_v58  ;;  %v1727_v57 = vpack.c.bf16 %v516_v54, %v461_v50  ;;  %v1747_v40 = vpack.c.bf16 %v546_v63, %v491_v61 }
  0xbb   : > { %v1990_v28 = vunpack.i.l.bf16 %v2523_v9  ;;  %v1996_v41 = vunpack.i.h.bf16 %v2521_v7  ;;  %v1995_v2 = vunpack.i.l.bf16 %v2521_v7  ;;  %v1991_v5 = vunpack.i.h.bf16 %v2523_v9 }
  0xbc   : > { %1726 = vmatprep.subr.bf16.mxu0 %v1725_v25 }
  0xbd   : > { %1728 = vmatpush1.bf16.msra.mxu0 %v1727_v57  ;;  %v547_v3 = vsel %vm543_vm5, %v1916_v32, %v1990_v28  ;;  %v572_v18 = vsel %vm543_vm5, %v1991_v5, %v1995_v2  ;;  %v571_v35 = vsel %vm543_vm5, %v1996_v41, %v1991_v5  ;;  %v656_v57 = vsel %vm653_vm7, %v1926_v4, %v1936_v23 }
  0xbe   : > { %v2542_v13 = vpop.permute.xlu1 %2003  ;;  %v2544_v53 = vpop.permute.xlu0 %1998  ;;  %v1745_v48 = vpack.c.bf16 %v547_v3, %v492_v60 }
  0xbf   : > { %v2006_v51 = vunpack.i.h.bf16 %v2542_v13  ;;  %v2005_v20 = vunpack.i.l.bf16 %v2542_v13  ;;  %v2001_v21 = vunpack.i.h.bf16 %v2544_v53  ;;  %v2000_v22 = vunpack.i.l.bf16 %v2544_v53 }
  0xc0   : > { %1746 = vmatprep.subr.bf16.mxu1 %v1745_v48 }
  0xc1   : > { %1748 = vmatpush1.bf16.msra.mxu1 %v1747_v40  ;;  %v627_v33 = vsel %vm598_vm6, %v1931_v49, %v2000_v22  ;;  %v626_v24 = vsel %vm598_vm6, %v2001_v21, %v1931_v49  ;;  %v602_v32 = vsel %vm598_vm6, %v2005_v20, %v2006_v51  ;;  %v601_v58 = vsel %vm598_vm6, %v1921_v8, %v2005_v20 }
  0xc2   : > { %v2559_v31 = vpop.permute.xlu1 %2013  ;;  %v2561_v38 = vpop.permute.xlu0 %2008  ;;  %v1729_v39 = vpack.c.bf16 %v627_v33, %v572_v18  ;;  %v1731_v16 = vpack.c.bf16 %v626_v24, %v571_v35  ;;  %v1751_v63 = vpack.c.bf16 %v656_v57, %v601_v58 }
  0xc3   : > { %v2010_v42 = vunpack.i.l.bf16 %v2561_v38  ;;  %v2016_v47 = vunpack.i.h.bf16 %v2559_v31  ;;  %v2015_v50 = vunpack.i.l.bf16 %v2559_v31  ;;  %v2011_v54 = vunpack.i.h.bf16 %v2561_v38 }
  0xc4   : > { %1730 = vmatprep.subr.bf16.mxu0 %v1729_v39 }
  0xc5   : > { %1732 = vmatpush1.bf16.msra.mxu0 %v1731_v16  ;;  %v657_v25 = vsel %vm653_vm7, %v1936_v23, %v2010_v42  ;;  %v682_v0 = vsel %vm653_vm7, %v2011_v54, %v2015_v50  ;;  %v681_v4 = vsel %vm653_vm7, %v2016_v47, %v2011_v54 }
  0xc6   : > { %v2580_v60 = vpop.permute.xlu1 %2023  ;;  %v2582_v8 = vpop.permute.xlu0 %2018  ;;  %v1749_v61 = vpack.c.bf16 %v657_v25, %v602_v32 }
  0xc7   : > { %v2026_v41 = vunpack.i.h.bf16 %v2580_v60  ;;  %v2025_v5 = vunpack.i.l.bf16 %v2580_v60  ;;  %v2021_v3 = vunpack.i.h.bf16 %v2582_v8  ;;  %v2020_v49 = vunpack.i.l.bf16 %v2582_v8 }
  0xc8   : > { %1750 = vmatprep.subr.bf16.mxu1 %v1749_v61 }
  0xc9   : > { %1752 = vmatpush1.bf16.msra.mxu1 %v1751_v63  ;;  %v737_v29 = vsel %vm708_vm8, %v1946_v1, %v2020_v49  ;;  %v712_v48 = vsel %vm708_vm8, %v2025_v5, %v2026_v41  ;;  %v736_v40 = vsel %vm708_vm8, %v2021_v3, %v1946_v1  ;;  %v711_v20 = vsel %vm708_vm8, %v1941_v37, %v2025_v5 }
  0xca   : > { %v2602_v21 = vpop.permute.xlu1 %347  ;;  %v2029_v23 = vpop.permute.xlu0 %2028  ;;  %v1733_v18 = vpack.c.bf16 %v737_v29, %v682_v0  ;;  %v1753_v33 = vpack.c.bf16 %v2310_v17, %v712_v48  ;;  %v1735_v35 = vpack.c.bf16 %v736_v40, %v681_v4  ;;  %v1755_v24 = vpack.c.bf16 %v2276_v10, %v711_v20 }
  0xcb   : > { %v2030_v39 = vunpack.i.l.bf16 %v2029_v23  ;;  %v2031_v16 = vunpack.i.h.bf16 %v2029_v23  ;;  %v2176_v10 = vmov 0.0|0.0  }
  0xcc   : > { %1734 = vmatprep.subr.bf16.mxu0 %v1733_v18  ;;  %1754 = vmatprep.subr.bf16.mxu1 %v1753_v33 }
  0xcd   : > { %v322_v32 = vsel %vm317_vm1, %v1950_v46, %v2030_v39  ;;  %1736 = vmatpush1.bf16.msra.mxu0 %v1735_v35  ;;  %1756 = vmatpush1.bf16.msra.mxu1 %v1755_v24  ;;  %v354_v46 = vsel %vm317_vm1, %v2031_v16, %v2602_v21  ;;  %v353_v54 = vsel %vm317_vm1, %v1955_v52, %v2031_v16 }
  0xce   : > { %v1774_v17 = vpack.c.bf16 %v322_v32, %v2279_v11  ;;  %v377_v37 = vpop.permute.xlu1 %376  ;;  %v2615_v58 = vpop.permute.xlu0 %2033  ;;  %1773 = vmatprep.subr.bf16.mxu0 %v2176_v10 }
  0xcf   : > { %v2036_v47 = vunpack.i.h.bf16 %v2615_v58  ;;  %v2035_v44 = vunpack.i.l.bf16 %v2615_v58  ;;  %v383_v43 = vsel %vm378_vm2, %v1966_v59, %v377_v37 }
  0xd0   : > { %918 = vmatmul.mubr.f32.vlgmr.msra.gmra.mrb[0].mxu0 %v2612_v30 }
  0xd1   : > { %1775 = vmatpush1.bf16.msra.mxu0 %v1774_v17  ;;  %v409_v11 = vsel %vm378_vm2, %v2035_v44, %v2036_v47  ;;  %v408_v25 = vsel %vm378_vm2, %v1960_v62, %v2035_v44  ;;  %1664 = vmatprep.mubr.msk.f32.mxu0 %vm849_vm0, %v2304_v15 }
  0xd2   : > { %v2634_v57 = vpop.permute.xlu1 %457  ;;  %v2039_v1 = vpop.permute.xlu0 %2038  ;;  %v1757_v61 = vpack.c.bf16 %v409_v11, %v354_v46  ;;  %v1759_v63 = vpack.c.bf16 %v408_v25, %v353_v54  ;;  %1776 = vmatprep.subr.bf16.mxu0 %v2176_v10 }
  0xd3   : > { %v2040_v5 = vunpack.i.l.bf16 %v2039_v1  ;;  %v2041_v52 = vunpack.i.h.bf16 %v2039_v1 }
  0xd4   : > { %1758 = vmatprep.subr.bf16.mxu1 %v1757_v61 }
  0xd5   : > { %v438_v56 = vsel %vm433_vm3, %v1970_v14, %v2040_v5  ;;  %1760 = vmatpush1.bf16.msra.mxu1 %v1759_v63  ;;  %v464_v55 = vsel %vm433_vm3, %v2041_v52, %v2634_v57  ;;  %v463_v12 = vsel %vm433_vm3, %v1975_v27, %v2041_v52 }
  0xd6   : > { %v1777_v15 = vpack.c.bf16 %v438_v56, %v383_v43  ;;  %v487_v62 = vpop.permute.xlu1 %486  ;;  %v2643_v3 = vpop.permute.xlu0 %2043 }
  0xd7   : > { %v2046_v0 = vunpack.i.h.bf16 %v2643_v3  ;;  %v2045_v4 = vunpack.i.l.bf16 %v2643_v3  ;;  %v493_v18 = vsel %vm488_vm4, %v1986_v34, %v487_v62 }
  0xd8   : > { %1778 = vmatpush1.bf16.msra.mxu0 %v1777_v15 }
  0xd9   : > { %v519_v59 = vsel %vm488_vm4, %v2045_v4, %v2046_v0  ;;  %v518_v14 = vsel %vm488_vm4, %v1980_v45, %v2045_v4  ;;  %1779 = vmatprep.subr.bf16.mxu0 %v2176_v10 }
  0xda   : > { %v2659_v29 = vpop.permute.xlu1 %567  ;;  %v2049_v48 = vpop.permute.xlu0 %2048  ;;  %v1761_v40 = vpack.c.bf16 %v519_v59, %v464_v55  ;;  %v1763_v20 = vpack.c.bf16 %v518_v14, %v463_v12  ;;  %v1080_v55 = vld [vmem:[#allocation3 + $0x28] sm:$0xff] }
  0xdb   : > { %v2050_v23 = vunpack.i.l.bf16 %v2049_v48  ;;  %v2051_v6 = vunpack.i.h.bf16 %v2049_v48  ;;  %1210 = vrot.lane.b32.xlu0 %v1080_v55, %s2170_s14 }
  0xdc   : > { %1762 = vmatprep.subr.bf16.mxu1 %v1761_v40 }
  0xdd   : > { %v548_v27 = vsel %vm543_vm5, %v1990_v28, %v2050_v23  ;;  %1764 = vmatpush1.bf16.msra.mxu1 %v1763_v20  ;;  %v574_v39 = vsel %vm543_vm5, %v2051_v6, %v2659_v29  ;;  %v573_v36 = vsel %vm543_vm5, %v1995_v2, %v2051_v6 }
  0xde   : > { %v1780_v26 = vpack.c.bf16 %v548_v27, %v493_v18  ;;  %v597_v45 = vpop.permute.xlu1 %596  ;;  %v2054_v33 = vpop.permute.xlu0 %2053 }
  0xdf   : > { %v2056_v35 = vunpack.i.h.bf16 %v2054_v33  ;;  %v2055_v24 = vunpack.i.l.bf16 %v2054_v33  ;;  %v603_v44 = vsel %vm598_vm6, %v2006_v51, %v597_v45 }
  0xe0   : > { %1781 = vmatpush1.bf16.msra.mxu0 %v1780_v26 }
  0xe1   : > { %v629_v16 = vsel %vm598_vm6, %v2055_v24, %v2056_v35  ;;  %v628_v34 = vsel %vm598_vm6, %v2000_v22, %v2055_v24  ;;  %1782 = vmatprep.subr.bf16.mxu0 %v2176_v10 }
  0xe2   : > { %v678_v9 = vpop.permute.xlu1 %677  ;;  %v2059_v28 = vpop.permute.xlu0 %2058  ;;  %v1765_v32 = vpack.c.bf16 %v629_v16, %v574_v39  ;;  %v1767_v17 = vpack.c.bf16 %v628_v34, %v573_v36  ;;  %v2177_v36 = vmov 0.0  }
  0xe3   : > { %v2060_v37 = vunpack.i.l.bf16 %v2059_v28  ;;  %v2061_v46 = vunpack.i.h.bf16 %v2059_v28  ;;  %v1354_v28 = vld [vmem:[%s2937_s5] sm:$0xff] }
  0xe4   : > { %1766 = vmatprep.subr.bf16.mxu1 %v1765_v32 }
  0xe5   : > { %v658_v7 = vsel %vm653_vm7, %v2010_v42, %v2060_v37  ;;  %1768 = vmatpush1.bf16.msra.mxu1 %v1767_v17  ;;  %v684_v13 = vsel %vm653_vm7, %v2061_v46, %v678_v9  ;;  %v683_v38 = vsel %vm653_vm7, %v2015_v50, %v2061_v46 }
  0xe6   : > { %v1783_v2 = vpack.c.bf16 %v658_v7, %v603_v44  ;;  %v707_v53 = vpop.permute.xlu1 %706  ;;  %v2064_v22 = vpop.permute.xlu0 %2063 }
  0xe7   : > { %v713_v11 = vsel %vm708_vm8, %v2026_v41, %v707_v53  ;;  %v2066_v54 = vunpack.i.h.bf16 %v2064_v22  ;;  %v2065_v25 = vunpack.i.l.bf16 %v2064_v22 }
  0xe8   : > { %1784 = vmatpush1.bf16.msra.mxu0 %v1783_v2  ;;  %v1786_v60 = vpack.c.bf16 %v2320_v19, %v713_v11 }
  0xe9   : > { %1785 = vmatprep.subr.bf16.mxu0 %v2176_v10  ;;  %v739_v51 = vsel %vm708_vm8, %v2065_v25, %v2066_v54  ;;  %v738_v42 = vsel %vm708_vm8, %v2020_v49, %v2065_v25 }
  0xea   : > { %v405_v41 = vpop.permute.xlu1 %404  ;;  %v350_v1 = vpop.permute.xlu0 %349  ;;  %v1769_v61 = vpack.c.bf16 %v739_v51, %v684_v13  ;;  %v1771_v63 = vpack.c.bf16 %v738_v42, %v683_v38 }
  0xeb   : > { %v410_v5 = vsel %vm378_vm2, %v2036_v47, %v405_v41  ;;  %v355_v43 = vsel %vm317_vm1, %v2602_v21, %v350_v1 }
  0xec   : > { %1770 = vmatprep.subr.bf16.mxu1 %v1769_v61  ;;  %1787 = vmatpush1.bf16.msra.mxu0 %v1786_v60  ;;  %v1789_v31 = vpack.c.bf16 %v410_v5, %v355_v43 }
  0xed   : > { %1772 = vmatpush1.bf16.msra.mxu1 %v1771_v63  ;;  %1788 = vmatprep.subr.bf16.mxu0 %v2176_v10 }
  0xee   : > { %v515_v50 = vpop.permute.xlu1 %514  ;;  %v460_v8 = vpop.permute.xlu0 %459 }
  0xef   : > { %v520_v19 = vsel %vm488_vm4, %v2046_v0, %v515_v50  ;;  %v465_v49 = vsel %vm433_vm3, %v2634_v57, %v460_v8 }
  0xf0   : > { %989 = vmatmul.mubr.f32.vlgmr.msra.gmra.mrb[0].mxu1 %v2612_v30  ;;  %1790 = vmatpush1.bf16.msra.mxu0 %v1789_v31  ;;  %v1792_v21 = vpack.c.bf16 %v520_v19, %v465_v49 }
  0xf1   : > { %1791 = vmatprep.subr.bf16.mxu0 %v2176_v10  ;;  %1428 = vmatprep.mubr.f32.mxu1 %v2177_v36 }
  0xf2   : > { %v625_v58 = vpop.permute.xlu1 %624  ;;  %v570_v47 = vpop.permute.xlu0 %569 }
  0xf3   : > { %v630_v52 = vsel %vm598_vm6, %v2056_v35, %v625_v58  ;;  %v575_v56 = vsel %vm543_vm5, %v2659_v29, %v570_v47 }
  0xf4   : > { %1793 = vmatpush1.bf16.msra.mxu0 %v1792_v21  ;;  %v1795_v15 = vpack.c.bf16 %v630_v52, %v575_v56 }
  0xf5   : > { %1794 = vmatprep.subr.bf16.mxu0 %v2176_v10 }
  0xf6   : > { %v735_v62 = vpop.permute.xlu1 %734  ;;  %v680_v3 = vpop.permute.xlu0 %679 }
  0xf7   : > { %v740_v57 = vsel %vm708_vm8, %v2066_v54, %v735_v62  ;;  %v685_v0 = vsel %vm653_vm7, %v678_v9, %v680_v3 }
  0xf8   : > { %1796 = vmatpush1.bf16.msra.mxu0 %v1795_v15  ;;  %v1798_v4 = vpack.c.bf16 %v740_v57, %v685_v0 }
  0xf9   : > { %1797 = vmatprep.subr.bf16.mxu0 %v2176_v10 }
  0xfc   : > { %1799 = vmatpush1.bf16.msra.mxu0 %v1798_v4 }
  0xfd   : > { %1832 = vmatprep.subr.bf16.mxu0 %v2176_v10 }
  0xff   : > { %1060 = vmatmul.mubr.f32.vlgmr.msra.gmra.mrb[2].mxu0 %v2612_v30 }
 0x100   : > { %1698 = vmatprep.mubr.msk.f32.mxu0 %vm2178_vm9, %v2177_v36 }
 0x107   : > { %v847_v59 = vpop.permute.xlu0 %846 }
 0x14d   : > { %v2778_v17 = vpop.permute.xlu0 %1210 }
 0x1a3   : > { %v919_v12 = vpop.f32.mrb[0].mxu0 }
 0x1a4   : > { %v920_v14 = vadd.f32 %v919_v12, %v847_v59  ;;  %v921_v29 = vpop.f32.mrb[1].mxu0 }
 0x1a5   : > { %v922_v48 = vadd.f32 %v921_v29, %v847_v59 }
 0x1a6   : > { %v2719_v40 = vmax.f32 %v920_v14, 0.0 }
 0x1a7   : > { %v2721_v20 = vmax.f32 %v922_v48, 0.0 }
 0x1a8   : > { %1200 = vrot.lane.b32.xlu1 %v2719_v40, %s2170_s14  ;;  %1227 = vrot.lane.b32.xlu0 %v2719_v40, %s2173_s17 }
 0x1ac   : > { %1254 = vrot.lane.b32.xlu1 %v2719_v40, %s2172_s16 }
 0x1b0   : > { %1281 = vrot.lane.b32.xlu1 %v2719_v40, %s2174_s18 }
 0x1c3   : > { %v990_v30 = vpop.f32.mrb[0].mxu1 }
 0x1c4   : > { %v991_v23 = vadd.f32 %v990_v30, %v847_v59  ;;  %v992_v18 = vpop.f32.mrb[1].mxu1 }
 0x1c5   : > { %v993_v6 = vadd.f32 %v992_v18, %v847_v59 }
 0x1c6   : > { %v2731_v27 = vmax.f32 %v991_v23, 0.0 }
 0x1c7   : > { %v2733_v26 = vmax.f32 %v993_v6, 0.0 }
 0x1c8   : > { %1285 = vrot.lane.b32.xlu0 %v2731_v27, %s2174_s18  ;;  %v2068_v45 = vpack.i.bf16 %v2731_v27, %v2721_v20 }
 0x1c9   : > { %v2073_v33 = vpack.i.bf16 %v2733_v26, %v2719_v40 }
 0x1ca   : > { %2069 = vrot.lane.b32.xlu1 %v2068_v45, %s2168_s12 }
 0x1cc   : > { %2079 = vrot.lane.b32.xlu0 %v2068_v45, %s2167_s11 }
 0x1ce   : > { %2074 = vrot.lane.b32.xlu1 %v2073_v33, %s2168_s12 }
 0x1d0   : > { %2089 = vrot.lane.b32.xlu0 %v2073_v33, %s2167_s11 }
 0x1d2   : > { %v1061_v35 = vpop.f32.mrb[2].mxu0  ;;  %2084 = vrot.lane.b32.xlu1 %v2068_v45, %s2169_s13 }
 0x1d3   : > { %v1062_v24 = vadd.f32 %v1061_v35, %v847_v59  ;;  %v1063_v39 = vpop.f32.mrb[3].mxu0 }
 0x1d4   : > { %2099 = vrot.lane.b32.xlu0 %v2068_v45, %s2171_s15 }
 0x1d5   : > { %v2747_v16 = vmax.f32 %v1062_v24, 0.0 }
 0x1d6   : > { %2094 = vrot.lane.b32.xlu1 %v2073_v33, %s2169_s13 }
 0x1d7   : > { %v2123_v34 = vpack.i.bf16 %v1080_v55, %v2747_v16  ;;  %v2153_v9 = vpack.i.bf16 %v2747_v16, %v2733_v26 }
 0x1d8   : > { %2109 = vrot.lane.b32.xlu0 %v2073_v33, %s2171_s15 }
 0x1da   : > { %2104 = vrot.lane.b32.xlu1 %v2068_v45, %s2170_s14 }
 0x1dc   : > { %2114 = vrot.lane.b32.xlu0 %v2068_v45, %s2173_s17 }
 0x1de   : > { %2119 = vrot.lane.b32.xlu1 %v2068_v45, %s2172_s16 }
 0x1e0   : > { %2124 = vrot.lane.b32.xlu0 %v2123_v34, %s2168_s12 }
 0x1e2   : > { %1237 = vrot.lane.b32.xlu1 %v1080_v55, %s2173_s17 }
 0x1e4   : > { %2129 = vrot.lane.b32.xlu0 %v2123_v34, %s2167_s11 }
 0x1e6   : > { %1283 = vrot.lane.b32.xlu1 %v2721_v20, %s2174_s18 }
 0x1e8   : > { %2139 = vrot.lane.b32.xlu0 %v2123_v34, %s2171_s15 }
 0x1ea   : > { %2134 = vrot.lane.b32.xlu1 %v2123_v34, %s2169_s13 }
 0x1ec   : > { %2154 = vrot.lane.b32.xlu0 %v2153_v9, %s2172_s16 }
 0x1ee   : > { %2144 = vrot.lane.b32.xlu1 %v2153_v9, %s2170_s14 }
 0x1f0   : > { %1264 = vrot.lane.b32.xlu0 %v1080_v55, %s2172_s16 }
 0x1f2   : > { %2149 = vrot.lane.b32.xlu1 %v2153_v9, %s2173_s17 }
 0x1f4   : > { %1289 = vrot.lane.b32.xlu0 %v2747_v16, %s2174_s18 }
 0x1f6   : > { %1287 = vrot.lane.b32.xlu1 %v2733_v26, %s2174_s18 }
 0x1f8   : > { %1357 = vperm.xlu0 %2067, %v1354_v28  }
 0x1fa   : > { %1291 = vrot.lane.b32.xlu1 %v1080_v55, %s2174_s18 }
 0x21a   : > { %v1201_v32 = vpop.permute.xlu1 %1200  ;;  %v1228_v44 = vpop.permute.xlu0 %1227 }
 0x21e   : > { %v1255_v37 = vpop.permute.xlu1 %1254 }
 0x222   : > { %v2780_v46 = vpop.permute.xlu1 %1281 }
 0x23a   : > { %v2782_v7 = vpop.permute.xlu0 %1285 }
 0x23c   : > { %v2784_v2 = vpop.permute.xlu1 %2069 }
 0x23d   : > { %v2072_v53 = vunpack.i.h.bf16 %v2784_v2  ;;  %v2071_v22 = vunpack.i.l.bf16 %v2784_v2 }
 0x23e   : > { %v2788_v11 = vpop.permute.xlu0 %2079 }
 0x23f   : > { %v1105_v54 = vsel %vm317_vm1, %v2071_v22, %v2072_v53  ;;  %v2082_v42 = vunpack.i.h.bf16 %v2788_v11  ;;  %v2081_v60 = vunpack.i.l.bf16 %v2788_v11 }
 0x240   : > { %v2793_v25 = vpop.permute.xlu1 %2074  ;;  %v1800_v13 = vpack.c.bf16 %v1105_v54, %v2721_v20 }
 0x241   : > { %v2076_v51 = vunpack.i.l.bf16 %v2793_v25  ;;  %v1132_v50 = vsel %vm378_vm2, %v2081_v60, %v2082_v42  ;;  %v2077_v28 = vunpack.i.h.bf16 %v2793_v25 }
 0x242   : > { %v2797_v38 = vpop.permute.xlu0 %2089  ;;  %1801 = vmatprep.subr.bf16.mxu1 %v1800_v13 }
 0x243   : > { %v1104_v41 = vsel %vm317_vm1, %v2076_v51, %v2071_v22  ;;  %v2091_v31 = vunpack.i.l.bf16 %v2797_v38 }
 0x244   : > { %v1802_v1 = vpack.c.bf16 %v1104_v41, %v2719_v40  ;;  %v2803_v61 = vpop.permute.xlu1 %2084 }
 0x245   : > { %v2087_v63 = vunpack.i.h.bf16 %v2803_v61  ;;  %v2086_v5 = vunpack.i.l.bf16 %v2803_v61  ;;  %v1131_v56 = vsel %vm378_vm2, %v2091_v31, %v2081_v60  ;;  %v1106_v60 = vsel %vm317_vm1, %v2072_v53, %v2077_v28 }
 0x246   : > { %v2807_v43 = vpop.permute.xlu0 %2099  ;;  %1803 = vmatpush1.bf16.msra.mxu1 %v1802_v1 }
 0x247   : > { %v1159_v8 = vsel %vm433_vm3, %v2086_v5, %v2087_v63  ;;  %v2102_v58 = vunpack.i.h.bf16 %v2807_v43  ;;  %v2101_v47 = vunpack.i.l.bf16 %v2807_v43 }
 0x248   : > { %v2816_v19 = vpop.permute.xlu1 %2094  ;;  %v1804_v49 = vpack.c.bf16 %v1159_v8, %v1132_v50  ;;  %v2092_v8 = vunpack.i.h.bf16 %v2797_v38 }
 0x249   : > { %v2096_v21 = vunpack.i.l.bf16 %v2816_v19  ;;  %v1186_v12 = vsel %vm488_vm4, %v2101_v47, %v2102_v58  ;;  %v2097_v2 = vunpack.i.h.bf16 %v2816_v19 }
 0x24a   : > { %v2821_v52 = vpop.permute.xlu0 %2109  ;;  %1805 = vmatprep.subr.bf16.mxu1 %v1804_v49 }
 0x24b   : > { %v1158_v15 = vsel %vm433_vm3, %v2096_v21, %v2086_v5  ;;  %v2111_v62 = vunpack.i.l.bf16 %v2821_v52  ;;  %v1160_v19 = vsel %vm433_vm3, %v2087_v63, %v2097_v2 }
 0x24c   : > { %v1806_v3 = vpack.c.bf16 %v1158_v15, %v1131_v56  ;;  %v2826_v57 = vpop.permute.xlu1 %2104 }
 0x24d   : > { %v2107_v0 = vunpack.i.h.bf16 %v2826_v57  ;;  %v2106_v4 = vunpack.i.l.bf16 %v2826_v57  ;;  %v1185_v55 = vsel %vm488_vm4, %v2111_v62, %v2101_v47 }
 0x24e   : > { %v2831_v59 = vpop.permute.xlu0 %2114  ;;  %1807 = vmatpush1.bf16.msra.mxu1 %v1806_v3 }
 0x24f   : > { %v1212_v14 = vsel %vm543_vm5, %v1201_v32, %v2106_v4  ;;  %v2117_v29 = vunpack.i.h.bf16 %v2831_v59  ;;  %v2116_v48 = vunpack.i.l.bf16 %v2831_v59  ;;  %v1213_v40 = vsel %vm543_vm5, %v2106_v4, %v2107_v0 }
 0x250   : > { %v1810_v20 = vpack.c.bf16 %v1212_v14, %v1185_v55  ;;  %v2842_v30 = vpop.permute.xlu1 %2119  ;;  %v1808_v23 = vpack.c.bf16 %v1213_v40, %v1186_v12  ;;  %v1133_v55 = vsel %vm378_vm2, %v2082_v42, %v2092_v8 }
 0x251   : > { %v2122_v18 = vunpack.i.h.bf16 %v2842_v30  ;;  %v2121_v6 = vunpack.i.l.bf16 %v2842_v30  ;;  %v1239_v45 = vsel %vm598_vm6, %v1228_v44, %v2116_v48  ;;  %v1240_v35 = vsel %vm598_vm6, %v2116_v48, %v2117_v29 }
 0x252   : > { %v2125_v33 = vpop.permute.xlu0 %2124  ;;  %1809 = vmatprep.subr.bf16.mxu1 %v1808_v23  ;;  %v1822_v14 = vpack.c.bf16 %v1160_v19, %v1133_v55 }
 0x253   : > { %v1266_v24 = vsel %vm653_vm7, %v1255_v37, %v2121_v6  ;;  %v2127_v39 = vunpack.i.h.bf16 %v2125_v33  ;;  %v2126_v34 = vunpack.i.l.bf16 %v2125_v33  ;;  %1811 = vmatpush1.bf16.msra.mxu1 %v1810_v20  ;;  %v1267_v9 = vsel %vm653_vm7, %v2121_v6, %v2122_v18 }
 0x254   : > { %v1814_v32 = vpack.c.bf16 %v1266_v24, %v1239_v45  ;;  %v2855_v22 = vpop.permute.xlu1 %1237  ;;  %v1812_v44 = vpack.c.bf16 %v1267_v9, %v1240_v35 }
 0x255   : > { %v1108_v54 = vsel %vm317_vm1, %v2126_v34, %v2127_v39  ;;  %v1107_v37 = vsel %vm317_vm1, %v2077_v28, %v2126_v34 }
 0x256   : > { %v1833_v13 = vpack.c.bf16 %v1108_v54, %v2747_v16  ;;  %v2130_v51 = vpop.permute.xlu0 %2129  ;;  %1813 = vmatprep.subr.bf16.mxu1 %v1812_v44  ;;  %v2870_v16 = vld [vmem:[%s2936_s4] sm:$0xff]  ;;  %v1816_v50 = vpack.c.bf16 %v1107_v37, %v2733_v26  ;;  %v2112_v26 = vunpack.i.h.bf16 %v2821_v52 }
 0x257   : > { %1815 = vmatpush1.bf16.msra.mxu1 %v1814_v32  ;;  %v2132_v5 = vunpack.i.h.bf16 %v2130_v51  ;;  %v2131_v53 = vunpack.i.l.bf16 %v2130_v51 }
 0x258   : > { %1834 = vmatpush3.bf16.msra.mxu0 %v1833_v13  ;;  %v1284_v41 = vpop.permute.xlu1 %1283  ;;  %v1187_v40 = vsel %vm488_vm4, %v2102_v58, %v2112_v26 }
 0x259   : > { %v1293_v25 = vsel %vm708_vm8, %v2780_v46, %v1284_v41  ;;  %v1294_v1 = vsel %vm708_vm8, %v1284_v41, %v2782_v7  ;;  %1835 = vmatprep.subr.bf16.mxu0 %v2176_v10  ;;  %v1818_v46 = vpack.c.bf16 %v1106_v60, %v2731_v27  ;;  %v1135_v27 = vsel %vm378_vm2, %v2131_v53, %v2132_v5 }
 0x25a   : > { %v2140_v31 = vpop.permute.xlu0 %2139  ;;  %1380 = vmatprep.subr.mxu1 %v1294_v1  ;;  %v1134_v38 = vsel %vm378_vm2, %v2092_v8, %v2131_v53 }
 0x25b   : > { %1381 = vmatpush1.msra.mxu1 %v1293_v25  ;;  %v2142_v15 = vunpack.i.h.bf16 %v2140_v31  ;;  %v2141_v62 = vunpack.i.l.bf16 %v2140_v31 }
 0x25c   : > { %v2135_v49 = vpop.permute.xlu1 %2134  ;;  %1665 = vmatmul.mubr.msk.f32.vlgmr.msra.gmra.mrb[2].mxu1 %vm1360_vm10, %v2870_v16  ;;  %1817 = vmatprep.subr.bf16.mxu1 %v1816_v50 }
 0x25d   : > { %v2137_v21 = vunpack.i.h.bf16 %v2135_v49  ;;  %v2136_v47 = vunpack.i.l.bf16 %v2135_v49  ;;  %1819 = vmatpush1.bf16.msra.mxu1 %v1818_v46  ;;  %1499 = vmatprep.mubr.f32.mxu1 %v2177_v36  ;;  %v1189_v6 = vsel %vm488_vm4, %v2141_v62, %v2142_v15  ;;  %v1188_v35 = vsel %vm488_vm4, %v2112_v26, %v2141_v62 }
 0x25e   : > { %v2155_v56 = vpop.permute.xlu0 %2154 }
 0x25f   : > { %v1162_v3 = vsel %vm433_vm3, %v2136_v47, %v2137_v21  ;;  %v1161_v4 = vsel %vm433_vm3, %v2097_v2, %v2136_v47  ;;  %v2157_v20 = vunpack.i.h.bf16 %v2155_v56  ;;  %v2156_v23 = vunpack.i.l.bf16 %v2155_v56 }
 0x260   : > { %v1836_v61 = vpack.c.bf16 %v1162_v3, %v1135_v27  ;;  %v2145_v12 = vpop.permute.xlu1 %2144  ;;  %v1820_v63 = vpack.c.bf16 %v1161_v4, %v1134_v38 }
 0x261   : > { %v2147_v52 = vunpack.i.h.bf16 %v2145_v12  ;;  %v2146_v48 = vunpack.i.l.bf16 %v2145_v12 }
 0x262   : > { %1821 = vmatprep.subr.bf16.mxu1 %v1820_v63  ;;  %1837 = vmatpush3.bf16.msra.mxu0 %v1836_v61  ;;  %v1265_v45 = vpop.permute.xlu0 %1264 }
 0x263   : > { %v1216_v11 = vsel %vm543_vm5, %v2147_v52, %v2778_v17  ;;  %v1214_v42 = vsel %vm543_vm5, %v2107_v0, %v2146_v48  ;;  %1823 = vmatpush1.bf16.msra.mxu1 %v1822_v14  ;;  %1838 = vmatprep.subr.bf16.mxu0 %v2176_v10  ;;  %v1215_v24 = vsel %vm543_vm5, %v2146_v48, %v2147_v52 }
 0x264   : > { %v1839_v43 = vpack.c.bf16 %v1216_v11, %v1189_v6  ;;  %v1826_v33 = vpack.c.bf16 %v1214_v42, %v1187_v40  ;;  %v2150_v58 = vpop.permute.xlu1 %2149  ;;  %v1824_v9 = vpack.c.bf16 %v1215_v24, %v1188_v35  ;;  %v1268_v17 = vsel %vm653_vm7, %v2122_v18, %v2156_v23 }
 0x265   : > { %v2152_v39 = vunpack.i.h.bf16 %v2150_v58  ;;  %v2151_v34 = vunpack.i.l.bf16 %v2150_v58  ;;  %v1270_v57 = vsel %vm653_vm7, %v2157_v20, %v1265_v45  ;;  %v1269_v0 = vsel %vm653_vm7, %v2156_v23, %v2157_v20 }
 0x266   : > { %1840 = vmatpush3.bf16.msra.mxu0 %v1839_v43  ;;  %1825 = vmatprep.subr.bf16.mxu1 %v1824_v9  ;;  %v1290_v51 = vpop.permute.xlu0 %1289 }
 0x267   : > { %v1243_v28 = vsel %vm598_vm6, %v2152_v39, %v2855_v22  ;;  %v1241_v32 = vsel %vm598_vm6, %v2117_v29, %v2151_v34  ;;  %1841 = vmatprep.subr.bf16.mxu0 %v2176_v10  ;;  %v1242_v44 = vsel %vm598_vm6, %v2151_v34, %v2152_v39  ;;  %1827 = vmatpush1.bf16.msra.mxu1 %v1826_v33 }
 0x268   : > { %v1842_v30 = vpack.c.bf16 %v1270_v57, %v1243_v28  ;;  %v1830_v54 = vpack.c.bf16 %v1268_v17, %v1241_v32  ;;  %v1288_v18 = vpop.permute.xlu1 %1287  ;;  %v1828_v13 = vpack.c.bf16 %v1269_v0, %v1242_v44 }
 0x269   : > { %v1296_v59 = vsel %vm708_vm8, %v1288_v18, %v1290_v51  ;;  %v1295_v29 = vsel %vm708_vm8, %v2782_v7, %v1288_v18 }
 0x26a   : > { %1829 = vmatprep.subr.bf16.mxu1 %v1828_v13  ;;  %1843 = vmatpush3.bf16.msra.mxu0 %v1842_v30 }
 0x26b   : > { %1696 = vmatprep.subr.mxu0 %v2177_v36  ;;  %1831 = vmatpush1.bf16.msra.mxu1 %v1830_v54 }
 0x26c   : > { %v1292_v22 = vpop.permute.xlu1 %1291  ;;  %1451 = vmatprep.subr.mxu1 %v1296_v59 }
 0x26d   : > { %v1297_v10 = vsel %vm708_vm8, %v1290_v51, %v1292_v22 }
 0x26e   : > { %1697 = vmatpush3.msra.mxu0 %v1297_v10 }
 0x26f   : > { %1699 = vmatmul.mubr.msk.f32.vlgmr.msra.gmra.mrb[4].mxu0 %vm1360_vm10, %v2870_v16  ;;  %1452 = vmatpush1.msra.mxu1 %v1295_v29 }
 0x270   : > { %1666 = vmatmul.mubr.msk.f32.vlgmr.msra.gmra.mrb[4].mxu1 %vm1360_vm10, %v2870_v16 }
 0x277   : > { %v1358_v36 = vpop.permute.xlu0 %1357 }
 0x32f   : > { %v1430_v37 = vpop.f32.mrb[2].mxu1 }
 0x330   : > { %v1431_v60 = vadd.f32 %v1430_v37, %v1358_v36  ;;  %v1432_v41 = vpop.f32.mrb[3].mxu1 }
 0x331   : > { %v1433_v25 = vadd.f32 %v1432_v41, %v1358_v36 }
 0x332   : > { %v1576_v1 = vmax.f32 %v1431_v60, 0.0 }
 0x333   : > { %v1577_v2 = vmax.f32 %v1433_v25, 0.0 }
 0x334   : > { %1581 = vst [vmem:[%s2235_s10] sm:$0xff] %v1576_v1 }
 0x335   : > { %1582 = vst [vmem:[%s2235_s10 + $0x8] sm:$0xff] %v1577_v2 }
 0x342   : > { %v1572_v7 = vpop.f32.mrb[4].mxu0 }
 0x343   : > { %v1573_v5 = vadd.f32 %v1572_v7, %v1358_v36  ;;  %v1700_v53 = vpop.f32.mrb[5].mxu0  ;;  %v1501_v31 = vpop.f32.mrb[4].mxu1 }
 0x344   : > { %v1502_v46 = vadd.f32 %v1501_v31, %v1358_v36  ;;  %v1503_v8 = vpop.f32.mrb[5].mxu1 }
 0x345   : > { %v1580_v50 = vmax.f32 %v1573_v5, 0.0  ;;  %v1504_v16 = vadd.f32 %v1503_v8, %v1358_v36 }
 0x346   : > { %v1578_v49 = vmax.f32 %v1502_v46, 0.0 }
 0x347   : > { %1585 = vst [vmem:[%s2235_s10 + $0x20] sm:$0xff] %v1580_v50  ;;  %v1579_v21 = vmax.f32 %v1504_v16, 0.0 }
 0x348   : > { %1583 = vst [vmem:[%s2235_s10 + $0x10] sm:$0xff] %v1578_v49 }
 0x349   : > { %1584 = vst [vmem:[%s2235_s10 + $0x18] sm:$0xff] %v1579_v21 }
 0x34a PF: > { %s16_s21 = sadd.s32 1, %s2164_s21  }
 0x34b   : > { %p13_p5 = scmp.ge.s32.totalorder %s16_s21, 4  }
 0x34d   :  { %15 = sbr.rel (!%p13_p5) target bundleno = 1 (0x1), region = 81 }

</bundles_post_ra>
